<compile_context>
chip_gen: v7x
topology: tpu7x:2x2x1
jax: 0.10.0
libtpu: 0.0.40
codegen_flags: <defaults>
</compile_context>

<pallas_src>
import functools

import jax
import jax.numpy as jnp
from jax.experimental import pallas as pl
from jax.experimental.pallas import tpu as pltpu


def _mish_ref(x):
    # Reference Mish: x * tanh(softplus(x)), numerically stable (pure JAX).
    sp = jnp.maximum(x, 0.0) + jnp.log1p(jnp.exp(-jnp.abs(x)))
    return x * jnp.tanh(sp)


def _mish(x):
    # In-kernel Mish:  mish(x) = x * q / (q + 2)  with  q = e^x (e^x + 2).
    # One EUP exp + one approx EUP reciprocal (plus a cheap VPU Newton step for
    # ~f32 accuracy) instead of exp + log1p + tanh (3 transcendentals).
    n = jnp.exp(jnp.minimum(x, 20.0))
    q = n * (n + 2.0)
    den = q + 2.0
    r = pl.reciprocal(den, approx=True)
    r = r * (2.0 - den * r)              # one Newton refinement
    return x * q * r


def darkblock_kernel(x_ref, w1_ref, s1_ref, b1_ref, w2_ref, s2_ref, b2_ref,
                     out_ref, pad_ref, *, dilation, H, W, PL):
    """One batch image per grid step.

    x_ref   : (1, H, W, Cp)       f32   input (Cp = planes)
    w1_ref  : (Cp, Cin)           bf16  1x1 conv weight, transposed (Cin = inplanes)
    s1/b1   : (1, Cin)            f32   folded BN1 scale / bias
    w2_ref  : (3, 3*Cin, Cp)      bf16  3x3 conv weight, kw taps flattened into K
    s2/b2   : (1, Cp)             f32   folded BN2 scale / bias
    out_ref : (1, H, W, Cp)       f32
    pad_ref : (H+2d, 2*PL+W, Cin) bf16  scratch; interior starts at column PL
              (PL is a multiple of 16 so interior writes stay sublane-aligned
              even with bf16 packing)
    """
    d = dilation
    Cp = out_ref.shape[-1]
    Cin = w1_ref.shape[-1]
    Wp = pad_ref.shape[1]

    x2d = x_ref[0].reshape(H * W, Cp)                      # f32, kept for residual

    # ---- conv1 (1x1): bf16 operands on the MXU, f32 accumulation ----
    t = jnp.dot(x2d.astype(jnp.bfloat16), w1_ref[...],
                preferred_element_type=jnp.float32)        # (H*W, Cin)
    # ---- bn1 (folded) + Mish (f32 VPU/EUP) ----
    t = _mish(t * s1_ref[0] + b1_ref[0])

    # ---- refresh only the zero border of the scratch; the interior is fully
    #      overwritten every step, so this stays correct even when the batch
    #      axis is sharded across TensorCores.  Border strips are tiny. ----
    zrow = jnp.zeros((d, Wp, Cin), jnp.bfloat16)
    pad_ref[0:d, :, :] = zrow                              # top halo rows
    pad_ref[d + H:2 * d + H, :, :] = zrow                  # bottom halo rows
    pad_ref[d:d + H, 0:PL, :] = jnp.zeros((H, PL, Cin), jnp.bfloat16)
    pad_ref[d:d + H, PL + W:Wp, :] = jnp.zeros((H, Wp - PL - W, Cin), jnp.bfloat16)

    # ---- conv1 result straight into the aligned interior (bf16) ----
    pad_ref[d:d + H, PL:PL + W, :] = t.astype(jnp.bfloat16).reshape(H, W, Cin)

    # ---- conv2 (3x3, dilation d, "same"): 3 MXU matmuls with K = 3*Cin.
    #      kh shifts are on the free outer axis; the three kw-shifted windows
    #      are concatenated along channels so each kh is a single matmul. ----
    acc = None
    for kh in range(3):
        slab = pad_ref[kh * d:kh * d + H, :, :]            # (H, Wp, Cin) bf16
        x3 = jnp.concatenate(
            [slab[:, PL + (kw - 1) * d:PL + (kw - 1) * d + W, :]
             for kw in range(3)],
            axis=-1)                                        # (H, W, 3*Cin)
        part = jnp.dot(x3.reshape(H * W, 3 * Cin), w2_ref[kh],
                       preferred_element_type=jnp.float32)  # (H*W, Cp)
        acc = part if acc is None else acc + part           # init from first tap

    # ---- bn2 (folded) + Mish + residual add (f32) ----
    out2d = _mish(acc * s2_ref[0] + b2_ref[0]) + x2d
    out_ref[0] = out2d.reshape(H, W, Cp).astype(out_ref.dtype)


def darkblock_forward_nhwc(x, w1_t, s1, b1, w2_r, s2, b2, *, dilation):
    """x: (N, H, W, Cp) float32. Returns (N, H, W, Cp) float32."""
    # TODO(synk): for production-size feature maps on v7x (64 MiB VMEM), add an
    # H-row grid axis with a d-row halo (manual halo DMA or recompute of the
    # cheap 1x1 conv on halo rows) instead of one whole image per step.
    N, H, W, Cp = x.shape
    Cin = w1_t.shape[-1]
    d = dilation
    PL = -(-d // 16) * 16            # interior column offset, multiple of 16 (>= d)
    Wp = 2 * PL + W

    kern = functools.partial(darkblock_kernel, dilation=d, H=H, W=W, PL=PL)

    # Scoped-VMEM budget: double-buffered in/out blocks + scratch + headroom.
    est = (2 * 2 * H * W * Cp * 4            # in + out blocks, double-buffered f32
           + (H + 2 * d) * Wp * Cin * 2      # bf16 pad scratch
           + 8 * 1024 * 1024)                # matmul / im2col temporaries
    vmem_limit = int(min(max(est, 32 * 1024 * 1024), 56 * 1024 * 1024))

    return pl.pallas_call(
        kern,
        out_shape=jax.ShapeDtypeStruct((N, H, W, Cp), x.dtype),
        grid=(N,),
        in_specs=[
            pl.BlockSpec((1, H, W, Cp), lambda n: (n, 0, 0, 0)),
            pl.BlockSpec((Cp, Cin), lambda n: (0, 0)),
            pl.BlockSpec((1, Cin), lambda n: (0, 0)),
            pl.BlockSpec((1, Cin), lambda n: (0, 0)),
            pl.BlockSpec((3, 3 * Cin, Cp), lambda n: (0, 0, 0)),
            pl.BlockSpec((1, Cp), lambda n: (0, 0)),
            pl.BlockSpec((1, Cp), lambda n: (0, 0)),
        ],
        out_specs=pl.BlockSpec((1, H, W, Cp), lambda n: (n, 0, 0, 0)),
        scratch_shapes=[pltpu.VMEM((H + 2 * d, Wp, Cin), jnp.bfloat16)],
        compiler_params=pltpu.CompilerParams(
            dimension_semantics=("parallel",),
            vmem_limit_bytes=vmem_limit),
    )(x, w1_t, s1, b1, w2_r, s2, b2)


def darkblock_forward(x_nchw, params, *, dilation=1):
    """PyTorch-convention entry point: x_nchw is (N, planes, H, W)."""
    # TODO(synk): if the surrounding network can stay NHWC, call
    # darkblock_forward_nhwc directly and drop these two full-tensor transposes.
    eps = 1e-4
    # Fold BatchNorm (inference mode) into per-channel scale / bias.
    s1 = params["bn1_gamma"] / jnp.sqrt(params["bn1_var"] + eps)
    b1 = params["bn1_beta"] - params["bn1_mean"] * s1
    s2 = params["bn2_gamma"] / jnp.sqrt(params["bn2_var"] + eps)
    b2 = params["bn2_beta"] - params["bn2_mean"] * s2

    Cp, Cin = params["conv2_w"].shape[0], params["conv2_w"].shape[1]
    # conv1 weight (inplanes, planes, 1, 1) -> (planes, inplanes), bf16.
    w1_t = jnp.transpose(params["conv1_w"][:, :, 0, 0], (1, 0)).astype(jnp.bfloat16)
    # conv2 weight (planes, inplanes, 3, 3) -> (kh, kw*Cin + ci, planes), bf16.
    w2_r = jnp.transpose(params["conv2_w"], (2, 3, 1, 0)).reshape(
        3, 3 * Cin, Cp).astype(jnp.bfloat16)

    x = jnp.transpose(x_nchw, (0, 2, 3, 1))  # NCHW -> NHWC
    out = darkblock_forward_nhwc(
        x, w1_t, s1[None, :], b1[None, :], w2_r, s2[None, :], b2[None, :],
        dilation=dilation)
    return jnp.transpose(out, (0, 3, 1, 2))  # NHWC -> NCHW


# ---------------------------- reference (pure JAX, f32) ----------------------------
def darkblock_reference(x_nchw, params, *, dilation=1):
    eps = 1e-4

    def bn(v, g, b, m, var):
        s = g / jnp.sqrt(var + eps)
        return v * s[None, :, None, None] + (b - m * s)[None, :, None, None]

    out = jax.lax.conv_general_dilated(
        x_nchw, params["conv1_w"], (1, 1), "VALID",
        dimension_numbers=("NCHW", "OIHW", "NCHW"))
    out = _mish_ref(bn(out, params["bn1_gamma"], params["bn1_beta"],
                       params["bn1_mean"], params["bn1_var"]))
    out = jax.lax.conv_general_dilated(
        out, params["conv2_w"], (1, 1),
        ((dilation, dilation), (dilation, dilation)),
        rhs_dilation=(dilation, dilation),
        dimension_numbers=("NCHW", "OIHW", "NCHW"))
    out = _mish_ref(bn(out, params["bn2_gamma"], params["bn2_beta"],
                       params["bn2_mean"], params["bn2_var"]))
    return out + x_nchw


if __name__ == "__main__":
    # Small shapes consistent with the module:
    #   input x has `planes` channels; conv1: planes->inplanes; conv2: inplanes->planes.
    N, H, W = 2, 16, 16
    inplanes, planes, dilation = 16, 32, 1

    key = jax.random.PRNGKey(0)
    ks = jax.random.split(key, 12)
    params = {
        "conv1_w": 0.1 * jax.random.normal(ks[0], (inplanes, planes, 1, 1), jnp.float32),
        "conv2_w": 0.1 * jax.random.normal(ks[1], (planes, inplanes, 3, 3), jnp.float32),
        "bn1_gamma": 1.0 + 0.1 * jax.random.normal(ks[2], (inplanes,), jnp.float32),
        "bn1_beta": 0.1 * jax.random.normal(ks[3], (inplanes,), jnp.float32),
        "bn1_mean": 0.1 * jax.random.normal(ks[4], (inplanes,), jnp.float32),
        "bn1_var": jax.random.uniform(ks[5], (inplanes,), jnp.float32, 0.5, 1.5),
        "bn2_gamma": 1.0 + 0.1 * jax.random.normal(ks[6], (planes,), jnp.float32),
        "bn2_beta": 0.1 * jax.random.normal(ks[7], (planes,), jnp.float32),
        "bn2_mean": 0.1 * jax.random.normal(ks[8], (planes,), jnp.float32),
        "bn2_var": jax.random.uniform(ks[9], (planes,), jnp.float32, 0.5, 1.5),
    }
    x = jax.random.normal(ks[10], (N, planes, H, W), jnp.float32)

    # TODO(synk): downsample=None path only (as constructed by default); an
    # arbitrary user-supplied downsample module has no fixed kernel equivalent.
    out = darkblock_forward(x, params, dilation=dilation)
    out = jax.block_until_ready(out)

    ref = jax.block_until_ready(darkblock_reference(x, params, dilation=dilation))
    assert out.shape == ref.shape and out.dtype == ref.dtype
    # bf16 MXU operands -> tolerance loosened accordingly (f32 reference).
    assert jnp.allclose(out, ref, atol=5e-2, rtol=5e-2), (
        float(jnp.max(jnp.abs(out - ref))))
    print("KERNEL_OK")
</pallas_src>

<mosaic_0001>
module attributes {stable_mosaic.version = 11 : i64} {
  func.func @darkblock_kernel(%arg0: i32, %arg1: memref<1x16x16x32xf32, #tpu.memory_space<vmem>>, %arg2: memref<32x16xbf16, #tpu.memory_space<vmem>>, %arg3: memref<1x16xf32, #tpu.memory_space<vmem>>, %arg4: memref<1x16xf32, #tpu.memory_space<vmem>>, %arg5: memref<3x48x32xbf16, #tpu.memory_space<vmem>>, %arg6: memref<1x32xf32, #tpu.memory_space<vmem>>, %arg7: memref<1x32xf32, #tpu.memory_space<vmem>>, %arg8: memref<1x16x16x32xf32, #tpu.memory_space<vmem>>, %arg9: memref<18x48x16xbf16, #tpu.memory_space<vmem>>) attributes {dimension_semantics = [#tpu.dimension_semantics<parallel>], iteration_bounds = array<i64: 2>, scalar_prefetch = 0 : i64, scratch_operands = 1 : i64, tpu.core_type = #tpu.core_type<tc>, window_params = [{transform_indices = @transform_0, window_bounds = array<i64: 1, 16, 16, 32>}, {pipeline_mode = #tpu.pipeline_mode<synchronous>, transform_indices = @transform_1, window_bounds = array<i64: 32, 16>}, {pipeline_mode = #tpu.pipeline_mode<synchronous>, transform_indices = @transform_2, window_bounds = array<i64: 1, 16>}, {pipeline_mode = #tpu.pipeline_mode<synchronous>, transform_indices = @transform_3, window_bounds = array<i64: 1, 16>}, {pipeline_mode = #tpu.pipeline_mode<synchronous>, transform_indices = @transform_4, window_bounds = array<i64: 3, 48, 32>}, {pipeline_mode = #tpu.pipeline_mode<synchronous>, transform_indices = @transform_5, window_bounds = array<i64: 1, 32>}, {pipeline_mode = #tpu.pipeline_mode<synchronous>, transform_indices = @transform_6, window_bounds = array<i64: 1, 32>}, {transform_indices = @transform_7, window_bounds = array<i64: 1, 16, 16, 32>}]} {
    %c0 = arith.constant 0 : index
    %c0_0 = arith.constant 0 : index
    %c0_1 = arith.constant 0 : index
    %c0_2 = arith.constant 0 : index
    %0 = vector.load %arg1[%c0, %c0_0, %c0_1, %c0_2] : memref<1x16x16x32xf32, #tpu.memory_space<vmem>>, vector<1x16x16x32xf32>
    %1 = vector.shape_cast %0 : vector<1x16x16x32xf32> to vector<16x16x32xf32>
    %2 = vector.shape_cast %1 : vector<16x16x32xf32> to vector<256x32xf32>
    %3 = arith.truncf %2 : vector<256x32xf32> to vector<256x32xbf16>
    %c0_3 = arith.constant 0 : index
    %c0_4 = arith.constant 0 : index
    %4 = vector.load %arg2[%c0_3, %c0_4] : memref<32x16xbf16, #tpu.memory_space<vmem>>, vector<32x16xbf16>
    %cst = arith.constant dense<0.000000e+00> : vector<256x16xf32>
    %5 = tpu.matmul %3, %4, %cst {dimension_numbers = #tpu.dot_dimension_numbers<[1], [0], [0], [1], [0, 0, 1, 1], [], []>} : vector<256x32xbf16>, vector<32x16xbf16>, vector<256x16xf32> -> vector<256x16xf32>
    %c0_5 = arith.constant 0 : index
    %c0_6 = arith.constant 0 : index
    %6 = vector.load %arg3[%c0_5, %c0_6] : memref<1x16xf32, #tpu.memory_space<vmem>>, vector<1x16xf32>
    %7 = vector.shape_cast %6 : vector<1x16xf32> to vector<16xf32>
    %8 = vector.shape_cast %7 : vector<16xf32> to vector<1x16xf32>
    %9 = vector.broadcast %8 : vector<1x16xf32> to vector<256x16xf32>
    %10 = arith.mulf %5, %9 : vector<256x16xf32>
    %c0_7 = arith.constant 0 : index
    %c0_8 = arith.constant 0 : index
    %11 = vector.load %arg4[%c0_7, %c0_8] : memref<1x16xf32, #tpu.memory_space<vmem>>, vector<1x16xf32>
    %12 = vector.shape_cast %11 : vector<1x16xf32> to vector<16xf32>
    %13 = vector.shape_cast %12 : vector<16xf32> to vector<1x16xf32>
    %14 = vector.broadcast %13 : vector<1x16xf32> to vector<256x16xf32>
    %15 = arith.addf %10, %14 : vector<256x16xf32>
    %cst_9 = arith.constant 2.000000e+01 : f32
    %16 = vector.broadcast %cst_9 : f32 to vector<256x16xf32>
    %17 = arith.minimumf %15, %16 : vector<256x16xf32>
    %18 = math.exp %17 : vector<256x16xf32>
    %cst_10 = arith.constant 2.000000e+00 : f32
    %19 = vector.broadcast %cst_10 : f32 to vector<256x16xf32>
    %20 = arith.addf %18, %19 : vector<256x16xf32>
    %21 = arith.mulf %18, %20 : vector<256x16xf32>
    %cst_11 = arith.constant 2.000000e+00 : f32
    %22 = vector.broadcast %cst_11 : f32 to vector<256x16xf32>
    %23 = arith.addf %21, %22 : vector<256x16xf32>
    %24 = tpu.reciprocal %23 {approx = true} : vector<256x16xf32> -> vector<256x16xf32>
    %25 = arith.mulf %23, %24 : vector<256x16xf32>
    %cst_12 = arith.constant 2.000000e+00 : f32
    %26 = vector.broadcast %cst_12 : f32 to vector<256x16xf32>
    %27 = arith.subf %26, %25 : vector<256x16xf32>
    %28 = arith.mulf %24, %27 : vector<256x16xf32>
    %29 = arith.mulf %15, %21 : vector<256x16xf32>
    %30 = arith.mulf %29, %28 : vector<256x16xf32>
    %cst_13 = arith.constant 0.000000e+00 : bf16
    %31 = vector.broadcast %cst_13 : bf16 to vector<1x48x16xbf16>
    %c0_14 = arith.constant 0 : index
    %c0_15 = arith.constant 0 : index
    %c0_16 = arith.constant 0 : index
    %32 = vector.load %arg9[%c0_14, %c0_15, %c0_16] : memref<18x48x16xbf16, #tpu.memory_space<vmem>>, vector<1x48x16xbf16>
    tpu.vector_store %arg9[%c0_14, %c0_15, %c0_16], %31 {strides = array<i32>} : memref<18x48x16xbf16, #tpu.memory_space<vmem>>, vector<1x48x16xbf16>,
    %c17 = arith.constant 17 : index
    %c0_17 = arith.constant 0 : index
    %c0_18 = arith.constant 0 : index
    %33 = vector.load %arg9[%c17, %c0_17, %c0_18] : memref<18x48x16xbf16, #tpu.memory_space<vmem>>, vector<1x48x16xbf16>
    tpu.vector_store %arg9[%c17, %c0_17, %c0_18], %31 {strides = array<i32>} : memref<18x48x16xbf16, #tpu.memory_space<vmem>>, vector<1x48x16xbf16>,
    %cst_19 = arith.constant 0.000000e+00 : bf16
    %34 = vector.broadcast %cst_19 : bf16 to vector<16x16x16xbf16>
    %c1 = arith.constant 1 : index
    %c0_20 = arith.constant 0 : index
    %c0_21 = arith.constant 0 : index
    %35 = vector.load %arg9[%c1, %c0_20, %c0_21] : memref<18x48x16xbf16, #tpu.memory_space<vmem>>, vector<16x16x16xbf16>
    tpu.vector_store %arg9[%c1, %c0_20, %c0_21], %34 {strides = array<i32>} : memref<18x48x16xbf16, #tpu.memory_space<vmem>>, vector<16x16x16xbf16>,
    %cst_22 = arith.constant 0.000000e+00 : bf16
    %36 = vector.broadcast %cst_22 : bf16 to vector<16x16x16xbf16>
    %c1_23 = arith.constant 1 : index
    %c32 = arith.constant 32 : index
    %c0_24 = arith.constant 0 : index
    %37 = vector.load %arg9[%c1_23, %c32, %c0_24] : memref<18x48x16xbf16, #tpu.memory_space<vmem>>, vector<16x16x16xbf16>
    tpu.vector_store %arg9[%c1_23, %c32, %c0_24], %36 {strides = array<i32>} : memref<18x48x16xbf16, #tpu.memory_space<vmem>>, vector<16x16x16xbf16>,
    %38 = arith.truncf %30 : vector<256x16xf32> to vector<256x16xbf16>
    %39 = vector.shape_cast %38 : vector<256x16xbf16> to vector<16x16x16xbf16>
    %c1_25 = arith.constant 1 : index
    %c16 = arith.constant 16 : index
    %c0_26 = arith.constant 0 : index
    %40 = vector.load %arg9[%c1_25, %c16, %c0_26] : memref<18x48x16xbf16, #tpu.memory_space<vmem>>, vector<16x16x16xbf16>
    tpu.vector_store %arg9[%c1_25, %c16, %c0_26], %39 {strides = array<i32>} : memref<18x48x16xbf16, #tpu.memory_space<vmem>>, vector<16x16x16xbf16>,
    %c0_27 = arith.constant 0 : index
    %c0_28 = arith.constant 0 : index
    %c0_29 = arith.constant 0 : index
    %41 = vector.load %arg9[%c0_27, %c0_28, %c0_29] : memref<18x48x16xbf16, #tpu.memory_space<vmem>>, vector<16x48x16xbf16>
    %42 = vector.extract_strided_slice %41 {offsets = [0, 15, 0], sizes = [16, 16, 16], strides = [1, 1, 1]} : vector<16x48x16xbf16> to vector<16x16x16xbf16>
    %43 = vector.extract_strided_slice %41 {offsets = [0, 16, 0], sizes = [16, 16, 16], strides = [1, 1, 1]} : vector<16x48x16xbf16> to vector<16x16x16xbf16>
    %44 = vector.extract_strided_slice %41 {offsets = [0, 17, 0], sizes = [16, 16, 16], strides = [1, 1, 1]} : vector<16x48x16xbf16> to vector<16x16x16xbf16>
    %45 = tpu.concatenate %42, %43, %44 in 2 : vector<16x16x16xbf16>, vector<16x16x16xbf16>, vector<16x16x16xbf16> -> vector<16x16x48xbf16>
    %46 = vector.shape_cast %45 : vector<16x16x48xbf16> to vector<256x48xbf16>
    %c0_30 = arith.constant 0 : index
    %c0_31 = arith.constant 0 : index
    %c0_32 = arith.constant 0 : index
    %47 = vector.load %arg5[%c0_30, %c0_31, %c0_32] : memref<3x48x32xbf16, #tpu.memory_space<vmem>>, vector<1x48x32xbf16>
    %48 = vector.shape_cast %47 : vector<1x48x32xbf16> to vector<48x32xbf16>
    %cst_33 = arith.constant dense<0.000000e+00> : vector<256x32xf32>
    %49 = tpu.matmul %46, %48, %cst_33 {dimension_numbers = #tpu.dot_dimension_numbers<[1], [0], [0], [1], [0, 0, 1, 1], [], []>} : vector<256x48xbf16>, vector<48x32xbf16>, vector<256x32xf32> -> vector<256x32xf32>
    %c1_34 = arith.constant 1 : index
    %c0_35 = arith.constant 0 : index
    %c0_36 = arith.constant 0 : index
    %50 = vector.load %arg9[%c1_34, %c0_35, %c0_36] : memref<18x48x16xbf16, #tpu.memory_space<vmem>>, vector<16x48x16xbf16>
    %51 = vector.extract_strided_slice %50 {offsets = [0, 15, 0], sizes = [16, 16, 16], strides = [1, 1, 1]} : vector<16x48x16xbf16> to vector<16x16x16xbf16>
    %52 = vector.extract_strided_slice %50 {offsets = [0, 16, 0], sizes = [16, 16, 16], strides = [1, 1, 1]} : vector<16x48x16xbf16> to vector<16x16x16xbf16>
    %53 = vector.extract_strided_slice %50 {offsets = [0, 17, 0], sizes = [16, 16, 16], strides = [1, 1, 1]} : vector<16x48x16xbf16> to vector<16x16x16xbf16>
    %54 = tpu.concatenate %51, %52, %53 in 2 : vector<16x16x16xbf16>, vector<16x16x16xbf16>, vector<16x16x16xbf16> -> vector<16x16x48xbf16>
    %55 = vector.shape_cast %54 : vector<16x16x48xbf16> to vector<256x48xbf16>
    %c1_37 = arith.constant 1 : index
    %c0_38 = arith.constant 0 : index
    %c0_39 = arith.constant 0 : index
    %56 = vector.load %arg5[%c1_37, %c0_38, %c0_39] : memref<3x48x32xbf16, #tpu.memory_space<vmem>>, vector<1x48x32xbf16>
    %57 = vector.shape_cast %56 : vector<1x48x32xbf16> to vector<48x32xbf16>
    %cst_40 = arith.constant dense<0.000000e+00> : vector<256x32xf32>
    %58 = tpu.matmul %55, %57, %cst_40 {dimension_numbers = #tpu.dot_dimension_numbers<[1], [0], [0], [1], [0, 0, 1, 1], [], []>} : vector<256x48xbf16>, vector<48x32xbf16>, vector<256x32xf32> -> vector<256x32xf32>
    %59 = arith.addf %49, %58 : vector<256x32xf32>
    %c2 = arith.constant 2 : index
    %c0_41 = arith.constant 0 : index
    %c0_42 = arith.constant 0 : index
    %60 = vector.load %arg9[%c2, %c0_41, %c0_42] : memref<18x48x16xbf16, #tpu.memory_space<vmem>>, vector<16x48x16xbf16>
    %61 = vector.extract_strided_slice %60 {offsets = [0, 15, 0], sizes = [16, 16, 16], strides = [1, 1, 1]} : vector<16x48x16xbf16> to vector<16x16x16xbf16>
    %62 = vector.extract_strided_slice %60 {offsets = [0, 16, 0], sizes = [16, 16, 16], strides = [1, 1, 1]} : vector<16x48x16xbf16> to vector<16x16x16xbf16>
    %63 = vector.extract_strided_slice %60 {offsets = [0, 17, 0], sizes = [16, 16, 16], strides = [1, 1, 1]} : vector<16x48x16xbf16> to vector<16x16x16xbf16>
    %64 = tpu.concatenate %61, %62, %63 in 2 : vector<16x16x16xbf16>, vector<16x16x16xbf16>, vector<16x16x16xbf16> -> vector<16x16x48xbf16>
    %65 = vector.shape_cast %64 : vector<16x16x48xbf16> to vector<256x48xbf16>
    %c2_43 = arith.constant 2 : index
    %c0_44 = arith.constant 0 : index
    %c0_45 = arith.constant 0 : index
    %66 = vector.load %arg5[%c2_43, %c0_44, %c0_45] : memref<3x48x32xbf16, #tpu.memory_space<vmem>>, vector<1x48x32xbf16>
    %67 = vector.shape_cast %66 : vector<1x48x32xbf16> to vector<48x32xbf16>
    %cst_46 = arith.constant dense<0.000000e+00> : vector<256x32xf32>
    %68 = tpu.matmul %65, %67, %cst_46 {dimension_numbers = #tpu.dot_dimension_numbers<[1], [0], [0], [1], [0, 0, 1, 1], [], []>} : vector<256x48xbf16>, vector<48x32xbf16>, vector<256x32xf32> -> vector<256x32xf32>
    %69 = arith.addf %59, %68 : vector<256x32xf32>
    %c0_47 = arith.constant 0 : index
    %c0_48 = arith.constant 0 : index
    %70 = vector.load %arg6[%c0_47, %c0_48] : memref<1x32xf32, #tpu.memory_space<vmem>>, vector<1x32xf32>
    %71 = vector.shape_cast %70 : vector<1x32xf32> to vector<32xf32>
    %72 = vector.shape_cast %71 : vector<32xf32> to vector<1x32xf32>
    %73 = vector.broadcast %72 : vector<1x32xf32> to vector<256x32xf32>
    %74 = arith.mulf %69, %73 : vector<256x32xf32>
    %c0_49 = arith.constant 0 : index
    %c0_50 = arith.constant 0 : index
    %75 = vector.load %arg7[%c0_49, %c0_50] : memref<1x32xf32, #tpu.memory_space<vmem>>, vector<1x32xf32>
    %76 = vector.shape_cast %75 : vector<1x32xf32> to vector<32xf32>
    %77 = vector.shape_cast %76 : vector<32xf32> to vector<1x32xf32>
    %78 = vector.broadcast %77 : vector<1x32xf32> to vector<256x32xf32>
    %79 = arith.addf %74, %78 : vector<256x32xf32>
    %cst_51 = arith.constant 2.000000e+01 : f32
    %80 = vector.broadcast %cst_51 : f32 to vector<256x32xf32>
    %81 = arith.minimumf %79, %80 : vector<256x32xf32>
    %82 = math.exp %81 : vector<256x32xf32>
    %cst_52 = arith.constant 2.000000e+00 : f32
    %83 = vector.broadcast %cst_52 : f32 to vector<256x32xf32>
    %84 = arith.addf %82, %83 : vector<256x32xf32>
    %85 = arith.mulf %82, %84 : vector<256x32xf32>
    %cst_53 = arith.constant 2.000000e+00 : f32
    %86 = vector.broadcast %cst_53 : f32 to vector<256x32xf32>
    %87 = arith.addf %85, %86 : vector<256x32xf32>
    %88 = tpu.reciprocal %87 {approx = true} : vector<256x32xf32> -> vector<256x32xf32>
    %89 = arith.mulf %87, %88 : vector<256x32xf32>
    %cst_54 = arith.constant 2.000000e+00 : f32
    %90 = vector.broadcast %cst_54 : f32 to vector<256x32xf32>
    %91 = arith.subf %90, %89 : vector<256x32xf32>
    %92 = arith.mulf %88, %91 : vector<256x32xf32>
    %93 = arith.mulf %79, %85 : vector<256x32xf32>
    %94 = arith.mulf %93, %92 : vector<256x32xf32>
    %95 = arith.addf %94, %2 : vector<256x32xf32>
    %96 = vector.shape_cast %95 : vector<256x32xf32> to vector<16x16x32xf32>
    %c0_55 = arith.constant 0 : index
    %c0_56 = arith.constant 0 : index
    %c0_57 = arith.constant 0 : index
    %c0_58 = arith.constant 0 : index
    %97 = vector.load %arg8[%c0_55, %c0_56, %c0_57, %c0_58] : memref<1x16x16x32xf32, #tpu.memory_space<vmem>>, vector<1x16x16x32xf32>
    %98 = vector.shape_cast %97 : vector<1x16x16x32xf32> to vector<16x16x32xf32>
    %99 = vector.shape_cast %96 : vector<16x16x32xf32> to vector<1x16x16x32xf32>
    tpu.vector_store %arg8[%c0_55, %c0_56, %c0_57, %c0_58], %99 {strides = array<i32>} : memref<1x16x16x32xf32, #tpu.memory_space<vmem>>, vector<1x16x16x32xf32>,
    return
  }
  func.func @transform_0(%arg0: i32) -> (i32, i32, i32, i32) {
    %c0_i32 = arith.constant 0 : i32
    %c0_i32_0 = arith.constant 0 : i32
    %c0_i32_1 = arith.constant 0 : i32
    %c0_i32_2 = arith.constant 0 : i32
    return %arg0, %c0_i32, %c0_i32_0, %c0_i32_1 : i32, i32, i32, i32
  }
  func.func @transform_1(%arg0: i32) -> (i32, i32) {
    %c0_i32 = arith.constant 0 : i32
    %c0_i32_0 = arith.constant 0 : i32
    %c0_i32_1 = arith.constant 0 : i32
    return %c0_i32, %c0_i32_0 : i32, i32
  }
  func.func @transform_2(%arg0: i32) -> (i32, i32) {
    %c0_i32 = arith.constant 0 : i32
    %c0_i32_0 = arith.constant 0 : i32
    %c0_i32_1 = arith.constant 0 : i32
    return %c0_i32, %c0_i32_0 : i32, i32
  }
  func.func @transform_3(%arg0: i32) -> (i32, i32) {
    %c0_i32 = arith.constant 0 : i32
    %c0_i32_0 = arith.constant 0 : i32
    %c0_i32_1 = arith.constant 0 : i32
    return %c0_i32, %c0_i32_0 : i32, i32
  }
  func.func @transform_4(%arg0: i32) -> (i32, i32, i32) {
    %c0_i32 = arith.constant 0 : i32
    %c0_i32_0 = arith.constant 0 : i32
    %c0_i32_1 = arith.constant 0 : i32
    %c0_i32_2 = arith.constant 0 : i32
    return %c0_i32, %c0_i32_0, %c0_i32_1 : i32, i32, i32
  }
  func.func @transform_5(%arg0: i32) -> (i32, i32) {
    %c0_i32 = arith.constant 0 : i32
    %c0_i32_0 = arith.constant 0 : i32
    %c0_i32_1 = arith.constant 0 : i32
    return %c0_i32, %c0_i32_0 : i32, i32
  }
  func.func @transform_6(%arg0: i32) -> (i32, i32) {
    %c0_i32 = arith.constant 0 : i32
    %c0_i32_0 = arith.constant 0 : i32
    %c0_i32_1 = arith.constant 0 : i32
    return %c0_i32, %c0_i32_0 : i32, i32
  }
  func.func @transform_7(%arg0: i32) -> (i32, i32, i32, i32) {
    %c0_i32 = arith.constant 0 : i32
    %c0_i32_0 = arith.constant 0 : i32
    %c0_i32_1 = arith.constant 0 : i32
    %c0_i32_2 = arith.constant 0 : i32
    return %arg0, %c0_i32, %c0_i32_0, %c0_i32_1 : i32, i32, i32, i32
  }
}

</mosaic_0001>

<bundles_post_ra>
// kernel: tpu_custom_call.1
= control target key start
LH: loop header
LB: loop body
LE: loop exit
PB: predicated region body
PF: predicated region fallthrough
CT: control target
= control target key end

     0   :  { %12 = vsyncpa [#allocation4], 0  ;;  %s7973_s0 = inlined_call_operand.hbm [shape: f32[2,16,16,32], index: 0, kind: input, shape index: {}]   ;;  %s7974_s1 = inlined_call_operand.vmem [shape: bf16[32,16], index: 1, kind: input, shape index: {}]   ;;  %s7975_s2 = inlined_call_operand.vmem [shape: f32[1,16], index: 2, kind: input, shape index: {}]   ;;  %s7976_s3 = inlined_call_operand.vmem [shape: f32[1,16], index: 3, kind: input, shape index: {}]   ;;  %s7977_s4 = inlined_call_operand.vmem [shape: bf16[3,48,32], index: 4, kind: input, shape index: {}]   ;;  %s7978_s5 = inlined_call_operand.vmem [shape: f32[1,32], index: 5, kind: input, shape index: {}]   ;;  %s7979_s6 = inlined_call_operand.vmem [shape: f32[1,32], index: 6, kind: input, shape index: {}]   ;;  %s7980_s7 = inlined_call_operand.hbm [shape: f32[2,16,16,32], index: 7, kind: output, shape index: {}]  }
   0x1   :  { %14 = vsyncpa [#allocation4 + $0x1], 0 }
   0x2   :  { %15 = vsyncpa [#allocation5], 0 }
   0x3   :  { %17 = vsyncpa [#allocation5 + $0x1], 0  ;;  %s5510_s24 = smov 0   ;;  %s5512_s25 = smov 0  }
   0x4   :  { %s5514_s26 = smov 0   ;;  %s5516_s27 = smov 0  }
   0x5 LB: > { %s5531_s28 = sadd.s32 4294967295, %s5459_s27   ;;  %s4473_s29 = sadd.s32 4294967294, %s5459_s27   ;;  %s5459_s27 = sphi %s5516_s27, %s8044_s27   ;;  %s5455_s26 = sphi %s5514_s26, %s8043_s26   ;;  %s5451_s25 = sphi %s5512_s25, %s8042_s25   ;;  %s5447_s24 = sphi %s5510_s24, %s8041_s24  }
   0x6   : > { %s5535_s30 = sadd.s32 1, %s5459_s27   ;;  %s30_s8 = sadd.s32 1, %s5455_s26 }
   0x7   : > { %s27_s9 = ssub.s32 %s5459_s27, %s5535_s30  ;;  %p37_p0 = scmp.ne.s32.totalorder %s5455_s26, %s5451_s25 }
   0x8   : > { %p28_p1 = scmp.eq.s32.totalorder %s27_s9, 0  ;;  %p38_p2 = scmp.eq.s32.totalorder %s5459_s27, 0 }
   0x9   : > { %p43_p3 = scmp.ne.s32.totalorder %s5451_s25, %s5447_s24  ;;  %p44_p4 = scmp.eq.s32.totalorder %s5531_s28, 0 }
   0xa   : > { %s5547_s10 = scalar_select %p28_p1, %s5455_s26, %s30_s8  }
   0xb   : > { %p5549_p5 = por %p38_p2, %p37_p0  ;;  %p5553_p6 = por %p44_p4, %p43_p3 }
   0xc   : > { %p193_p7 = scmp.eq.s32.totalorder %s5531_s28, 1  ;;  %p199_p8 = scmp.eq.s32.totalorder %s4473_s29, 1 }
   0xd   : > { %p4881_p10 = scmp.lt.s32.totalorder %s5459_s27, 2  ;;  %s237_s15 = sand.u32 1, %s5455_s26  }
   0xe   : > { %p5560_p11 = por %p193_p7, %p37_p0  ;;  %p5564_p12 = por %p199_p8, %p43_p3 }
   0xf   : > { %s4578_s16 = sshll.u32 %s5459_s27, 12  ;;  %s4476_s17 = sshll.u32 %s237_s15, 8 }
  0x10   : > { %s7991_s13 = scalar_select %p5560_p11, 1, 0 }
  0x11   : > { %s7992_s14 = scalar_select %p5564_p12, 1, 0 }
  0x12   : > { %s5573_s20 = scalar_lea.hbm %s7973_s0, %s4578_s16  ;;  %s241_s21 = scalar_lea.vmem [#allocation3], %s4476_s17 }
  0x13   : > { %s248_s22 = sshll.u32 %s241_s21, 4  ;;  %p5577_p13 = pnand %p4881_p10, %p5549_p5  ;;  %s5581_s22 = int_to_ptr.vmem [resolvable:$true] %s248_s22 }
  0x14   : > { %s5583_s29 = scalar_lea.sflag [#allocation4], %s237_s15  ;;  %s5363_s8 = scalar_lea.hbm %s5573_s20, 4096 }
  0x15   : > { %p5364_p0 = scmp.ne.s32.totalorder %s5573_s20, %s5363_s8  ;;  %p5365_p1 = pneg %p5577_p13 }
  0x16   : > { %s5368_s16 = scalar_lea.hbm %s7973_s0, 8192  ;;  %p5369_p4 = scmp.lt.u32.totalorder %s5573_s20, %s7973_s0 }
  0x17   : > { %p5366_p2 = pnand %p5365_p1, %p5364_p0  ;;  %p5370_p5 = scmp.lt.u32.totalorder %s5368_s16, %s5363_s8 }
  0x18   : > { %p5372_p8 = scmp.lt.u32.totalorder %s5363_s8, %s5573_s20 }
  0x19   : > { %p5367_p3 = pneg %p5366_p2  ;;  %p5371_p7 = por %p5370_p5, %p5369_p4 }
  0x1b   : > { %p5373_p10 = por %p5372_p8, %p5371_p7 }
  0x1d   : > { %p5374_p9 = pnand %p5373_p10, %p5367_p3 }
  0x1f   : > { %5377 = shalt.err (!%p5374_p9)
}
  0x20   : > { %s5378_s15 = scalar_lea.vmem %s5581_s22, 4096  ;;  %s5461_s19 = smov [#allocation3]  }
  0x21   : > { %p5379_p0 = scmp.ne.s32.totalorder %s5581_s22, %s5378_s15  ;;  %s5383_s21 = sshll.u32 %s5461_s19, 4  ;;  %s5384_s21 = int_to_ptr.vmem [resolvable:$false] %s5383_s21 }
  0x22   : > { %s5385_s9 = scalar_lea.vmem %s5384_s21, 8192  ;;  %p5386_p11 = scmp.lt.s32.totalorder %s5581_s22, %s5384_s21 }
  0x23   : > { %p5381_p2 = pnand %p5379_p0, %p5365_p1  ;;  %p5387_p4 = scmp.lt.s32.totalorder %s5385_s9, %s5378_s15 }
  0x25   : > { %p5382_p12 = pneg %p5381_p2  ;;  %p5388_p5 = por %p5387_p4, %p5386_p11 }
  0x27   : > { %p5389_p7 = pnand %p5388_p5, %p5382_p12 }
  0x29   : > { %5392 = shalt.err (!%p5389_p7)
}
  0x2a   : > { %s5462_s8 = smov 128   ;;  %s5463_s11 = smov 8  }
  0x2b   : > { %4876 = dma.hbm_to_vmem [thread:$0]  (!%p5577_p13), %s5573_s20, 4096, %s5581_s22, %s5583_s29, %s5462_s8, %s5462_s8, %s5463_s11  }
  0x2c   : > { %p4479_p9 = scmp.ge.s32.totalorder %s5459_s27, 1  ;;  %p256_p1 = scmp.lt.s32.totalorder %s5459_s27, 3 }
  0x2e   : > { %p257_p3 = pnand %p4479_p9, %p256_p1 }
  0x30   : > { %260 = sbr.rel (%p257_p3) target bundleno = 1117 (0x45d), region = 48 }
  0x37   : > { %s5614_s16 = sand.u32 1, %s5451_s25  }
  0x38   : > { %s4480_s17 = sshll.u32 %s5614_s16, 8  ;;  %s263_s18 = scalar_lea.sflag [#allocation4], %s5614_s16 }
  0x39   : > { %s5620_s15 = scalar_lea.vmem [#allocation3], %s4480_s17 }
  0x3a   : > { %5438 = dma.done.wait (%p5553_p6), %s263_s18, 4096  }
  0x3b   : > { %5440 = vsyncadd (%p5553_p6), %s263_s18, 4294963200  ;;  %v5042_v0 = vld [vmem:[%s7974_s1] sm:$0xff]   ;;  %v5043_v1 = vld [vmem:[%s7974_s1 + $0x8] sm:$0xff]   ;;  %vm362_vm0 = vcmask 261120   ;;  %vm1034_vm1 = vcmask 130048   ;;  %v5464_v50 = vmov 0  }
  0x3c   : > { %4655 = vmatprep.subr.bf16.mxu0 %v5042_v0  ;;  %v298_v2 = vld [vmem:[%s5620_s15] sm:$0xff]  ;;  %v299_v3 = vld [vmem:[%s5620_s15 + $0x8] sm:$0xff]  ;;  %v300_v5 = vld [vmem:[%s5620_s15 + $0x10] sm:$0xff]  ;;  %1036 = vst.msk [vmem:[#allocation2 + $0x8] sm:$0xff] %vm1034_vm1, %v5464_v50  ;;  %s5465_s12 = smov 32   ;;  %vm1363_vm2 = vcmask 1046528  }
  0x3d   : > { %4656 = vmatpush3.bf16.msra.mxu0 %v5042_v0  ;;  %v330_v4 = vpack.c.bf16 %v299_v3, %v298_v2  ;;  %v301_v6 = vld [vmem:[%s5620_s15 + $0x18] sm:$0xff]  ;;  %v302_v7 = vld [vmem:[%s5620_s15 + $0x20] sm:$0xff]  ;;  %v303_v8 = vld [vmem:[%s5620_s15 + $0x28] sm:$0xff]  ;;  %1035 = vst.msk [vmem:[#allocation2] sm:$0xff] %vm1034_vm1, %v5464_v50  ;;  %s5466_s19 = smov 16   ;;  %vm2484_vm4 = vcmask 392192  }
  0x3e   : > { %4657 = vmatprep.subr.bf16.mxu0 %v5043_v1  ;;  %v331_v9 = vpack.c.bf16 %v301_v6, %v300_v5  ;;  %v332_v10 = vpack.c.bf16 %v303_v8, %v302_v7  ;;  %v304_v11 = vld [vmem:[%s5620_s15 + $0x30] sm:$0xff]  ;;  %v305_v12 = vld [vmem:[%s5620_s15 + $0x38] sm:$0xff]  ;;  %v306_v13 = vld [vmem:[%s5620_s15 + $0x40] sm:$0xff]  ;;  %1037 = vst.msk [vmem:[#allocation2 + $0x10] sm:$0xff] %vm1034_vm1, %v5464_v50  ;;  %vm1620_vm3 = vsmask.f32 256 }
  0x3f   : > { %4659 = vmatprep.mubr.msk.bf16.mxu0 %vm362_vm0, %v330_v4  ;;  %v307_v14 = vld [vmem:[%s5620_s15 + $0x48] sm:$0xff]  ;;  %v333_v15 = vpack.c.bf16 %v305_v12, %v304_v11  ;;  %v308_v17 = vld [vmem:[%s5620_s15 + $0x50] sm:$0xff]  ;;  %v309_v18 = vld [vmem:[%s5620_s15 + $0x58] sm:$0xff]  ;;  %1039 = vst.msk [vmem:[#allocation2 + $0x198] sm:$0xff] %vm1034_vm1, %v5464_v50  ;;  %s7555_s9 = scalar_lea.vmem [#allocation6], %s4480_s17  ;;  %s4579_s20 = sshll.u32 %s5531_s28, 12 }
  0x40   : > { %v334_v16 = vpack.c.bf16 %v307_v14, %v306_v13  ;;  %v310_v19 = vld [vmem:[%s5620_s15 + $0x60] sm:$0xff]  ;;  %v311_v20 = vld [vmem:[%s5620_s15 + $0x68] sm:$0xff]  ;;  %v335_v21 = vpack.c.bf16 %v309_v18, %v308_v17  ;;  %v312_v23 = vld [vmem:[%s5620_s15 + $0x70] sm:$0xff]  ;;  %1040 = vst.msk [vmem:[#allocation2 + $0x1a0] sm:$0xff] %vm1034_vm1, %v5464_v50  ;;  %s4400_s22 = sshll.u32 %s7555_s9, 4  ;;  %s4387_s29 = scalar_lea.sflag [#allocation5], %s5614_s16  ;;  %s7926_s22 = int_to_ptr.vmem [resolvable:$true] %s4400_s22 }
  0x41   : > { %4658 = vmatpush3.bf16.msra.mxu0 %v5043_v1  ;;  %v336_v22 = vpack.c.bf16 %v311_v20, %v310_v19  ;;  %v313_v24 = vld [vmem:[%s5620_s15 + $0x78] sm:$0xff]  ;;  %v314_v25 = vld [vmem:[%s5620_s15 + $0x80] sm:$0xff]  ;;  %v315_v26 = vld [vmem:[%s5620_s15 + $0x88] sm:$0xff]  ;;  %1041 = vst.msk [vmem:[#allocation2 + $0x1a8] sm:$0xff] %vm1034_vm1, %v5464_v50  ;;  %s5393_s28 = scalar_lea.vmem %s7926_s22, 4096  ;;  %p8038_p11 = scmp.ne.s32.totalorder %s7991_s13, 0 }
  0x42   : > { %v337_v27 = vpack.c.bf16 %v313_v24, %v312_v23  ;;  %v338_v28 = vpack.c.bf16 %v315_v26, %v314_v25  ;;  %v316_v29 = vld [vmem:[%s5620_s15 + $0x90] sm:$0xff]  ;;  %v317_v30 = vld [vmem:[%s5620_s15 + $0x98] sm:$0xff]  ;;  %v318_v31 = vld [vmem:[%s5620_s15 + $0xa0] sm:$0xff]  ;;  %1043 = vst.msk [vmem:[#allocation2 + $0x18] sm:$0xff] %vm1034_vm1, %v5464_v50  ;;  %p5394_p6 = scmp.ne.s32.totalorder %s7926_s22, %s5393_s28  ;;  %s5467_s21 = smov [#allocation6]  }
  0x43   : > { %v319_v32 = vld [vmem:[%s5620_s15 + $0xa8] sm:$0xff]  ;;  %v339_v33 = vpack.c.bf16 %v317_v30, %v316_v29  ;;  %v320_v35 = vld [vmem:[%s5620_s15 + $0xb0] sm:$0xff]  ;;  %v321_v36 = vld [vmem:[%s5620_s15 + $0xb8] sm:$0xff]  ;;  %1044 = vst.msk [vmem:[#allocation2 + $0x30] sm:$0xff] %vm1034_vm1, %v5464_v50  ;;  %s5397_s17 = sshll.u32 %s5467_s21, 4  ;;  %s5398_s17 = int_to_ptr.vmem [resolvable:$false] %s5397_s17 }
  0x44   : > { %4660 = vmatmul.mubr.msk.bf16.vlgmr.msra.gmra.mrb[0].mxu0 %vm362_vm0, %v331_v9  ;;  %v340_v34 = vpack.c.bf16 %v319_v32, %v318_v31  ;;  %v322_v37 = vld [vmem:[%s5620_s15 + $0xc0] sm:$0xff]  ;;  %v323_v38 = vld [vmem:[%s5620_s15 + $0xc8] sm:$0xff]  ;;  %v341_v39 = vpack.c.bf16 %v321_v36, %v320_v35  ;;  %v324_v41 = vld [vmem:[%s5620_s15 + $0xd0] sm:$0xff]  ;;  %1045 = vst.msk [vmem:[#allocation2 + $0x48] sm:$0xff] %vm1034_vm1, %v5464_v50  ;;  %p5395_p12 = pnand %p5394_p6, %p8038_p11  ;;  %s5399_s8 = scalar_lea.vmem %s5398_s17, 8192 }
  0x45   : > { %4663 = vmatprep.mubr.msk.bf16.mxu0 %vm362_vm0, %v332_v10  ;;  %v342_v40 = vpack.c.bf16 %v323_v38, %v322_v37  ;;  %v325_v42 = vld [vmem:[%s5620_s15 + $0xd8] sm:$0xff]  ;;  %v326_v43 = vld [vmem:[%s5620_s15 + $0xe0] sm:$0xff]  ;;  %v327_v44 = vld [vmem:[%s5620_s15 + $0xe8] sm:$0xff]  ;;  %1046 = vst.msk [vmem:[#allocation2 + $0x60] sm:$0xff] %vm1034_vm1, %v5464_v50  ;;  %p5400_p8 = scmp.lt.s32.totalorder %s7926_s22, %s5398_s17  ;;  %p5401_p10 = scmp.lt.s32.totalorder %s5399_s8, %s5393_s28 }
  0x46   : > { %v343_v45 = vpack.c.bf16 %v325_v42, %v324_v41  ;;  %v344_v46 = vpack.c.bf16 %v327_v44, %v326_v43  ;;  %v328_v47 = vld [vmem:[%s5620_s15 + $0xf0] sm:$0xff]  ;;  %v329_v48 = vld [vmem:[%s5620_s15 + $0xf8] sm:$0xff]  ;;  %1047 = vst.msk [vmem:[#allocation2 + $0x78] sm:$0xff] %vm1034_vm1, %v5464_v50  ;;  %1048 = vst.msk [vmem:[#allocation2 + $0x90] sm:$0xff] %vm1034_vm1, %v5464_v50  ;;  %p5396_p13 = pneg %p5395_p12 }
  0x47   : > { %v345_v49 = vpack.c.bf16 %v329_v48, %v328_v47  ;;  %1049 = vst.msk [vmem:[#allocation2 + $0xa8] sm:$0xff] %vm1034_vm1, %v5464_v50  ;;  %1050 = vst.msk [vmem:[#allocation2 + $0xc0] sm:$0xff] %vm1034_vm1, %v5464_v50  ;;  %v1108_v51 = vld [vmem:[#allocation2 + $0x8] sm:$0xff]  ;;  %v1109_v56 = vld [vmem:[#allocation2 + $0x10] sm:$0xff]  ;;  %p5402_p0 = por %p5401_p10, %p5400_p8 }
  0x48   : > { %1051 = vst.msk [vmem:[#allocation2 + $0xd8] sm:$0xff] %vm1034_vm1, %v5464_v50  ;;  %1052 = vst.msk [vmem:[#allocation2 + $0xf0] sm:$0xff] %vm1034_vm1, %v5464_v50  ;;  %v1156_v52 = vshll.u32 %v1108_v51, 16  ;;  %v1364_v53 = vrot.slane %v1108_v51, 1  ;;  %v1159_v55 = vshrl.u32 %v1108_v51, 16  ;;  %v1365_v58 = vrot.slane %v1109_v56, 1 }
  0x49   : > { %1053 = vst.msk [vmem:[#allocation2 + $0x108] sm:$0xff] %vm1034_vm1, %v5464_v50  ;;  %1054 = vst.msk [vmem:[#allocation2 + $0x120] sm:$0xff] %vm1034_vm1, %v5464_v50  ;;  %v5728_v60 = vld [vmem:[%s7975_s2] ss:$0 sm:$0xff]  ;;  %p5403_p2 = pnand %p5402_p0, %p5396_p13 }
  0x4a   : > { %1055 = vst.msk [vmem:[#allocation2 + $0x138] sm:$0xff] %vm1034_vm1, %v5464_v50  ;;  %1056 = vst.msk [vmem:[#allocation2 + $0x150] sm:$0xff] %vm1034_vm1, %v5464_v50  ;;  %v5718_v54 = vrot.slane %v1156_v52, 1  ;;  %1412 = vrot.lane.b32.xlu1 %v1364_v53, %s5465_s12  ;;  %v1366_v59 = vsel %vm1363_vm2, %v1364_v53, %v1365_v58  ;;  %v5733_v62 = vld [vmem:[%s7976_s3] ss:$0 sm:$0xff] }
  0x4b   : > { %1057 = vst.msk [vmem:[#allocation2 + $0x168] sm:$0xff] %vm1034_vm1, %v5464_v50  ;;  %1058 = vst.msk [vmem:[#allocation2 + $0x180] sm:$0xff] %vm1034_vm1, %v5464_v50 }
  0x4c   : > { %4664 = vmatmul.mubr.msk.bf16.gmra.mrb[4].mxu0 %vm362_vm0, %v333_v15  ;;  %1059 = vst.msk [vmem:[#allocation2 + $0x28] sm:$0xff] %vm1034_vm1, %v5464_v50  ;;  %1060 = vst.msk [vmem:[#allocation2 + $0x40] sm:$0xff] %vm1034_vm1, %v5464_v50  ;;  %v1161_v57 = vor.u32 %v1159_v55, %v5718_v54 }
  0x4d   : > { %4667 = vmatprep.mubr.msk.bf16.mxu0 %vm362_vm0, %v334_v16  ;;  %1061 = vst.msk [vmem:[#allocation2 + $0x58] sm:$0xff] %vm1034_vm1, %v5464_v50  ;;  %1062 = vst.msk [vmem:[#allocation2 + $0x70] sm:$0xff] %vm1034_vm1, %v5464_v50 }
  0x4e   : > { %1063 = vst.msk [vmem:[#allocation2 + $0x88] sm:$0xff] %vm1034_vm1, %v5464_v50  ;;  %1064 = vst.msk [vmem:[#allocation2 + $0xa0] sm:$0xff] %vm1034_vm1, %v5464_v50  ;;  %1269 = vrot.lane.b32.xlu0 %v1161_v57, %s5466_s19  ;;  %1414 = vrot.lane.b32.xlu1 %v1366_v59, %s5465_s12 }
  0x4f   : > { %1065 = vst.msk [vmem:[#allocation2 + $0xb8] sm:$0xff] %vm1034_vm1, %v5464_v50  ;;  %1066 = vst.msk [vmem:[#allocation2 + $0xd0] sm:$0xff] %vm1034_vm1, %v5464_v50 }
  0x50   : > { %1067 = vst.msk [vmem:[#allocation2 + $0xe8] sm:$0xff] %vm1034_vm1, %v5464_v50  ;;  %1068 = vst.msk [vmem:[#allocation2 + $0x100] sm:$0xff] %vm1034_vm1, %v5464_v50 }
  0x51   : > { %1069 = vst.msk [vmem:[#allocation2 + $0x118] sm:$0xff] %vm1034_vm1, %v5464_v50  ;;  %1070 = vst.msk [vmem:[#allocation2 + $0x130] sm:$0xff] %vm1034_vm1, %v5464_v50 }
  0x52   : > { %1071 = vst.msk [vmem:[#allocation2 + $0x148] sm:$0xff] %vm1034_vm1, %v5464_v50  ;;  %1072 = vst.msk [vmem:[#allocation2 + $0x160] sm:$0xff] %vm1034_vm1, %v5464_v50 }
  0x53   : > { %1073 = vst.msk [vmem:[#allocation2 + $0x178] sm:$0xff] %vm1034_vm1, %v5464_v50  ;;  %1074 = vst.msk [vmem:[#allocation2 + $0x190] sm:$0xff] %vm1034_vm1, %v5464_v50 }
  0x54   : > { %4668 = vmatmul.mubr.msk.bf16.gmra.mrb[8].mxu0 %vm362_vm0, %v335_v21 }
  0x55   : > { %4671 = vmatprep.mubr.msk.bf16.mxu0 %vm362_vm0, %v336_v22 }
  0x5c   : > { %4672 = vmatmul.mubr.msk.bf16.gmra.mrb[12].mxu0 %vm362_vm0, %v337_v27 }
  0x5d   : > { %4675 = vmatprep.mubr.msk.bf16.mxu0 %vm362_vm0, %v338_v28 }
  0x64   : > { %4676 = vmatmul.mubr.msk.bf16.gmra.mrb[16].mxu0 %vm362_vm0, %v339_v33 }
  0x65   : > { %4679 = vmatprep.mubr.msk.bf16.mxu0 %vm362_vm0, %v340_v34 }
  0x6c   : > { %4680 = vmatmul.mubr.msk.bf16.gmra.mrb[20].mxu0 %vm362_vm0, %v341_v39 }
  0x6d   : > { %4683 = vmatprep.mubr.msk.bf16.mxu0 %vm362_vm0, %v342_v40 }
  0x74   : > { %4684 = vmatmul.mubr.msk.bf16.gmra.mrb[24].mxu0 %vm362_vm0, %v343_v45 }
  0x75   : > { %4687 = vmatprep.mubr.msk.bf16.mxu0 %vm362_vm0, %v344_v46 }
  0x7c   : > { %4688 = vmatmul.mubr.msk.bf16.gmra.mrb[28].mxu0 %vm362_vm0, %v345_v49 }
 0x117   : > { %v4661_v61 = vpop.f32.mrb[0].mxu0 }
 0x118   : > { %v581_v63 = vmul.f32 %v4661_v61, %v5728_v60  ;;  %v445_v0 = vpop.f32.mrb[1].mxu0 }
 0x119   : > { %v579_v1 = vmul.f32 %v5728_v60, %v445_v0  ;;  %v4662_v2 = vpop.f32.mrb[2].mxu0 }
 0x11a   : > { %v5738_v3 = vadd.f32 %v5733_v62, %v581_v63  ;;  %v582_v4 = vmul.f32 %v4662_v2, %v5728_v60  ;;  %v448_v5 = vpop.f32.mrb[3].mxu0 }
 0x11b   : > { %v5742_v6 = vadd.f32 %v5733_v62, %v579_v1  ;;  %v580_v7 = vmul.f32 %v5728_v60, %v448_v5 }
 0x11c   : > { %v652_v8 = vmin.f32 %v5738_v3, 20.0  ;;  %v5747_v9 = vadd.f32 %v5733_v62, %v582_v4 }
 0x11d   : > { %v650_v10 = vmin.f32 %v5742_v6, 20.0  ;;  %v5751_v11 = vadd.f32 %v5733_v62, %v580_v7 }
 0x11e   : > { %v686_v12 = vmul.f32 1.442695, %v652_v8  ;;  %v653_v13 = vmin.f32 %v5747_v9, 20.0 }
 0x11f   : > { %v682_v14 = vmul.f32 1.442695, %v650_v10  ;;  %v651_v15 = vmin.f32 %v5751_v11, 20.0  ;;  %v4665_v16 = vpop.f32.mrb[4].mxu0 }
 0x120   : > { %5053 = vpow2.f32 %v686_v12  ;;  %v688_v17 = vmul.f32 1.442695, %v653_v13  ;;  %v585_v18 = vmul.f32 %v4665_v16, %v5728_v60  ;;  %v461_v19 = vpop.f32.mrb[5].mxu0 }
 0x121   : > { %5055 = vpow2.f32 %v682_v14  ;;  %v684_v20 = vmul.f32 1.442695, %v651_v15  ;;  %v583_v21 = vmul.f32 %v5728_v60, %v461_v19  ;;  %v4666_v22 = vpop.f32.mrb[6].mxu0 }
 0x122   : > { %5057 = vpow2.f32 %v688_v17  ;;  %v5758_v23 = vadd.f32 %v5733_v62, %v585_v18  ;;  %v586_v24 = vmul.f32 %v4666_v22, %v5728_v60  ;;  %v464_v25 = vpop.f32.mrb[7].mxu0 }
 0x123   : > { %5059 = vpow2.f32 %v684_v20  ;;  %v5762_v26 = vadd.f32 %v5733_v62, %v583_v21  ;;  %v584_v27 = vmul.f32 %v5728_v60, %v464_v25 }
 0x124   : > { %v656_v28 = vmin.f32 %v5758_v23, 20.0  ;;  %v5767_v29 = vadd.f32 %v5733_v62, %v586_v24 }
 0x125   : > { %v654_v30 = vmin.f32 %v5762_v26, 20.0  ;;  %v5771_v31 = vadd.f32 %v5733_v62, %v584_v27 }
 0x126   : > { %v694_v32 = vmul.f32 1.442695, %v656_v28  ;;  %v657_v33 = vmin.f32 %v5767_v29, 20.0 }
 0x127   : > { %v690_v34 = vmul.f32 1.442695, %v654_v30  ;;  %v655_v35 = vmin.f32 %v5771_v31, 20.0  ;;  %v4669_v36 = vpop.f32.mrb[8].mxu0 }
 0x128   : > { %5061 = vpow2.f32 %v694_v32  ;;  %v696_v37 = vmul.f32 1.442695, %v657_v33  ;;  %v589_v38 = vmul.f32 %v4669_v36, %v5728_v60  ;;  %v477_v39 = vpop.f32.mrb[9].mxu0 }
 0x129   : > { %5063 = vpow2.f32 %v690_v34  ;;  %v692_v40 = vmul.f32 1.442695, %v655_v35  ;;  %v587_v41 = vmul.f32 %v5728_v60, %v477_v39  ;;  %v4670_v42 = vpop.f32.mrb[10].mxu0 }
 0x12a   : > { %v5054_v43 = vpop.eup %5053  ;;  %5065 = vpow2.f32 %v696_v37  ;;  %v5778_v44 = vadd.f32 %v5733_v62, %v589_v38  ;;  %v590_v45 = vmul.f32 %v4670_v42, %v5728_v60  ;;  %v480_v46 = vpop.f32.mrb[11].mxu0 }
 0x12b   : > { %v5056_v47 = vpop.eup %5055  ;;  %v748_v48 = vadd.f32 2.0, %v5054_v43  ;;  %5067 = vpow2.f32 %v692_v40  ;;  %v5782_v49 = vadd.f32 %v5733_v62, %v587_v41  ;;  %v588_v50 = vmul.f32 %v5728_v60, %v480_v46 }
 0x12c   : > { %v5058_v51 = vpop.eup %5057  ;;  %v746_v52 = vadd.f32 2.0, %v5056_v47  ;;  %v660_v53 = vmin.f32 %v5778_v44, 20.0  ;;  %v5787_v55 = vadd.f32 %v5733_v62, %v590_v45 }
 0x12d   : > { %v5060_v56 = vpop.eup %5059  ;;  %v780_v57 = vmul.f32 %v5054_v43, %v748_v48  ;;  %v749_v58 = vadd.f32 2.0, %v5058_v51  ;;  %v658_v59 = vmin.f32 %v5782_v49, 20.0  ;;  %v5791_v61 = vadd.f32 %v5733_v62, %v588_v50 }
 0x12e   : > { %v778_v63 = vmul.f32 %v5056_v47, %v746_v52  ;;  %v747_v0 = vadd.f32 2.0, %v5060_v56  ;;  %v702_v1 = vmul.f32 1.442695, %v660_v53  ;;  %v661_v2 = vmin.f32 %v5787_v55, 20.0 }
 0x12f   : > { %v812_v4 = vadd.f32 2.0, %v780_v57  ;;  %v781_v5 = vmul.f32 %v5058_v51, %v749_v58  ;;  %v4673_v7 = vpop.f32.mrb[12].mxu0  ;;  %v698_v14 = vmul.f32 1.442695, %v658_v59  ;;  %v659_v19 = vmin.f32 %v5791_v61, 20.0 }
 0x130   : > { %v5794_v8 = vadd.f32 2.0, %v778_v63  ;;  %v779_v10 = vmul.f32 %v5060_v56, %v747_v0  ;;  %5069 = vpow2.f32 %v702_v1  ;;  %v493_v12 = vpop.f32.mrb[13].mxu0  ;;  %v704_v18 = vmul.f32 1.442695, %v661_v2 }
 0x131   : > { %5071 = vrcp.f32 %v812_v4  ;;  %v5796_v13 = vadd.f32 2.0, %v781_v5  ;;  %v4674_v15 = vpop.f32.mrb[14].mxu0  ;;  %v593_v24 = vmul.f32 %v4673_v7, %v5728_v60  ;;  %v591_v25 = vmul.f32 %v5728_v60, %v493_v12 }
 0x132   : > { %v5062_v16 = vpop.eup %5061  ;;  %5073 = vrcp.f32 %v5794_v8  ;;  %v5799_v17 = vadd.f32 2.0, %v779_v10  ;;  %v496_v20 = vpop.f32.mrb[15].mxu0  ;;  %v700_v30 = vmul.f32 1.442695, %v659_v19  ;;  %v594_v41 = vmul.f32 %v4674_v15, %v5728_v60 }
 0x133   : > { %v5064_v21 = vpop.eup %5063  ;;  %5075 = vrcp.f32 %v5796_v13  ;;  %v752_v22 = vadd.f32 2.0, %v5062_v16  ;;  %v5807_v35 = vadd.f32 %v5733_v62, %v593_v24  ;;  %v5812_v38 = vadd.f32 %v5733_v62, %v591_v25 }
 0x134   : > { %v5066_v27 = vpop.eup %5065  ;;  %5077 = vrcp.f32 %v5799_v17  ;;  %v750_v28 = vadd.f32 2.0, %v5064_v21  ;;  %v972_v48 = vmul.f32 %v780_v57, %v5738_v3  ;;  %v970_v56 = vmul.f32 %v778_v63, %v5742_v6 }
 0x135   : > { %v5068_v32 = vpop.eup %5067  ;;  %v784_v33 = vmul.f32 %v5062_v16, %v752_v22  ;;  %v753_v34 = vadd.f32 2.0, %v5066_v27  ;;  %5079 = vpow2.f32 %v698_v14  ;;  %v664_v46 = vmin.f32 %v5807_v35, 20.0 }
 0x136   : > { %v5809_v36 = vmul.f32 %v5064_v21, %v750_v28  ;;  %v751_v37 = vadd.f32 2.0, %v5068_v32  ;;  %5081 = vpow2.f32 %v704_v18  ;;  %v662_v51 = vmin.f32 %v5812_v38, 20.0 }
 0x137   : > { %v5814_v39 = vadd.f32 2.0, %v784_v33  ;;  %v5816_v40 = vmul.f32 %v5066_v27, %v753_v34  ;;  %5083 = vpow2.f32 %v700_v30  ;;  %v5819_v42 = vpop.f32.mrb[16].mxu0  ;;  %v710_v59 = vmul.f32 1.442695, %v664_v46 }
 0x138   : > { %v5822_v43 = vadd.f32 2.0, %v5809_v36  ;;  %v5824_v45 = vmul.f32 %v5068_v32, %v751_v37  ;;  %v5827_v47 = vpop.f32.mrb[17].mxu0  ;;  %v706_v1 = vmul.f32 1.442695, %v662_v51  ;;  %v5846_v2 = vadd.f32 %v5733_v62, %v594_v41 }
 0x139   : > { %5085 = vrcp.f32 %v5814_v39  ;;  %v5832_v50 = vadd.f32 2.0, %v5816_v40  ;;  %v5835_v52 = vpop.f32.mrb[18].mxu0  ;;  %v973_v6 = vmul.f32 %v781_v5, %v5747_v9  ;;  %v971_v63 = vmul.f32 %v779_v10, %v5751_v11 }
 0x13a   : > { %v5070_v53 = vpop.eup %5069  ;;  %5087 = vrcp.f32 %v5822_v43  ;;  %v5840_v58 = vadd.f32 2.0, %v5824_v45  ;;  %v5842_v0 = vpop.f32.mrb[19].mxu0  ;;  %v665_v18 = vmin.f32 %v5846_v2, 20.0  ;;  %v5859_v10 = vmul.f32 %v784_v33, %v5758_v23 }
 0x13b   : > { %v5072_v3 = vpop.eup %5071  ;;  %5089 = vrcp.f32 %v5832_v50  ;;  %v756_v57 = vadd.f32 2.0, %v5070_v53  ;;  %v974_v41 = vmul.f32 %v5809_v36, %v5762_v26 }
 0x13c   : > { %v5074_v7 = vpop.eup %5073  ;;  %v876_v12 = vmul.f32 %v5072_v3, %v812_v4  ;;  %5091 = vrcp.f32 %v5840_v58  ;;  %v592_v4 = vmul.f32 %v5728_v60, %v496_v20 }
 0x13d   : > { %v5076_v14 = vpop.eup %5075  ;;  %v874_v15 = vmul.f32 %v5074_v7, %v5794_v8  ;;  %v5852_v16 = vmul.f32 %v5070_v53, %v756_v57  ;;  %5093 = vpow2.f32 %v710_v59 }
 0x13e   : > { %v5078_v19 = vpop.eup %5077  ;;  %v908_v21 = vsub.f32 2.0, %v876_v12  ;;  %v877_v22 = vmul.f32 %v5076_v14, %v5796_v13  ;;  %5095 = vpow2.f32 %v706_v1  ;;  %v712_v13 = vmul.f32 1.442695, %v665_v18 }
 0x13f   : > { %v5080_v9 = vpop.eup %5079  ;;  %v906_v5 = vsub.f32 2.0, %v874_v15  ;;  %v875_v11 = vmul.f32 %v5078_v19, %v5799_v17  ;;  %v5862_v8 = vadd.f32 2.0, %v5852_v16  ;;  %v5864_v24 = vpop.f32.mrb[20].mxu0  ;;  %v5876_v51 = vadd.f32 %v5733_v62, %v592_v4 }
 0x140   : > { %v5082_v25 = vpop.eup %5081  ;;  %v940_v27 = vmul.f32 %v5072_v3, %v908_v21  ;;  %v909_v28 = vsub.f32 2.0, %v877_v22  ;;  %v754_v30 = vadd.f32 2.0, %v5080_v9  ;;  %v5866_v32 = vpop.f32.mrb[21].mxu0 }
 0x141   : > { %v5084_v20 = vpop.eup %5083  ;;  %v938_v34 = vmul.f32 %v5074_v7, %v906_v5  ;;  %v907_v37 = vsub.f32 2.0, %v875_v11  ;;  %5097 = vrcp.f32 %v5862_v8  ;;  %v757_v17 = vadd.f32 2.0, %v5082_v25  ;;  %v5869_v23 = vpop.f32.mrb[22].mxu0 }
 0x142   : > { %v941_v33 = vmul.f32 %v5076_v14, %v909_v28  ;;  %v5873_v46 = vmul.f32 %v5080_v9, %v754_v30  ;;  %v5878_v53 = vpop.f32.mrb[23].mxu0  ;;  %v1004_v3 = vmul.f32 %v972_v48, %v940_v27  ;;  %5099 = vpow2.f32 %v712_v13 }
 0x143   : > { %v5086_v59 = vpop.eup %5085  ;;  %v939_v57 = vmul.f32 %v5078_v19, %v907_v37  ;;  %v5880_v1 = vmul.f32 %v5082_v25, %v757_v17  ;;  %v755_v26 = vadd.f32 2.0, %v5084_v20  ;;  %v1002_v18 = vmul.f32 %v970_v56, %v938_v34 }
 0x144   : > { %v5088_v7 = vpop.eup %5087  ;;  %v1005_v12 = vmul.f32 %v973_v6, %v941_v33  ;;  %v880_v14 = vmul.f32 %v5086_v59, %v5814_v39  ;;  %v5884_v15 = vadd.f32 2.0, %v5873_v46 }
 0x145   : > { %v5090_v36 = vpop.eup %5089  ;;  %v1003_v21 = vmul.f32 %v971_v63, %v939_v57  ;;  %v878_v22 = vmul.f32 %v5088_v7, %v5822_v43  ;;  %v5888_v4 = vadd.f32 2.0, %v5880_v1  ;;  %v5897_v28 = vmul.f32 %v5084_v20, %v755_v26 }
 0x146   : > { %v5092_v48 = vpop.eup %5091  ;;  %v1076_v19 = vpack.c.bf16 %v1005_v12, %v1004_v3  ;;  %v912_v9 = vsub.f32 2.0, %v880_v14  ;;  %v881_v5 = vmul.f32 %v5090_v36, %v5832_v50  ;;  %5101 = vrcp.f32 %v5884_v15 }
 0x147   : > { %v5094_v39 = vpop.eup %5093  ;;  %v1075_v6 = vpack.c.bf16 %v1003_v21, %v1002_v18  ;;  %v910_v11 = vsub.f32 2.0, %v878_v22  ;;  %v879_v25 = vmul.f32 %v5092_v48, %v5840_v58  ;;  %5103 = vrcp.f32 %v5888_v4  ;;  %v5894_v56 = vpop.f32.mrb[24].mxu0 }
 0x148   : > { %v5096_v43 = vpop.eup %5095  ;;  %1092 = vst.msk [vmem:[#allocation2 + $0x38] sm:$0xff] %vm1034_vm1, %v1076_v19  ;;  %v944_v63 = vmul.f32 %v5086_v59, %v912_v9  ;;  %v913_v27 = vsub.f32 2.0, %v881_v5  ;;  %v760_v30 = vadd.f32 2.0, %v5094_v39  ;;  %v5899_v50 = vpop.f32.mrb[25].mxu0  ;;  %v663_v58 = vmin.f32 %v5876_v51, 20.0  ;;  %v1115_v9 = vld [vmem:[#allocation2 + $0x40] sm:$0xff] }
 0x149   : > { %1091 = vst.msk [vmem:[#allocation2 + $0x20] sm:$0xff] %vm1034_vm1, %v1075_v6  ;;  %v942_v13 = vmul.f32 %v5088_v7, %v910_v11  ;;  %v911_v34 = vsub.f32 2.0, %v879_v25  ;;  %v758_v37 = vadd.f32 2.0, %v5096_v43  ;;  %v5903_v17 = vpop.f32.mrb[26].mxu0  ;;  %v977_v3 = vmul.f32 %v5816_v40, %v5767_v29 }
 0x14a   : > { %v945_v33 = vmul.f32 %v5090_v36, %v913_v27  ;;  %v975_v20 = vmul.f32 %v5824_v45, %v5771_v31  ;;  %v819_v59 = vadd.f32 2.0, %v5897_v28  ;;  %v5910_v57 = vpop.f32.mrb[27].mxu0  ;;  %v1008_v7 = vmul.f32 %v5859_v10, %v944_v63 }
 0x14b   : > { %v5098_v12 = vpop.eup %5097  ;;  %v943_v14 = vmul.f32 %v5092_v48, %v911_v34  ;;  %v5913_v26 = vmul.f32 %v5094_v39, %v760_v30  ;;  %v597_v18 = vmul.f32 %v5819_v42, %v5728_v60  ;;  %v1006_v36 = vmul.f32 %v974_v41, %v942_v13 }
 0x14c   : > { %v1009_v21 = vmul.f32 %v977_v3, %v945_v33  ;;  %v884_v29 = vmul.f32 %v5098_v12, %v5862_v8  ;;  %5105 = vrcp.f32 %v819_v59  ;;  %v5100_v40 = vpop.eup %5099  ;;  %v5919_v22 = vmul.f32 %v5096_v43, %v758_v37 }
 0x14d   : > { %v1007_v31 = vmul.f32 %v975_v20, %v943_v14  ;;  %v824_v45 = vadd.f32 2.0, %v5913_v26  ;;  %v708_v19 = vmul.f32 1.442695, %v663_v58  ;;  %v761_v5 = vadd.f32 2.0, %v5100_v40 }
 0x14e   : > { %v1078_v10 = vpack.c.bf16 %v1009_v21, %v1008_v7  ;;  %v916_v48 = vsub.f32 2.0, %v884_v29  ;;  %v1371_v11 = vrot.slane %v1115_v9, 1  ;;  %v5928_v25 = vadd.f32 %v5733_v62, %v597_v18 }
 0x14f   : > { %v1077_v39 = vpack.c.bf16 %v1007_v31, %v1006_v36  ;;  %5107 = vrcp.f32 %v824_v45  ;;  %v5921_v6 = vld [vmem:[#allocation2 + $0x38] sm:$0xff]  ;;  %v5924_v8 = vmul.f32 %v5100_v40, %v761_v5  ;;  %v5933_v27 = vadd.f32 2.0, %v5919_v22 }
 0x150   : > { %v5102_v42 = vpop.eup %5101  ;;  %1094 = vst.msk [vmem:[#allocation2 + $0x68] sm:$0xff] %vm1034_vm1, %v1078_v10  ;;  %v3178_v41 = vrot.slane %v5921_v6, 1  ;;  %5109 = vpow2.f32 %v708_v19  ;;  %v595_v30 = vmul.f32 %v5728_v60, %v5827_v47  ;;  %v948_v13 = vmul.f32 %v5098_v12, %v916_v48 }
 0x151   : > { %v5104_v43 = vpop.eup %5103  ;;  %1093 = vst.msk [vmem:[#allocation2 + $0x50] sm:$0xff] %vm1034_vm1, %v1077_v39  ;;  %v882_v63 = vmul.f32 %v5102_v42, %v5884_v15  ;;  %v980_v34 = vmul.f32 %v5852_v16, %v5778_v44  ;;  %v825_v58 = vadd.f32 2.0, %v5924_v8  ;;  %v981_v3 = vmul.f32 %v5880_v1, %v5787_v55  ;;  %v5950_v16 = vld [vmem:[#allocation2 + $0x20] sm:$0xff] }
 0x152   : > { %v885_v37 = vmul.f32 %v5104_v43, %v5888_v4  ;;  %3226 = vrot.lane.b32.xlu1 %v3178_v41, %s5465_s12  ;;  %1420 = vrot.lane.b32.xlu0 %v3178_v41, %s5465_s12  ;;  %v668_v47 = vmin.f32 %v5928_v25, 20.0  ;;  %v978_v20 = vmul.f32 %v5873_v46, %v5782_v49  ;;  %v1372_v44 = vsel %vm1363_vm2, %v3178_v41, %v1371_v11 }
 0x153   : > { %v914_v15 = vsub.f32 2.0, %v882_v63  ;;  %5111 = vrcp.f32 %v825_v58  ;;  %v5953_v4 = vadd.f32 %v5733_v62, %v595_v30  ;;  %v1012_v7 = vmul.f32 %v980_v34, %v948_v13 }
 0x154   : > { %v917_v33 = vsub.f32 2.0, %v885_v37  ;;  %5113 = vrcp.f32 %v5933_v27  ;;  %v718_v55 = vmul.f32 1.442695, %v668_v47  ;;  %v598_v49 = vmul.f32 %v5835_v52, %v5728_v60 }
 0x155   : > { %v946_v46 = vmul.f32 %v5102_v42, %v914_v15  ;;  %v666_v18 = vmin.f32 %v5953_v4, 20.0  ;;  %v596_v36 = vmul.f32 %v5728_v60, %v5842_v0  ;;  %v979_v29 = vmul.f32 %v5897_v28, %v5791_v61  ;;  %v1789_v0 = vld [vmem:[#allocation2 + $0x28] sm:$0xff] }
 0x156   : > { %v5106_v12 = vpop.eup %5105  ;;  %v949_v14 = vmul.f32 %v5104_v43, %v917_v33  ;;  %2095 = vrot.lane.b32.xlu0 %v3178_v41, %s5465_s12  ;;  %1422 = vrot.lane.b32.xlu1 %v1372_v44, %s5465_s12  ;;  %v1367_v40 = vrot.slane %v5950_v16, 1  ;;  %5115 = vpow2.f32 %v718_v55  ;;  %v5966_v10 = vadd.f32 %v5733_v62, %v598_v49 }
 0x157   : > { %v883_v1 = vmul.f32 %v5106_v12, %v819_v59  ;;  %v714_v9 = vmul.f32 1.442695, %v666_v18  ;;  %v5969_v52 = vadd.f32 %v5733_v62, %v596_v36  ;;  %v1836_v61 = vshll.u32 %v5950_v16, 16 }
 0x158   : > { %v1013_v21 = vmul.f32 %v981_v3, %v949_v14  ;;  %v1010_v5 = vmul.f32 %v978_v20, %v946_v46  ;;  %v669_v42 = vmin.f32 %v5966_v10, 20.0  ;;  %v2971_v43 = vshll.u32 %v5921_v6, 16 }
 0x159   : > { %v5108_v31 = vpop.eup %5107  ;;  %v915_v19 = vsub.f32 2.0, %v883_v1  ;;  %5117 = vpow2.f32 %v714_v9  ;;  %v2044_v30 = vrot.slane %v1789_v0, 1  ;;  %v984_v37 = vmul.f32 %v5913_v26, %v5807_v35 }
 0x15a   : > { %v1080_v59 = vpack.c.bf16 %v1013_v21, %v1012_v7  ;;  %v888_v48 = vmul.f32 %v5108_v31, %v824_v45  ;;  %3228 = vrot.lane.b32.xlu1 %v1372_v44, %s5465_s12  ;;  %1416 = vrot.lane.b32.xlu0 %v1367_v40, %s5465_s12  ;;  %v5110_v28 = vpop.eup %5109  ;;  %v667_v45 = vmin.f32 %v5969_v52, 20.0  ;;  %v720_v13 = vmul.f32 1.442695, %v669_v42  ;;  %v5044_v21 = vld [vmem:[%s7977_s4] sm:$0xff]  }
 0x15b   : > { %v947_v39 = vmul.f32 %v5106_v12, %v915_v19  ;;  %v759_v11 = vadd.f32 2.0, %v5110_v28  ;;  %v5984_v33 = vrot.slane %v1836_v61, 1  ;;  %v5991_v55 = vrot.slane %v2971_v43, 1  ;;  %4729 = vmatprep.subr.bf16.mxu1 %v5044_v21 }
 0x15c   : > { %1096 = vst.msk [vmem:[#allocation2 + $0x98] sm:$0xff] %vm1034_vm1, %v1080_v59  ;;  %v920_v41 = vsub.f32 2.0, %v888_v48  ;;  %v716_v3 = vmul.f32 1.442695, %v667_v45  ;;  %5119 = vpow2.f32 %v720_v13  ;;  %v985_v26 = vmul.f32 %v5924_v8, %v5846_v2  ;;  %4730 = vmatpush3.bf16.msra.mxu1 %v5044_v21 }
 0x15d   : > { %v1011_v63 = vmul.f32 %v979_v29, %v947_v39  ;;  %v5112_v34 = vpop.eup %5111  ;;  %v5980_v15 = vmul.f32 %v5110_v28, %v759_v11  ;;  %v1846_v46 = vshrl.u32 %v5921_v6, 16  ;;  %v601_v1 = vmul.f32 %v5864_v24, %v5728_v60  ;;  %v6010_v29 = vpop.f32.mrb[28].mxu0  ;;  %v5045_v11 = vld [vmem:[%s7977_s4 + $0x8] sm:$0xff]  }
 0x15e   : > { %2097 = vrot.lane.b32.xlu1 %v1372_v44, %s5465_s12  ;;  %2091 = vrot.lane.b32.xlu0 %v1367_v40, %s5465_s12  ;;  %v5986_v47 = vpop.eup %5113  ;;  %v952_v12 = vmul.f32 %v5108_v31, %v920_v41  ;;  %v889_v7 = vmul.f32 %v5112_v34, %v825_v58  ;;  %5121 = vpow2.f32 %v716_v3  ;;  %v2045_v44 = vsel %vm1363_vm2, %v1367_v40, %v2044_v30  ;;  %v6044_v41 = vpop.f32.mrb[29].mxu0 }
 0x15f   : > { %v1079_v20 = vpack.c.bf16 %v1011_v63, %v1010_v5  ;;  %v5989_v14 = vadd.f32 2.0, %v5980_v15  ;;  %v4922_v58 = vpack.i.bf16 %v5984_v33, %v5718_v54  ;;  %v599_v8 = vmul.f32 %v5728_v60, %v5866_v32  ;;  %v6051_v30 = vpop.f32.mrb[30].mxu0  ;;  %4731 = vmatprep.subr.bf16.mxu1 %v5045_v11 }
 0x160   : > { %v921_v35 = vsub.f32 2.0, %v889_v7  ;;  %v5116_v49 = vpop.eup %5115  ;;  %v1016_v18 = vmul.f32 %v984_v37, %v952_v12  ;;  %v4927_v54 = vpack.i.bf16 %v5991_v55, %v5984_v33  ;;  %v6015_v6 = vadd.f32 %v5733_v62, %v601_v1  ;;  %v6061_v7 = vld [vmem:[#allocation2 + $0x68] sm:$0xff]  ;;  %4732 = vmatpush3.bf16.msra.mxu1 %v5045_v11 }
 0x161   : > { %1095 = vst.msk [vmem:[#allocation2 + $0x80] sm:$0xff] %vm1034_vm1, %v1079_v20  ;;  %5123 = vrcp.f32 %v5989_v14  ;;  %v764_v2 = vadd.f32 2.0, %v5116_v49  ;;  %v602_v24 = vmul.f32 %v5869_v23, %v5728_v60  ;;  %v600_v40 = vmul.f32 %v5728_v60, %v5878_v53  ;;  %v6059_v20 = vpop.f32.mrb[31].mxu0 }
 0x162   : > { %2093 = vrot.lane.b32.xlu1 %v2045_v44, %s5465_s12  ;;  %1418 = vrot.lane.b32.xlu0 %v2045_v44, %s5465_s12  ;;  %v953_v36 = vmul.f32 %v5112_v34, %v921_v35  ;;  %v886_v32 = vmul.f32 %v5986_v47, %v5933_v27  ;;  %v6026_v59 = vadd.f32 %v5733_v62, %v599_v8  ;;  %v672_v23 = vmin.f32 %v6015_v6, 20.0  ;;  %v1121_v35 = vld [vmem:[#allocation2 + $0x70] sm:$0xff] }
 0x163   : > { %v5118_v31 = vpop.eup %5117  ;;  %v6023_v9 = vmul.f32 %v5116_v49, %v764_v2  ;;  %v1848_v27 = vor.u32 %v5991_v55, %v1846_v46  ;;  %v6039_v39 = vadd.f32 %v5733_v62, %v602_v24  ;;  %v6042_v42 = vadd.f32 %v5733_v62, %v600_v40  ;;  %v5046_v49 = vld [vmem:[%s7977_s4 + $0x10] sm:$0xff]   ;;  %v6089_v24 = vld [vmem:[#allocation2 + $0x58] sm:$0xff] }
 0x164   : > { %v1017_v19 = vmul.f32 %v985_v26, %v953_v36  ;;  %v762_v48 = vadd.f32 2.0, %v5118_v31  ;;  %v670_v61 = vmin.f32 %v6026_v59, 20.0  ;;  %v726_v5 = vmul.f32 1.442695, %v672_v23  ;;  %4733 = vmatprep.subr.bf16.mxu1 %v5046_v49 }
 0x165   : > { %v6032_v53 = vadd.f32 2.0, %v6023_v9  ;;  %v918_v45 = vsub.f32 2.0, %v886_v32  ;;  %v1166_v3 = vshrl.u32 %v5950_v16, 16  ;;  %v673_v26 = vmin.f32 %v6039_v39, 20.0  ;;  %4734 = vmatpush3.bf16.msra.mxu1 %v5046_v49  ;;  %v6093_v32 = vld [vmem:[#allocation2 + $0x50] sm:$0xff] }
 0x166   : > { %4928 = vrot.lane.b32.xlu0 %v4927_v54, %s5466_s19  ;;  %4923 = vrot.lane.b32.xlu1 %v4922_v58, %s5466_s19  ;;  %v1082_v0 = vpack.c.bf16 %v1017_v19, %v1016_v18  ;;  %v6036_v28 = vmul.f32 %v5118_v31, %v762_v48  ;;  %v5120_v43 = vpop.eup %5119  ;;  %v722_v63 = vmul.f32 1.442695, %v670_v61  ;;  %v671_v44 = vmin.f32 %v6042_v42, 20.0 }
 0x167   : > { %5125 = vrcp.f32 %v6032_v53  ;;  %v765_v37 = vadd.f32 2.0, %v5120_v43  ;;  %v982_v16 = vmul.f32 %v5919_v22, %v5812_v38  ;;  %v1168_v1 = vor.u32 %v5984_v33, %v1166_v3 }
 0x168   : > { %1098 = vst.msk [vmem:[#allocation2 + $0xc8] sm:$0xff] %vm1034_vm1, %v1082_v0  ;;  %v5122_v13 = vpop.eup %5121  ;;  %v6054_v34 = vadd.f32 2.0, %v6036_v28  ;;  %5127 = vpow2.f32 %v726_v5  ;;  %v950_v18 = vmul.f32 %v5986_v47, %v918_v45  ;;  %v728_v8 = vmul.f32 1.442695, %v673_v26 }
 0x169   : > { %v763_v12 = vadd.f32 2.0, %v5122_v13  ;;  %5129 = vpow2.f32 %v722_v63  ;;  %v6071_v46 = vmul.f32 %v5120_v43, %v765_v37  ;;  %v1376_v38 = vrot.slane %v6061_v7, 1 }
 0x16a   : > { %1953 = vrot.lane.b32.xlu0 %v1848_v27, %s5466_s19  ;;  %1277 = vrot.lane.b32.xlu1 %v1848_v27, %s5466_s19  ;;  %5131 = vrcp.f32 %v6054_v34  ;;  %v1377_v22 = vrot.slane %v1121_v35, 1  ;;  %v724_v33 = vmul.f32 1.442695, %v671_v44  ;;  %v983_v47 = vmul.f32 %v5980_v15, %v5876_v51 }
 0x16b   : > { %v5124_v58 = vpop.eup %5123  ;;  %v6076_v2 = vmul.f32 %v5122_v13, %v763_v12  ;;  %v6079_v21 = vadd.f32 2.0, %v6071_v46  ;;  %5133 = vpow2.f32 %v728_v8  ;;  %v1014_v40 = vmul.f32 %v982_v16, %v950_v18 }
 0x16c   : > { %v887_v36 = vmul.f32 %v5124_v58, %v5989_v14  ;;  %v605_v19 = vmul.f32 %v5894_v56, %v5728_v60  ;;  %v3182_v51 = vrot.slane %v6089_v24, 1  ;;  %v603_v15 = vmul.f32 %v5728_v60, %v5899_v50 }
 0x16d   : > { %v6087_v14 = vadd.f32 2.0, %v6076_v2  ;;  %5135 = vrcp.f32 %v6079_v21  ;;  %v6103_v0 = vsel %vm1363_vm2, %v1376_v38, %v1377_v22  ;;  %v606_v56 = vmul.f32 %v5903_v17, %v5728_v60 }
 0x16e   : > { %3084 = vrot.lane.b32.xlu1 %v1848_v27, %s5466_s19  ;;  %1273 = vrot.lane.b32.xlu0 %v1168_v1, %s5466_s19  ;;  %v919_v54 = vsub.f32 2.0, %v887_v36  ;;  %v6106_v27 = vadd.f32 %v5733_v62, %v605_v19  ;;  %v6112_v11 = vrot.slane %v6093_v32, 1  ;;  %v1177_v43 = vshll.u32 %v6093_v32, 16 }
 0x16f   : > { %5137 = vrcp.f32 %v6087_v14  ;;  %v6116_v50 = vadd.f32 %v5733_v62, %v603_v15  ;;  %v6120_v3 = vadd.f32 %v5733_v62, %v606_v56  ;;  %v604_v26 = vmul.f32 %v5728_v60, %v5910_v57 }
 0x170   : > { %v951_v31 = vmul.f32 %v5124_v58, %v919_v54  ;;  %5139 = vpow2.f32 %v724_v33  ;;  %v676_v37 = vmin.f32 %v6106_v27, 20.0  ;;  %v2985_v18 = vshll.u32 %v6061_v7, 16 }
 0x171   : > { %v5126_v48 = vpop.eup %5125  ;;  %v674_v35 = vmin.f32 %v6116_v50, 20.0  ;;  %v677_v16 = vmin.f32 %v6120_v3, 20.0  ;;  %v6138_v8 = vadd.f32 %v5733_v62, %v604_v26  ;;  %v986_v54 = vmul.f32 %v6036_v28, %v5953_v4 }
 0x172   : > { %1949 = vrot.lane.b32.xlu0 %v1168_v1, %s5466_s19  ;;  %1428 = vrot.lane.b32.xlu1 %v1376_v38, %s5465_s12  ;;  %v1015_v23 = vmul.f32 %v983_v47, %v951_v31  ;;  %v5128_v61 = vpop.eup %5127  ;;  %v892_v5 = vmul.f32 %v5126_v48, %v6032_v53  ;;  %v734_v58 = vmul.f32 1.442695, %v676_v37  ;;  %v988_v1 = vmul.f32 %v6023_v9, %v5928_v25 }
 0x173   : > { %v5130_v45 = vpop.eup %5129  ;;  %v768_v13 = vadd.f32 2.0, %v5128_v61  ;;  %v736_v31 = vmul.f32 1.442695, %v677_v16  ;;  %v675_v28 = vmin.f32 %v6138_v8, 20.0  ;;  %v6164_v37 = vrot.slane %v1177_v43, 1 }
 0x174   : > { %v1081_v63 = vpack.c.bf16 %v1015_v23, %v1014_v40  ;;  %v5132_v17 = vpop.eup %5131  ;;  %v924_v12 = vsub.f32 2.0, %v892_v5  ;;  %v766_v53 = vadd.f32 2.0, %v5130_v45  ;;  %5141 = vpow2.f32 %v734_v58 }
 0x175   : > { %v890_v44 = vmul.f32 %v5132_v17, %v6054_v34  ;;  %v6129_v49 = vmul.f32 %v5128_v61, %v768_v13  ;;  %v5134_v60 = vpop.eup %5133  ;;  %v730_v34 = vmul.f32 1.442695, %v674_v35  ;;  %v989_v23 = vmul.f32 %v6071_v46, %v5966_v10 }
 0x176   : > { %2103 = vrot.lane.b32.xlu0 %v1376_v38, %s5465_s12  ;;  %3234 = vrot.lane.b32.xlu1 %v1376_v38, %s5465_s12  ;;  %1097 = vst.msk [vmem:[#allocation2 + $0xb0] sm:$0xff] %vm1034_vm1, %v1081_v63  ;;  %v6135_v36 = vmul.f32 %v5130_v45, %v766_v53  ;;  %v956_v33 = vmul.f32 %v5126_v48, %v924_v12  ;;  %v769_v25 = vadd.f32 2.0, %v5134_v60  ;;  %v732_v10 = vmul.f32 1.442695, %v675_v28 }
 0x177   : > { %v922_v57 = vsub.f32 2.0, %v890_v44  ;;  %v832_v38 = vadd.f32 2.0, %v6129_v49  ;;  %v5136_v22 = vpop.eup %5135  ;;  %v6176_v26 = vpack.i.bf16 %v6164_v37, %v5991_v55  ;;  %v6178_v24 = vrot.slane %v2985_v18, 1  ;;  %v6191_v55 = vld [vmem:[%s7975_s2] ss:$0 sm:$0xff] }
 0x178   : > { %v830_v62 = vadd.f32 2.0, %v6135_v36  ;;  %v893_v40 = vmul.f32 %v5136_v22, %v6079_v21  ;;  %v6150_v4 = vmul.f32 %v5134_v60, %v769_v25  ;;  %v987_v21 = vmul.f32 %v6076_v2, %v5969_v52 }
 0x179   : > { %v5138_v9 = vpop.eup %5137  ;;  %v954_v47 = vmul.f32 %v5132_v17, %v922_v57  ;;  %5143 = vrcp.f32 %v832_v38  ;;  %v1020_v5 = vmul.f32 %v988_v1, %v956_v33  ;;  %v3183_v2 = vsel %vm1363_vm2, %v6112_v11, %v3182_v51 }
 0x17a   : > { %1430 = vrot.lane.b32.xlu0 %v6103_v0, %s5465_s12  ;;  %1424 = vrot.lane.b32.xlu1 %v6112_v11, %s5465_s12  ;;  %v5140_v19 = vpop.eup %5139  ;;  %v891_v15 = vmul.f32 %v5138_v9, %v6087_v14  ;;  %5145 = vrcp.f32 %v830_v62  ;;  %v925_v48 = vsub.f32 2.0, %v893_v40  ;;  %v833_v14 = vadd.f32 2.0, %v6150_v4 }
 0x17b   : > { %v767_v56 = vadd.f32 2.0, %v5140_v19  ;;  %5147 = vpow2.f32 %v730_v34  ;;  %v1018_v46 = vmul.f32 %v986_v54, %v954_v47  ;;  %v609_v1 = vmul.f32 %v6191_v55, %v6010_v29 }
 0x17c   : > { %v923_v61 = vsub.f32 2.0, %v891_v15  ;;  %5149 = vpow2.f32 %v736_v31  ;;  %v957_v45 = vmul.f32 %v5136_v22, %v925_v48  ;;  %v1187_v54 = vshrl.u32 %v6061_v7, 16  ;;  %v5310_v7 = vld [vmem:[%s7976_s3] ss:$0 sm:$0xff] }
 0x17d   : > { %v6162_v63 = vmul.f32 %v5140_v19, %v767_v56  ;;  %5151 = vrcp.f32 %v833_v14  ;;  %v992_v29 = vmul.f32 %v6129_v49, %v6015_v6  ;;  %v6214_v31 = vadd.f32 %v5310_v7, %v609_v1  ;;  %v5048_v48 = vld [vmem:[%s7977_s4 + $0x20] sm:$0xff]  }
 0x17e   : > { %2099 = vrot.lane.b32.xlu0 %v6112_v11, %s5465_s12  ;;  %3230 = vrot.lane.b32.xlu1 %v6112_v11, %s5465_s12  ;;  %v955_v13 = vmul.f32 %v5138_v9, %v923_v61  ;;  %v1021_v52 = vmul.f32 %v989_v23, %v957_v45  ;;  %5153 = vpow2.f32 %v732_v10  ;;  %v5142_v53 = vpop.eup %5141  ;;  %v1189_v49 = vor.u32 %v6178_v24, %v1187_v54 }
 0x17f   : > { %v831_v17 = vadd.f32 2.0, %v6162_v63  ;;  %v772_v51 = vadd.f32 2.0, %v5142_v53  ;;  %v607_v28 = vmul.f32 %v6191_v55, %v6044_v41  ;;  %v990_v23 = vmul.f32 %v6135_v36, %v6026_v59 }
 0x180   : > { %v1019_v12 = vmul.f32 %v987_v21, %v955_v13  ;;  %v1084_v35 = vpack.c.bf16 %v1021_v52, %v1020_v5  ;;  %v993_v56 = vmul.f32 %v6150_v4, %v6039_v39  ;;  %v680_v39 = vmin.f32 %v6214_v31, 20.0 }
 0x181   : > { %5155 = vrcp.f32 %v831_v17  ;;  %v6186_v16 = vmul.f32 %v5142_v53, %v772_v51  ;;  %v6235_v4 = vadd.f32 %v5310_v7, %v607_v28  ;;  %v610_v13 = vmul.f32 %v6191_v55, %v6051_v30 }
 0x182   : > { %3232 = vrot.lane.b32.xlu0 %v3183_v2, %s5465_s12  ;;  %3236 = vrot.lane.b32.xlu1 %v6103_v0, %s5465_s12  ;;  %v1083_v43 = vpack.c.bf16 %v1019_v12, %v1018_v46  ;;  %1100 = vst.msk [vmem:[#allocation2 + $0xf8] sm:$0xff] %vm1034_vm1, %v1084_v35  ;;  %v1180_v35 = vshrl.u32 %v6093_v32, 16 }
 0x183   : > { %v5144_v11 = vpop.eup %5143  ;;  %v6201_v22 = vadd.f32 2.0, %v6186_v16  ;;  %v6244_v51 = vadd.f32 %v5310_v7, %v610_v13 }
 0x184   : > { %v5146_v44 = vpop.eup %5145  ;;  %1099 = vst.msk [vmem:[#allocation2 + $0xe0] sm:$0xff] %vm1034_vm1, %v1083_v43  ;;  %v896_v58 = vmul.f32 %v5144_v11, %v832_v38  ;;  %v4942_v38 = vpack.i.bf16 %v6178_v24, %v6164_v37  ;;  %v678_v43 = vmin.f32 %v6235_v4, 20.0 }
 0x185   : > { %v5148_v18 = vpop.eup %5147  ;;  %v894_v60 = vmul.f32 %v5146_v44, %v830_v62  ;;  %5157 = vrcp.f32 %v6201_v22  ;;  %v681_v1 = vmin.f32 %v6244_v51, 20.0 }
 0x186   : > { %2105 = vrot.lane.b32.xlu1 %v6103_v0, %s5465_s12  ;;  %4933 = vrot.lane.b32.xlu0 %v6176_v26, %s5466_s19  ;;  %v5047_v0 = vld [vmem:[%s7977_s4 + $0x18] sm:$0xff]   ;;  %v5150_v57 = vpop.eup %5149  ;;  %v928_v34 = vsub.f32 2.0, %v896_v58  ;;  %v770_v33 = vadd.f32 2.0, %v5148_v18  ;;  %v738_v58 = vmul.f32 1.442695, %v678_v43 }
 0x187   : > { %v926_v25 = vsub.f32 2.0, %v894_v60  ;;  %v773_v62 = vadd.f32 2.0, %v5150_v57  ;;  %4691 = vmatprep.subr.bf16.mxu0 %v5047_v0  ;;  %v5152_v9 = vpop.eup %5151 }
 0x188   : > { %v960_v47 = vmul.f32 %v5144_v11, %v928_v34  ;;  %v6209_v40 = vmul.f32 %v5148_v18, %v770_v33  ;;  %v5154_v6 = vpop.eup %5153  ;;  %v897_v19 = vmul.f32 %v5152_v9, %v833_v14  ;;  %4692 = vmatpush3.bf16.msra.mxu0 %v5047_v0  ;;  %v5049_v11 = vld [vmem:[%s7977_s4 + $0x28] sm:$0xff]   ;;  %v1182_v0 = vor.u32 %v1180_v35, %v6164_v37  ;;  %v6263_v33 = vld [vmem:[#allocation2 + $0x98] sm:$0xff] }
 0x189   : > { %v6217_v15 = vmul.f32 %v5150_v57, %v773_v62  ;;  %v771_v21 = vadd.f32 2.0, %v5154_v6  ;;  %v958_v45 = vmul.f32 %v5146_v44, %v926_v25  ;;  %4693 = vmatprep.subr.bf16.mxu0 %v5048_v48 }
 0x18a   : > { %1426 = vrot.lane.b32.xlu1 %v3183_v2, %s5465_s12  ;;  %4943 = vrot.lane.b32.xlu0 %v4942_v38, %s5466_s19  ;;  %v834_v61 = vadd.f32 2.0, %v6209_v40  ;;  %v1024_v5 = vmul.f32 %v992_v29, %v960_v47  ;;  %v929_v10 = vsub.f32 2.0, %v897_v19  ;;  %v744_v38 = vmul.f32 1.442695, %v681_v1 }
 0x18b   : > { %v5156_v14 = vpop.eup %5155  ;;  %v837_v41 = vadd.f32 2.0, %v6217_v15  ;;  %v6232_v59 = vmul.f32 %v5154_v6, %v771_v21  ;;  %v1022_v30 = vmul.f32 %v990_v23, %v958_v45  ;;  %v3190_v29 = vrot.slane %v6263_v33, 1 }
 0x18c   : > { %v895_v46 = vmul.f32 %v5156_v14, %v831_v17  ;;  %5159 = vrcp.f32 %v834_v61  ;;  %v961_v36 = vmul.f32 %v5152_v9, %v929_v10  ;;  %4694 = vmatpush3.bf16.msra.mxu0 %v5048_v48  ;;  %v742_v17 = vmul.f32 1.442695, %v680_v39  ;;  %v6278_v10 = vld [vmem:[#allocation2 + $0x80] sm:$0xff] }
 0x18d   : > { %5161 = vrcp.f32 %v837_v41  ;;  %v835_v12 = vadd.f32 2.0, %v6232_v59  ;;  %4695 = vmatprep.subr.bf16.mxu0 %v5049_v11  ;;  %v997_v48 = vmul.f32 %v6217_v15, %v6120_v3  ;;  %v994_v21 = vmul.f32 %v6209_v40, %v6116_v50 }
 0x18e   : > { %2101 = vrot.lane.b32.xlu1 %v3183_v2, %s5465_s12  ;;  %1285 = vrot.lane.b32.xlu0 %v1189_v49, %s5466_s19  ;;  %v927_v52 = vsub.f32 2.0, %v895_v46  ;;  %v991_v2 = vmul.f32 %v6162_v63, %v6042_v42  ;;  %v1025_v53 = vmul.f32 %v993_v56, %v961_v36  ;;  %v608_v63 = vmul.f32 %v6191_v55, %v6059_v20  ;;  %v1127_v55 = vld [vmem:[#allocation2 + $0xa0] sm:$0xff] }
 0x18f   : > { %5163 = vrcp.f32 %v835_v12  ;;  %v5158_v18 = vpop.eup %5157  ;;  %v1383_v62 = vrot.slane %v1127_v55, 1  ;;  %v995_v3 = vmul.f32 %v6232_v59, %v6138_v8  ;;  %v3187_v15 = vrot.slane %v6278_v10, 1 }
 0x190   : > { %v959_v42 = vmul.f32 %v5156_v14, %v927_v52  ;;  %v1086_v44 = vpack.c.bf16 %v1025_v53, %v1024_v5  ;;  %5165 = vpow2.f32 %v742_v17  ;;  %v6256_v57 = vadd.f32 %v5310_v7, %v608_v63  ;;  %4696 = vmatpush3.bf16.msra.mxu0 %v5049_v11 }
 0x191   : > { %5167 = vpow2.f32 %v738_v58  ;;  %v996_v7 = vmul.f32 %v6186_v16, %v6106_v27  ;;  %v1384_v56 = vsel %vm1363_vm2, %v3190_v29, %v1383_v62 }
 0x192   : > { %4938 = vrot.lane.b32.xlu1 %v6176_v26, %s5466_s19  ;;  %1961 = vrot.lane.b32.xlu0 %v1189_v49, %s5466_s19  ;;  %v1023_v60 = vmul.f32 %v991_v2, %v959_v42  ;;  %1102 = vst.msk [vmem:[#allocation2 + $0x128] sm:$0xff] %vm1034_vm1, %v1086_v44  ;;  %v900_v26 = vmul.f32 %v5158_v18, %v6201_v22  ;;  %v679_v34 = vmin.f32 %v6256_v57, 20.0  ;;  %5169 = vpow2.f32 %v744_v38 }
 0x193   : > { %v1191_v44 = vshll.u32 %v6278_v10, 16 }
 0x194   : > { %v1085_v20 = vpack.c.bf16 %v1023_v60, %v1022_v30  ;;  %v932_v37 = vsub.f32 2.0, %v900_v26  ;;  %v740_v22 = vmul.f32 1.442695, %v679_v34  ;;  %v1801_v30 = vld [vmem:[#allocation2 + $0x88] sm:$0xff]  ;;  %v2999_v26 = vshll.u32 %v6263_v33, 16 }
 0x195   : > { %v2056_v58 = vrot.slane %v1801_v30, 1 }
 0x196   : > { %3092 = vrot.lane.b32.xlu1 %v1189_v49, %s5466_s19  ;;  %1281 = vrot.lane.b32.xlu0 %v1182_v0, %s5466_s19  ;;  %v5160_v54 = vpop.eup %5159  ;;  %1101 = vst.msk [vmem:[#allocation2 + $0x110] sm:$0xff] %vm1034_vm1, %v1085_v20  ;;  %v964_v47 = vmul.f32 %v5158_v18, %v932_v37  ;;  %5171 = vpow2.f32 %v740_v22  ;;  %v1193_v18 = vrot.slane %v1191_v44, 1  ;;  %v1201_v22 = vshrl.u32 %v6263_v33, 16 }
 0x197   : > { %v5162_v25 = vpop.eup %5161  ;;  %v898_v9 = vmul.f32 %v5160_v54, %v834_v61  ;;  %v2057_v60 = vsel %vm1363_vm2, %v3187_v15, %v2056_v58 }
 0x198   : > { %v901_v6 = vmul.f32 %v5162_v25, %v837_v41  ;;  %v1028_v27 = vmul.f32 %v996_v7, %v964_v47  ;;  %v4947_v55 = vpack.i.bf16 %v1193_v18, %v6178_v24 }
 0x199   : > { %v930_v49 = vsub.f32 2.0, %v898_v9  ;;  %v5164_v19 = vpop.eup %5163 }
 0x19a   : > { %3088 = vrot.lane.b32.xlu0 %v1182_v0, %s5466_s19  ;;  %3242 = vrot.lane.b32.xlu1 %v3190_v29, %s5465_s12  ;;  %v933_v28 = vsub.f32 2.0, %v901_v6  ;;  %v5166_v23 = vpop.eup %5165  ;;  %v899_v14 = vmul.f32 %v5164_v19, %v835_v12 }
 0x19b   : > { %v962_v61 = vmul.f32 %v5160_v54, %v930_v49  ;;  %v776_v5 = vadd.f32 2.0, %v5166_v23  ;;  %v5168_v45 = vpop.eup %5167 }
 0x19c   : > { %v965_v16 = vmul.f32 %v5162_v25, %v933_v28  ;;  %v931_v41 = vsub.f32 2.0, %v899_v14  ;;  %v774_v50 = vadd.f32 2.0, %v5168_v45  ;;  %v5170_v40 = vpop.eup %5169 }
 0x19d   : > { %v808_v39 = vmul.f32 %v5166_v23, %v776_v5  ;;  %v1026_v36 = vmul.f32 %v994_v21, %v962_v61  ;;  %v777_v53 = vadd.f32 2.0, %v5170_v40 }
 0x19e   : > { %1957 = vrot.lane.b32.xlu0 %v1182_v0, %s5466_s19  ;;  %1438 = vrot.lane.b32.xlu1 %v1384_v56, %s5465_s12  ;;  %v1029_v46 = vmul.f32 %v997_v48, %v965_v16  ;;  %v963_v13 = vmul.f32 %v5164_v19, %v931_v41  ;;  %v806_v12 = vmul.f32 %v5168_v45, %v774_v50 }
 0x19f   : > { %v840_v2 = vadd.f32 2.0, %v808_v39  ;;  %v809_v43 = vmul.f32 %v5170_v40, %v777_v53  ;;  %v1000_v9 = vmul.f32 %v808_v39, %v6214_v31 }
 0x1a0   : > { %v1088_v52 = vpack.c.bf16 %v1029_v46, %v1028_v27  ;;  %v1027_v17 = vmul.f32 %v995_v3, %v963_v13  ;;  %v5172_v35 = vpop.eup %5171  ;;  %v838_v8 = vadd.f32 2.0, %v806_v12  ;;  %v998_v6 = vmul.f32 %v806_v12, %v6235_v4  ;;  %v6321_v46 = vld [vmem:[#allocation2 + $0xc8] sm:$0xff]  ;;  %v6336_v12 = vld [vmem:[#allocation2 + $0xb0] sm:$0xff] }
 0x1a1   : > { %5173 = vrcp.f32 %v840_v2  ;;  %v775_v11 = vadd.f32 2.0, %v5172_v35  ;;  %v841_v42 = vadd.f32 2.0, %v809_v43  ;;  %v1001_v19 = vmul.f32 %v809_v43, %v6244_v51 }
 0x1a2   : > { %1436 = vrot.lane.b32.xlu0 %v3190_v29, %s5465_s12  ;;  %3238 = vrot.lane.b32.xlu1 %v3187_v15, %s5465_s12  ;;  %1104 = vst.msk [vmem:[#allocation2 + $0x158] sm:$0xff] %vm1034_vm1, %v1088_v52  ;;  %v1087_v59 = vpack.c.bf16 %v1027_v17, %v1026_v36  ;;  %5175 = vrcp.f32 %v838_v8  ;;  %v2995_v51 = vshrl.u32 %v6278_v10, 16  ;;  %v1388_v40 = vrot.slane %v6321_v46, 1  ;;  %v1133_v36 = vld [vmem:[#allocation2 + $0xd0] sm:$0xff] }
 0x1a3   : > { %v807_v63 = vmul.f32 %v5172_v35, %v775_v11  ;;  %5177 = vrcp.f32 %v841_v42  ;;  %v1385_v35 = vrot.slane %v6336_v12, 1  ;;  %v1205_v30 = vshll.u32 %v6336_v12, 16 }
 0x1a4   : > { %1103 = vst.msk [vmem:[#allocation2 + $0x140] sm:$0xff] %vm1034_vm1, %v1087_v59  ;;  %v2939_v59 = vld [vmem:[#allocation2 + $0xb8] sm:$0xff] }
 0x1a5   : > { %v839_v1 = vadd.f32 2.0, %v807_v63  ;;  %v999_v4 = vmul.f32 %v807_v63, %v6256_v57  ;;  %v1270_v57 = vpop.permute.xlu0 %1269  ;;  %v5311_v63 = vld [vmem:[#allocation2 + $0x8] sm:$0xff] }
 0x1a6   : > { %2111 = vrot.lane.b32.xlu0 %v3190_v29, %s5465_s12  ;;  %3244 = vrot.lane.b32.xlu1 %v1384_v56, %s5465_s12  ;;  %v6299_v29 = vrot.slane %v2999_v26, 1  ;;  %v1480_v44 = vsel %vm1034_vm1, %v5311_v63, %v1270_v57  ;;  %v3013_v26 = vshll.u32 %v6321_v46, 16 }
 0x1a7   : > { %5179 = vrcp.f32 %v839_v1 }
 0x1a8   : > { %v4957_v48 = vpack.i.bf16 %v6299_v29, %v1193_v18  ;;  %v1203_v23 = vor.u32 %v6299_v29, %v1201_v22 }
 0x1aa   : > { %2113 = vrot.lane.b32.xlu1 %v1384_v56, %s5465_s12  ;;  %1432 = vrot.lane.b32.xlu0 %v3187_v15, %s5465_s12  ;;  %v6309_v56 = vpop.permute.xlu1 %1412 }
 0x1ab   : > { %v5174_v0 = vpop.eup %5173 }
 0x1ac   : > { %v904_v38 = vmul.f32 %v5174_v0, %v840_v2  ;;  %v5176_v20 = vpop.eup %5175  ;;  %v1389_v2 = vrot.slane %v1133_v36, 1 }
 0x1ad   : > { %v902_v37 = vmul.f32 %v5176_v20, %v838_v8  ;;  %v5178_v54 = vpop.eup %5177 }
 0x1ae   : > { %2109 = vrot.lane.b32.xlu1 %v2057_v60, %s5465_s12  ;;  %2107 = vrot.lane.b32.xlu0 %v3187_v15, %s5465_s12  ;;  %v936_v34 = vsub.f32 2.0, %v904_v38  ;;  %v905_v47 = vmul.f32 %v5178_v54, %v841_v42  ;;  %v1415_v41 = vpop.permute.xlu1 %1414  ;;  %v2997_v15 = vor.u32 %v2995_v51, %v1193_v18  ;;  %v1390_v8 = vsel %vm1363_vm2, %v1388_v40, %v1389_v2 }
 0x1af   : > { %v934_v25 = vsub.f32 2.0, %v902_v37  ;;  %v3194_v42 = vrot.slane %v2939_v59, 1  ;;  %v6350_v18 = vrot.slane %v1205_v30, 1  ;;  %v1107_v37 = vld [vmem:[#allocation2] sm:$0xff] }
 0x1b0   : > { %v968_v62 = vmul.f32 %v5174_v0, %v936_v34  ;;  %v937_v49 = vsub.f32 2.0, %v905_v47 }
 0x1b1   : > { %v5180_v7 = vpop.eup %5179  ;;  %v966_v24 = vmul.f32 %v5176_v20, %v934_v25  ;;  %v3195_v0 = vsel %vm1363_vm2, %v1385_v35, %v3194_v42  ;;  %v4962_v34 = vpack.i.bf16 %v6350_v18, %v6299_v29  ;;  %v6363_v25 = vrot.slane %v3013_v26, 1 }
 0x1b2   : > { %1434 = vrot.lane.b32.xlu0 %v2057_v60, %s5465_s12  ;;  %4948 = vrot.lane.b32.xlu1 %v4947_v55, %s5466_s19  ;;  %v903_v28 = vmul.f32 %v5180_v7, %v839_v1  ;;  %v1032_v31 = vmul.f32 %v1000_v9, %v968_v62  ;;  %v969_v61 = vmul.f32 %v5178_v54, %v937_v49  ;;  %v1787_v9 = vld [vmem:[#allocation2 + $0x18] sm:$0xff] }
 0x1b3   : > { %v1030_v14 = vmul.f32 %v998_v6, %v966_v24  ;;  %v4972_v29 = vpack.i.bf16 %v6363_v25, %v6350_v18 }
 0x1b4   : > { %v935_v21 = vsub.f32 2.0, %v903_v28  ;;  %v1033_v27 = vmul.f32 %v1001_v19, %v969_v61  ;;  %v1215_v19 = vshrl.u32 %v6321_v46, 16 }
 0x1b6   : > { %3240 = vrot.lane.b32.xlu0 %v2057_v60, %s5465_s12  ;;  %4953 = vrot.lane.b32.xlu1 %v4947_v55, %s5466_s19  ;;  %v967_v16 = vmul.f32 %v5180_v7, %v935_v21  ;;  %v1090_v5 = vpack.c.bf16 %v1033_v27, %v1032_v31  ;;  %v1559_v60 = vsel %vm362_vm0, %v1480_v44, %v1415_v41  ;;  %v5312_v27 = vld [vmem:[#allocation2 + $0x20] sm:$0xff] }
 0x1b7   : > { %v1624_v38 = vshrl.u32 %v1559_v60, 16  ;;  %v1627_v62 = vshll.u32 %v1559_v60, 16 }
 0x1b8   : > { %v1031_v45 = vmul.f32 %v999_v4, %v967_v16  ;;  %1106 = vst.msk [vmem:[#allocation2 + $0x188] sm:$0xff] %vm1034_vm1, %v1090_v5 }
 0x1b9   : > { %v1626_v7 = vrot.slane %v1624_v38, 7 }
 0x1ba   : > { %4958 = vrot.lane.b32.xlu0 %v4957_v48, %s5466_s19  ;;  %1293 = vrot.lane.b32.xlu1 %v1203_v23, %s5466_s19  ;;  %v1089_v3 = vpack.c.bf16 %v1031_v45, %v1030_v14 }
 0x1bb   : > { %v1629_v31 = vor.u32 %v1627_v62, %v1626_v7  ;;  %v5313_v7 = vld [vmem:[#allocation2 + $0x38] sm:$0xff] }
 0x1bc   : > { %1105 = vst.msk [vmem:[#allocation2 + $0x170] sm:$0xff] %vm1034_vm1, %v1089_v3 }
 0x1be   : > { %1969 = vrot.lane.b32.xlu0 %v1203_v23, %s5466_s19  ;;  %3100 = vrot.lane.b32.xlu1 %v1203_v23, %s5466_s19 }
 0x1c2   : > { %3096 = vrot.lane.b32.xlu0 %v2997_v15, %s5466_s19  ;;  %1289 = vrot.lane.b32.xlu1 %v2997_v15, %s5466_s19 }
 0x1c4   : > { %v6323_v39 = vpop.permute.xlu1 %3226  ;;  %v6325_v50 = vpop.permute.xlu0 %1420 }
 0x1c6   : > { %1965 = vrot.lane.b32.xlu0 %v2997_v15, %s5466_s19  ;;  %1444 = vrot.lane.b32.xlu1 %v1388_v40, %s5465_s12 }
 0x1c8   : > { %v6330_v13 = vpop.permute.xlu0 %2095  ;;  %v6332_v52 = vpop.permute.xlu1 %1422 }
 0x1ca   : > { %2119 = vrot.lane.b32.xlu0 %v1388_v40, %s5465_s12  ;;  %3250 = vrot.lane.b32.xlu1 %v1388_v40, %s5465_s12  ;;  %v1208_v40 = vshrl.u32 %v6336_v12, 16 }
 0x1cc   : > { %v6338_v17 = vpop.permute.xlu1 %3228  ;;  %v1417_v53 = vpop.permute.xlu0 %1416 }
 0x1ce   : > { %1446 = vrot.lane.b32.xlu0 %v1390_v8, %s5465_s12  ;;  %1440 = vrot.lane.b32.xlu1 %v1385_v35, %s5465_s12 }
 0x1d0   : > { %v6344_v43 = vpop.permute.xlu1 %2097  ;;  %v2092_v11 = vpop.permute.xlu0 %2091 }
 0x1d2   : > { %2115 = vrot.lane.b32.xlu0 %v1385_v35, %s5465_s12  ;;  %3246 = vrot.lane.b32.xlu1 %v1385_v35, %s5465_s12 }
 0x1d4   : > { %v2094_v58 = vpop.permute.xlu1 %2093  ;;  %v1419_v1 = vpop.permute.xlu0 %1418 }
 0x1d6   : > { %3248 = vrot.lane.b32.xlu0 %v3195_v0, %s5465_s12  ;;  %3252 = vrot.lane.b32.xlu1 %v1390_v8, %s5465_s12 }
 0x1d8   : > { %v6357_v20 = vpop.permute.xlu0 %4928  ;;  %v4924_v55 = vpop.permute.xlu1 %4923 }
 0x1d9   : > { %v4925_v54 = vunpack.i.l.bf16 %v4924_v55  ;;  %v4926_v22 = vunpack.i.h.bf16 %v4924_v55  ;;  %v4930_v28 = vunpack.i.l.bf16 %v6357_v20  ;;  %v1139_v55 = vld [vmem:[#allocation2 + $0x100] sm:$0xff] }
 0x1da   : > { %2121 = vrot.lane.b32.xlu1 %v1390_v8, %s5465_s12  ;;  %4963 = vrot.lane.b32.xlu0 %v4962_v34, %s5466_s19  ;;  %v1395_v62 = vrot.slane %v1139_v55, 1 }
 0x1db   : > { %v1478_v47 = vsel %vm1034_vm1, %v1107_v37, %v4925_v54  ;;  %v1483_v23 = vsel %vm1034_vm1, %v1787_v9, %v4926_v22  ;;  %v2157_v14 = vsel %vm1034_vm1, %v1787_v9, %v4930_v28  ;;  %v6411_v54 = vld [vmem:[#allocation2 + $0xf8] sm:$0xff] }
 0x1dc   : > { %v6366_v6 = vpop.permute.xlu0 %1953  ;;  %v6368_v24 = vpop.permute.xlu1 %1277  ;;  %v1557_v49 = vsel %vm362_vm0, %v1478_v47, %v6309_v56  ;;  %v1217_v56 = vor.u32 %v6363_v25, %v1215_v19  ;;  %v1561_v51 = vsel %vm362_vm0, %v1483_v23, %v1417_v53  ;;  %v2236_v36 = vsel %vm362_vm0, %v2157_v14, %v2092_v11  ;;  %v6433_v23 = vld [vmem:[#allocation2 + $0xe0] sm:$0xff]  ;;  %v2922_v14 = vld [vmem:[#allocation2 + $0x30] sm:$0xff] }
 0x1dd   : > { %v1621_v48 = vshrl.u32 %v1557_v49, 16  ;;  %v1631_v15 = vshrl.u32 %v1561_v51, 16  ;;  %v2299_v30 = vshrl.u32 %v2236_v36, 16  ;;  %v1210_v11 = vor.u32 %v1208_v40, %v6350_v18 }
 0x1de   : > { %1442 = vrot.lane.b32.xlu1 %v3195_v0, %s5465_s12  ;;  %4973 = vrot.lane.b32.xlu0 %v4972_v29, %s5466_s19  ;;  %v3202_v22 = vrot.slane %v6411_v54, 1  ;;  %v1490_v29 = vsel %vm1034_vm1, %v5313_v7, %v6368_v24  ;;  %v2164_v40 = vsel %vm1034_vm1, %v5313_v7, %v6366_v6 }
 0x1df   : > { %v1623_v4 = vrot.slane %v1621_v48, 7  ;;  %v2301_v38 = vrot.slane %v2299_v30, 7  ;;  %v1567_v19 = vsel %vm362_vm0, %v1490_v29, %v6332_v52 }
 0x1e0   : > { %v6379_v61 = vpop.permute.xlu1 %3084  ;;  %v1274_v21 = vpop.permute.xlu0 %1273  ;;  %v1396_v49 = vsel %vm1363_vm2, %v3202_v22, %v1395_v62  ;;  %v1644_v24 = vshrl.u32 %v1567_v19, 16 }
 0x1e1   : > { %v1485_v16 = vsel %vm1034_vm1, %v5312_v27, %v1274_v21  ;;  %v1630_v45 = vsel %vm1620_vm3, %v1623_v4, %v1629_v31  ;;  %v3199_v31 = vrot.slane %v6433_v23, 1 }
 0x1e2   : > { %v1563_v5 = vsel %vm362_vm0, %v1485_v16, %v1419_v1  ;;  %2117 = vrot.lane.b32.xlu1 %v3195_v0, %s5465_s12  ;;  %1301 = vrot.lane.b32.xlu0 %v1217_v56, %s5466_s19  ;;  %v1633_v1 = vrot.slane %v1631_v15, 7  ;;  %v1646_v52 = vrot.slane %v1644_v24, 7  ;;  %v1813_v16 = vld [vmem:[#allocation2 + $0xe8] sm:$0xff]  ;;  %v1219_v15 = vshll.u32 %v6433_v23, 16 }
 0x1e3   : > { %4735 = vmatprep.mubr.msk.bf16.mxu1 %vm2484_vm4, %v1630_v45  ;;  %v1634_v41 = vshrl.u32 %v1563_v5, 16  ;;  %v1637_v35 = vshll.u32 %v1563_v5, 16  ;;  %v2068_v36 = vrot.slane %v1813_v16, 1 }
 0x1e4   : > { %v1950_v3 = vpop.permute.xlu0 %1949  ;;  %v6390_v57 = vpop.permute.xlu1 %1428  ;;  %v1221_v30 = vrot.slane %v1219_v15, 1 }
 0x1e5   : > { %v2159_v2 = vsel %vm1034_vm1, %v5312_v27, %v1950_v3  ;;  %v1636_v53 = vrot.slane %v1634_v41, 7  ;;  %v1647_v41 = vshll.u32 %v1567_v19, 16  ;;  %v2069_v6 = vsel %vm1363_vm2, %v3199_v31, %v2068_v36 }
 0x1e6   : > { %v2238_v8 = vsel %vm362_vm0, %v2159_v2, %v2094_v58  ;;  %4968 = vrot.lane.b32.xlu1 %v4962_v34, %s5466_s19  ;;  %1977 = vrot.lane.b32.xlu0 %v1217_v56, %s5466_s19  ;;  %v1229_v19 = vshrl.u32 %v6411_v54, 16 }
 0x1e7   : > { %v2302_v59 = vshrl.u32 %v2238_v8, 16  ;;  %v1639_v42 = vor.u32 %v1637_v35, %v1636_v53  ;;  %v2305_v0 = vshll.u32 %v2238_v8, 16  ;;  %v1649_v2 = vor.u32 %v1647_v41, %v1646_v52 }
 0x1e8   : > { %v6398_v63 = vpop.permute.xlu0 %2103  ;;  %v6400_v44 = vpop.permute.xlu1 %3234 }
 0x1e9   : > { %7994 = vst [vmem:[#allocation9_spill] sm:$0xff] %v6400_v44  ;;  %v2304_v60 = vrot.slane %v2302_v59, 7  ;;  %v1640_v26 = vsel %vm1620_vm3, %v1633_v1, %v1639_v42 }
 0x1ea   : > { %3108 = vrot.lane.b32.xlu1 %v1217_v56, %s5466_s19  ;;  %1297 = vrot.lane.b32.xlu0 %v1210_v11, %s5466_s19 }
 0x1eb   : > { %v2307_v58 = vor.u32 %v2305_v0, %v2304_v60  ;;  %4736 = vmatmul.mubr.msk.bf16.vlgmr.msra.gmra.mrb[0].mxu1 %vm2484_vm4, %v1640_v26  ;;  %v4977_v26 = vpack.i.bf16 %v1221_v30, %v6363_v25 }
 0x1ec   : > { %v6407_v34 = vpop.permute.xlu0 %1430  ;;  %v6409_v37 = vpop.permute.xlu1 %1424 }
 0x1ed   : > { %v2308_v18 = vsel %vm1620_vm3, %v2301_v38, %v2307_v58  ;;  %v3027_v58 = vshll.u32 %v6411_v54, 16 }
 0x1ee   : > { %4697 = vmatprep.mubr.msk.bf16.mxu0 %vm2484_vm4, %v2308_v18  ;;  %3104 = vrot.lane.b32.xlu0 %v1210_v11, %s5466_s19 }
 0x1ef   : > { %3258 = vrot.lane.b32.xlu1 %v3202_v22, %s5465_s12 }
 0x1f0   : > { %v6418_v9 = vpop.permute.xlu0 %2099  ;;  %v6420_v47 = vpop.permute.xlu1 %3230 }
 0x1f1   : > { %7995 = vst [vmem:[#allocation10_spill] sm:$0xff] %v6420_v47 }
 0x1f2   : > { %1973 = vrot.lane.b32.xlu0 %v1210_v11, %s5466_s19  ;;  %v1116_v11 = vld [vmem:[#allocation2 + $0x48] sm:$0xff] }
 0x1f3   : > { %1454 = vrot.lane.b32.xlu1 %v1396_v49, %s5465_s12 }
 0x1f4   : > { %v6429_v28 = vpop.permute.xlu0 %3232  ;;  %v6431_v48 = vpop.permute.xlu1 %3236 }
 0x1f5   : > { %7996 = vst [vmem:[#allocation11_spill] sm:$0xff] %v6429_v28  ;;  %7997 = vst [vmem:[#allocation12_spill] sm:$0xff] %v6431_v48  ;;  %v1128_v48 = vld [vmem:[#allocation2 + $0xa8] sm:$0xff] }
 0x1f6   : > { %1452 = vrot.lane.b32.xlu0 %v3202_v22, %s5465_s12 }
 0x1f7   : > { %3254 = vrot.lane.b32.xlu1 %v3199_v31, %s5465_s12 }
 0x1f8   : > { %v6438_v21 = vpop.permute.xlu1 %2105  ;;  %v4934_v4 = vpop.permute.xlu0 %4933 }
 0x1f9   : > { %v4935_v56 = vunpack.i.l.bf16 %v4934_v4  ;;  %v4936_v42 = vunpack.i.h.bf16 %v4934_v4 }
 0x1fa   : > { %2127 = vrot.lane.b32.xlu0 %v3202_v22, %s5465_s12 }
 0x1fb   : > { %v1488_v27 = vsel %vm1034_vm1, %v2922_v14, %v4935_v56  ;;  %3260 = vrot.lane.b32.xlu1 %v1396_v49, %s5465_s12  ;;  %v1493_v38 = vsel %vm1034_vm1, %v1116_v11, %v4936_v42 }
 0x1fc   : > { %v1427_v51 = vpop.permute.xlu1 %1426  ;;  %v6443_v5 = vpop.permute.xlu0 %4943  ;;  %v1565_v45 = vsel %vm362_vm0, %v1488_v27, %v6325_v50  ;;  %v2242_v50 = vsel %vm362_vm0, %v2164_v40, %v6344_v43  ;;  %v1569_v4 = vsel %vm362_vm0, %v1493_v38, %v6409_v37 }
 0x1fd   : > { %v1641_v3 = vshrl.u32 %v1565_v45, 16  ;;  %v2312_v1 = vshrl.u32 %v2242_v50, 16  ;;  %v4945_v29 = vunpack.i.l.bf16 %v6443_v5  ;;  %v1651_v15 = vshrl.u32 %v1569_v4, 16  ;;  %v2951_v4 = vld [vmem:[#allocation2 + $0x118] sm:$0xff] }
 0x1fe   : > { %1448 = vrot.lane.b32.xlu0 %v3199_v31, %s5465_s12 }
 0x1ff   : > { %2129 = vrot.lane.b32.xlu1 %v1396_v49, %s5465_s12  ;;  %v1643_v53 = vrot.slane %v1641_v3, 7  ;;  %v2314_v18 = vrot.slane %v2312_v1, 7  ;;  %v6477_v49 = vrot.slane %v3027_v58, 1  ;;  %v2167_v45 = vsel %vm1034_vm1, %v1116_v11, %v4945_v29 }
 0x200   : > { %v2102_v35 = vpop.permute.xlu1 %2101  ;;  %v6452_v8 = vpop.permute.xlu0 %1285  ;;  %v1653_v42 = vrot.slane %v1651_v15, 7 }
 0x201   : > { %v1650_v59 = vsel %vm1620_vm3, %v1643_v53, %v1649_v2  ;;  %v4987_v16 = vpack.i.bf16 %v6477_v49, %v1221_v30  ;;  %v1231_v3 = vor.u32 %v6477_v49, %v1229_v19  ;;  %v3023_v53 = vshrl.u32 %v6433_v23, 16 }
 0x202   : > { %4739 = vmatprep.mubr.msk.bf16.mxu1 %vm2484_vm4, %v1650_v59  ;;  %2123 = vrot.lane.b32.xlu0 %v3199_v31, %s5465_s12  ;;  %v2315_v31 = vshll.u32 %v2242_v50, 16  ;;  %v2244_v50 = vsel %vm362_vm0, %v2167_v45, %v6418_v9  ;;  %v6540_v45 = vld [vmem:[#allocation2 + $0x68] sm:$0xff] }
 0x203   : > { %2125 = vrot.lane.b32.xlu1 %v2069_v6, %s5465_s12  ;;  %v3025_v38 = vor.u32 %v3023_v53, %v1221_v30 }
 0x204   : > { %v6461_v60 = vpop.permute.xlu1 %4938  ;;  %v6463_v0 = vpop.permute.xlu0 %1961  ;;  %v2317_v56 = vor.u32 %v2315_v31, %v2314_v18 }
 0x205   : > { %7998 = vst [vmem:[#allocation13_spill] sm:$0xff] %v6461_v60  ;;  %v4940_v43 = vunpack.i.l.bf16 %v6461_v60 }
 0x206   : > { %1450 = vrot.lane.b32.xlu0 %v2069_v6, %s5465_s12 }
 0x207   : > { %v2162_v55 = vsel %vm1034_vm1, %v2922_v14, %v4940_v43  ;;  %4978 = vrot.lane.b32.xlu1 %v4977_v26, %s5466_s19 }
 0x208   : > { %v2240_v22 = vsel %vm362_vm0, %v2162_v55, %v6330_v13  ;;  %v6474_v62 = vpop.permute.xlu1 %3092  ;;  %v1282_v7 = vpop.permute.xlu0 %1281 }
 0x209   : > { %v2309_v25 = vshrl.u32 %v2240_v22, 16  ;;  %v1495_v24 = vsel %vm1034_vm1, %v6093_v32, %v1282_v7 }
 0x20a   : > { %3256 = vrot.lane.b32.xlu0 %v2069_v6, %s5465_s12  ;;  %v1571_v14 = vsel %vm362_vm0, %v1495_v24, %v1427_v51  ;;  %v6526_v24 = vld [vmem:[#allocation2 + $0x110] sm:$0xff] }
 0x20b   : > { %v2311_v13 = vrot.slane %v2309_v25, 7  ;;  %4983 = vrot.lane.b32.xlu1 %v4977_v26, %s5466_s19  ;;  %v1654_v41 = vshrl.u32 %v1571_v14, 16  ;;  %v1657_v36 = vshll.u32 %v1571_v14, 16  ;;  %v2319_v26 = vshrl.u32 %v2244_v50, 16  ;;  %v6520_v25 = vld [vmem:[#allocation2 + $0x128] sm:$0xff] }
 0x20c   : > { %v6487_v52 = vpop.permute.xlu0 %3088  ;;  %v6489_v27 = vpop.permute.xlu1 %3242  ;;  %v6524_v31 = vrot.slane %v6520_v25, 1  ;;  %v1233_v14 = vshll.u32 %v6526_v24, 16  ;;  %v6548_v15 = vrot.slane %v6526_v24, 1  ;;  %v2174_v50 = vsel %vm1034_vm1, %v6540_v45, %v6463_v0 }
 0x20d   : > { %7999 = vst [vmem:[#allocation14_spill] sm:$0xff] %v6487_v52  ;;  %8000 = vst [vmem:[#allocation15_spill] sm:$0xff] %v6489_v27  ;;  %v2318_v37 = vsel %vm1620_vm3, %v2311_v13, %v2317_v56  ;;  %v1656_v40 = vrot.slane %v1654_v41, 7  ;;  %v2321_v22 = vrot.slane %v2319_v26, 7  ;;  %v1500_v41 = vsel %vm1034_vm1, %v6540_v45, %v6452_v8  ;;  %v6571_v26 = vld [vmem:[#allocation2 + $0x60] sm:$0xff] }
 0x20e   : > { %4988 = vrot.lane.b32.xlu0 %v4987_v16, %s5466_s19  ;;  %4698 = vmatmul.mubr.msk.bf16.vlgmr.msra.gmra.mrb[32].mxu0 %vm2484_vm4, %v2318_v37  ;;  %v5050_v16 = vld [vmem:[%s7977_s4 + $0x30] sm:$0xff]   ;;  %v3206_v37 = vrot.slane %v2951_v4, 1 }
 0x20f   : > { %1309 = vrot.lane.b32.xlu1 %v1231_v3, %s5466_s19  ;;  %v1659_v59 = vor.u32 %v1657_v36, %v1656_v40  ;;  %4767 = vmatprep.subr.bf16.mxu1 %v5050_v16  ;;  %v1575_v40 = vsel %vm362_vm0, %v1500_v41, %v6407_v34 }
 0x210   : > { %v1958_v51 = vpop.permute.xlu0 %1957  ;;  %v6498_v2 = vpop.permute.xlu1 %1438  ;;  %4768 = vmatpush3.bf16.msra.mxu1 %v5050_v16  ;;  %v3207_v53 = vsel %vm1363_vm2, %v6548_v15, %v3206_v37 }
 0x211   : > { %v2169_v6 = vsel %vm1034_vm1, %v6093_v32, %v1958_v51  ;;  %v1660_v43 = vsel %vm1620_vm3, %v1653_v42, %v1659_v59  ;;  %v1235_v51 = vrot.slane %v1233_v14, 1  ;;  %v3041_v59 = vshll.u32 %v6520_v25, 16 }
 0x212   : > { %v2246_v1 = vsel %vm362_vm0, %v2169_v6, %v2102_v35  ;;  %1985 = vrot.lane.b32.xlu0 %v1231_v3, %s5466_s19  ;;  %4740 = vmatmul.mubr.msk.bf16.gmra.mrb[4].mxu1 %vm2484_vm4, %v1660_v43  ;;  %v1145_v35 = vld [vmem:[#allocation2 + $0x130] sm:$0xff]  ;;  %v1664_v6 = vshrl.u32 %v1575_v40, 16 }
 0x213   : > { %v2322_v11 = vshrl.u32 %v2246_v1, 16  ;;  %3116 = vrot.lane.b32.xlu1 %v1231_v3, %s5466_s19  ;;  %v2325_v32 = vshll.u32 %v2246_v1, 16  ;;  %v1401_v30 = vrot.slane %v1145_v35, 1  ;;  %v4992_v1 = vpack.i.bf16 %v1235_v51, %v6477_v49 }
 0x214   : > { %v6510_v58 = vpop.permute.xlu0 %1436  ;;  %v6512_v9 = vpop.permute.xlu1 %3238  ;;  %v6574_v0 = vrot.slane %v3041_v59, 1 }
 0x215   : > { %8001 = vst [vmem:[#allocation16_spill] sm:$0xff] %v6512_v9  ;;  %v2324_v55 = vrot.slane %v2322_v11, 7  ;;  %v1402_v3 = vsel %vm1363_vm2, %v6524_v31, %v1401_v30  ;;  %v2250_v11 = vsel %vm362_vm0, %v2174_v50, %v6438_v21 }
 0x216   : > { %3112 = vrot.lane.b32.xlu0 %v3025_v38, %s5466_s19  ;;  %v5002_v21 = vpack.i.bf16 %v6574_v0, %v1235_v51 }
 0x217   : > { %v2327_v18 = vor.u32 %v2325_v32, %v2324_v55  ;;  %1305 = vrot.lane.b32.xlu1 %v3025_v38, %s5466_s19  ;;  %v2332_v32 = vshrl.u32 %v2250_v11, 16 }
 0x218   : > { %v6516_v7 = vpop.permute.xlu0 %2111  ;;  %v6518_v29 = vpop.permute.xlu1 %3244 }
 0x219   : > { %8002 = vst [vmem:[#allocation17_spill] sm:$0xff] %v6518_v29  ;;  %v2328_v19 = vsel %vm1620_vm3, %v2321_v22, %v2327_v18  ;;  %v1243_v22 = vshrl.u32 %v6520_v25, 16  ;;  %v2334_v37 = vrot.slane %v2332_v32, 7 }
 0x21a   : > { %4701 = vmatprep.mubr.msk.bf16.mxu0 %vm2484_vm4, %v2328_v19  ;;  %1981 = vrot.lane.b32.xlu0 %v3025_v38, %s5466_s19  ;;  %v1666_v38 = vrot.slane %v1664_v6, 7  ;;  %v1667_v19 = vshll.u32 %v1575_v40, 16 }
 0x21b   : > { %1460 = vrot.lane.b32.xlu1 %v6524_v31, %s5465_s12 }
 0x21c   : > { %v6532_v13 = vpop.permute.xlu1 %2113  ;;  %v6534_v56 = vpop.permute.xlu0 %1432  ;;  %v1669_v14 = vor.u32 %v1667_v19, %v1666_v38 }
 0x21e   : > { %1462 = vrot.lane.b32.xlu0 %v1402_v3, %s5465_s12 }
 0x21f   : > { %1456 = vrot.lane.b32.xlu1 %v6548_v15, %s5465_s12 }
 0x220   : > { %v6555_v36 = vpop.permute.xlu1 %2109  ;;  %v6557_v8 = vpop.permute.xlu0 %2107 }
 0x222   : > { %3264 = vrot.lane.b32.xlu0 %v3207_v53, %s5465_s12 }
 0x223   : > { %3262 = vrot.lane.b32.xlu1 %v6548_v15, %s5465_s12 }
 0x224   : > { %v1435_v34 = vpop.permute.xlu0 %1434  ;;  %v4949_v42 = vpop.permute.xlu1 %4948 }
 0x225   : > { %v4950_v43 = vunpack.i.l.bf16 %v4949_v42  ;;  %v4951_v38 = vunpack.i.h.bf16 %v4949_v42 }
 0x226   : > { %4993 = vrot.lane.b32.xlu0 %v4992_v1, %s5466_s19 }
 0x227   : > { %v1498_v55 = vsel %vm1034_vm1, %v6571_v26, %v4950_v43  ;;  %3268 = vrot.lane.b32.xlu1 %v1402_v3, %s5465_s12  ;;  %v2335_v43 = vshll.u32 %v2250_v11, 16 }
 0x228   : > { %v6579_v35 = vpop.permute.xlu0 %3240  ;;  %v6581_v49 = vpop.permute.xlu1 %4953  ;;  %v1573_v18 = vsel %vm362_vm0, %v1498_v55, %v6390_v57  ;;  %v1245_v57 = vor.u32 %v6574_v0, %v1243_v22  ;;  %v1122_v55 = vld [vmem:[#allocation2 + $0x78] sm:$0xff] }
 0x229   : > { %8003 = vst [vmem:[#allocation18_spill] sm:$0xff] %v6579_v35  ;;  %8004 = vst [vmem:[#allocation19_spill] sm:$0xff] %v6581_v49  ;;  %v4955_v30 = vunpack.i.l.bf16 %v6581_v49  ;;  %v1661_v4 = vshrl.u32 %v1573_v18, 16  ;;  %v2337_v32 = vor.u32 %v2335_v43, %v2334_v37  ;;  %v1503_v42 = vsel %vm1034_vm1, %v1122_v55, %v4951_v38  ;;  %v6626_v43 = vld [vmem:[#allocation2 + $0x140] sm:$0xff] }
 0x22a   : > { %5003 = vrot.lane.b32.xlu0 %v5002_v21, %s5466_s19  ;;  %8008 = vst [vmem:[#allocation23_spill] sm:$0xff] %v6626_v43  ;;  %v6741_v49 = vld [vmem:[#allocation2 + $0xc0] sm:$0xff] }
 0x22b   : > { %v2172_v16 = vsel %vm1034_vm1, %v6571_v26, %v4955_v30  ;;  %2137 = vrot.lane.b32.xlu1 %v1402_v3, %s5465_s12  ;;  %v1663_v41 = vrot.slane %v1661_v4, 7 }
 0x22c   : > { %v6592_v50 = vpop.permute.xlu0 %4958  ;;  %v6594_v59 = vpop.permute.xlu1 %1293  ;;  %v2248_v40 = vsel %vm362_vm0, %v2172_v16, %v6398_v63  ;;  %v1236_v63 = vshrl.u32 %v6526_v24, 16  ;;  %v5051_v16 = vld [vmem:[%s7977_s4 + $0x38] sm:$0xff]  }
 0x22d   : > { %8005 = vst [vmem:[#allocation20_spill] sm:$0xff] %v6592_v50  ;;  %v1670_v6 = vsel %vm1620_vm3, %v1663_v41, %v1669_v14  ;;  %v2329_v3 = vshrl.u32 %v2248_v40, 16  ;;  %v4960_v19 = vunpack.i.l.bf16 %v6592_v50  ;;  %v1577_v40 = vsel %vm362_vm0, %v1503_v42, %v6534_v56  ;;  %4769 = vmatprep.subr.bf16.mxu1 %v5051_v16 }
 0x22e   : > { %4743 = vmatprep.mubr.msk.bf16.mxu1 %vm2484_vm4, %v1670_v6  ;;  %1317 = vrot.lane.b32.xlu0 %v1245_v57, %s5466_s19  ;;  %v1238_v14 = vor.u32 %v1236_v63, %v1235_v51  ;;  %v1247_v63 = vshll.u32 %v6626_v43, 16 }
 0x22f   : > { %1458 = vrot.lane.b32.xlu1 %v3207_v53, %s5465_s12  ;;  %v2331_v22 = vrot.slane %v2329_v3, 7  ;;  %v2177_v41 = vsel %vm1034_vm1, %v1122_v55, %v4960_v19  ;;  %4770 = vmatpush3.bf16.msra.mxu1 %v5051_v16  ;;  %v1671_v55 = vshrl.u32 %v1577_v40, 16 }
 0x230   : > { %v6603_v21 = vpop.permute.xlu0 %1969  ;;  %v6605_v18 = vpop.permute.xlu1 %3100 }
 0x231   : > { %8006 = vst [vmem:[#allocation21_spill] sm:$0xff] %v6605_v18  ;;  %v2338_v11 = vsel %vm1620_vm3, %v2331_v22, %v2337_v32  ;;  %v2252_v32 = vsel %vm362_vm0, %v2177_v41, %v6557_v8 }
 0x232   : > { %1993 = vrot.lane.b32.xlu0 %v1245_v57, %s5466_s19  ;;  %4702 = vmatmul.mubr.msk.bf16.gmra.mrb[36].mxu0 %vm2484_vm4, %v2338_v11  ;;  %v2339_v8 = vshrl.u32 %v2252_v32, 16 }
 0x233   : > { %2133 = vrot.lane.b32.xlu1 %v3207_v53, %s5465_s12  ;;  %v1151_v53 = vld [vmem:[#allocation2 + $0x160] sm:$0xff] }
 0x234   : > { %v6614_v30 = vpop.permute.xlu0 %3096  ;;  %v1290_v4 = vpop.permute.xlu1 %1289  ;;  %v1407_v22 = vrot.slane %v1151_v53, 1  ;;  %v6649_v53 = vrot.slane %v1247_v63, 1 }
 0x235   : > { %8007 = vst [vmem:[#allocation22_spill] sm:$0xff] %v6614_v30  ;;  %v1505_v37 = vsel %vm1034_vm1, %v6278_v10, %v1290_v4 }
 0x236   : > { %v1579_v6 = vsel %vm362_vm0, %v1505_v37, %v1435_v34  ;;  %1313 = vrot.lane.b32.xlu0 %v1238_v14, %s5466_s19  ;;  %v6635_v34 = vld [vmem:[#allocation2 + $0x158] sm:$0xff]  ;;  %v1673_v37 = vrot.slane %v1671_v55, 7  ;;  %v2341_v55 = vrot.slane %v2339_v8, 7  ;;  %v1510_v8 = vsel %vm1034_vm1, %v6263_v33, %v6594_v59 }
 0x237   : > { %4998 = vrot.lane.b32.xlu1 %v4992_v1, %s5466_s19  ;;  %v1674_v51 = vshrl.u32 %v1579_v6, 16  ;;  %v1677_v42 = vshll.u32 %v1579_v6, 16  ;;  %v6642_v11 = vrot.slane %v6635_v34, 1 }
 0x238   : > { %v1966_v38 = vpop.permute.xlu0 %1965  ;;  %v6629_v3 = vpop.permute.xlu1 %1444 }
 0x239   : > { %v2179_v56 = vsel %vm1034_vm1, %v6278_v10, %v1966_v38  ;;  %v1676_v19 = vrot.slane %v1674_v51, 7 }
 0x23a   : > { %v2254_v1 = vsel %vm362_vm0, %v2179_v56, %v6555_v36  ;;  %3120 = vrot.lane.b32.xlu0 %v1238_v14, %s5466_s19  ;;  %v1254_v36 = vshll.u32 %v6635_v34, 16 }
 0x23b   : > { %v2342_v4 = vshrl.u32 %v2254_v1, 16  ;;  %3124 = vrot.lane.b32.xlu1 %v1245_v57, %s5466_s19  ;;  %v1679_v10 = vor.u32 %v1677_v42, %v1676_v19  ;;  %v2345_v6 = vshll.u32 %v2254_v1, 16  ;;  %v6656_v57 = vsel %vm1363_vm2, %v6642_v11, %v1407_v22  ;;  %v1148_v42 = vld [vmem:[#allocation2 + $0x148] sm:$0xff] }
 0x23c   : > { %v6645_v16 = vpop.permute.xlu0 %2119  ;;  %v6647_v41 = vpop.permute.xlu1 %3250  ;;  %v6670_v19 = vrot.slane %v1254_v36, 1  ;;  %v1257_v22 = vshrl.u32 %v6635_v34, 16  ;;  %v1583_v36 = vsel %vm362_vm0, %v1510_v8, %v6498_v2 }
 0x23d   : > { %v2344_v40 = vrot.slane %v2342_v4, 7  ;;  %v1680_v51 = vsel %vm1620_vm3, %v1673_v37, %v1679_v10  ;;  %v1404_v37 = vrot.slane %v1148_v42, 1  ;;  %v1684_v2 = vshrl.u32 %v1583_v36, 16 }
 0x23e   : > { %1989 = vrot.lane.b32.xlu0 %v1238_v14, %s5466_s19  ;;  %4744 = vmatmul.mubr.msk.bf16.gmra.mrb[8].mxu1 %vm2484_vm4, %v1680_v51  ;;  %v6668_v14 = vpack.i.bf16 %v6649_v53, %v6574_v0  ;;  %v6683_v0 = vrot.slane %v6626_v43, 1  ;;  %v6689_v10 = vor.u32 %v1257_v22, %v6670_v19  ;;  %v1154_v22 = vld [vmem:[#allocation2 + $0x178] sm:$0xff]  ;;  %v1687_v47 = vshll.u32 %v1583_v36, 16 }
 0x23f   : > { %v2347_v38 = vor.u32 %v2345_v6, %v2344_v40  ;;  %1470 = vrot.lane.b32.xlu1 %v6656_v57, %s5465_s12  ;;  %v1250_v40 = vshrl.u32 %v6626_v43, 16  ;;  %v6692_v6 = vld [vmem:[#allocation2 + $0x170] sm:$0xff]  ;;  %v1410_v29 = vrot.slane %v1154_v22, 1  ;;  %v1686_v35 = vrot.slane %v1684_v2, 7 }
 0x240   : > { %v6661_v32 = vpop.permute.xlu0 %1446  ;;  %v6663_v56 = vpop.permute.xlu1 %1440  ;;  %8009 = vst [vmem:[#allocation24_spill] sm:$0xff] %v6692_v6  ;;  %v1261_v59 = vshll.u32 %v6692_v6, 16  ;;  %v6724_v9 = vrot.slane %v6692_v6, 1 }
 0x241   : > { %v2348_v63 = vsel %vm1620_vm3, %v2341_v55, %v2347_v38  ;;  %v5052_v38 = vld [vmem:[%s7977_s4 + $0x40] sm:$0xff]   ;;  %v6710_v55 = vsel %vm1363_vm2, %v6683_v0, %v1404_v37 }
 0x242   : > { %4705 = vmatprep.mubr.msk.bf16.mxu0 %vm2484_vm4, %v2348_v63  ;;  %1468 = vrot.lane.b32.xlu0 %v6642_v11, %s5465_s12  ;;  %v6713_v63 = vor.u32 %v1250_v40, %v6649_v53  ;;  %v6721_v27 = vrot.slane %v1261_v59, 1  ;;  %v6726_v40 = vld [vmem:[#allocation2 + $0x90] sm:$0xff]  ;;  %v6750_v52 = vsel %vm1363_vm2, %v6724_v9, %v1410_v29 }
 0x243   : > { %5008 = vrot.lane.b32.xlu1 %v6668_v14, %s5466_s19  ;;  %4771 = vmatprep.subr.bf16.mxu1 %v5052_v38  ;;  %8010 = vst [vmem:[#allocation25_spill] sm:$0xff] %v6726_v40 }
 0x244   : > { %v6678_v1 = vpop.permute.xlu0 %2115  ;;  %v6680_v4 = vpop.permute.xlu1 %3246  ;;  %4772 = vmatpush3.bf16.msra.mxu1 %v5052_v38  ;;  %v6734_v38 = vld [vmem:[#allocation2 + $0x98] sm:$0xff]  ;;  %v6745_v2 = vpack.i.bf16 %v6721_v27, %v6670_v19 }
 0x245   : > { %8011 = vst [vmem:[#allocation26_spill] sm:$0xff] %v6734_v38  ;;  %v2184_v59 = vsel %vm1034_vm1, %v6734_v38, %v6603_v21 }
 0x246   : > { %1464 = vrot.lane.b32.xlu0 %v6683_v0, %s5465_s12  ;;  %v2258_v21 = vsel %vm362_vm0, %v2184_v59, %v6532_v13 }
 0x247   : > { %1325 = vrot.lane.b32.xlu1 %v6689_v10, %s5466_s19  ;;  %v2355_v60 = vshll.u32 %v2258_v21, 16 }
 0x248   : > { %v6700_v51 = vpop.permute.xlu0 %3248  ;;  %v6702_v33 = vpop.permute.xlu1 %3252 }
 0x24a   : > { %1466 = vrot.lane.b32.xlu0 %v6710_v55, %s5465_s12 }
 0x24b   : > { %1321 = vrot.lane.b32.xlu1 %v6713_v63, %s5466_s19 }
 0x24c   : > { %v6719_v42 = vpop.permute.xlu1 %2121  ;;  %v4964_v8 = vpop.permute.xlu0 %4963 }
 0x24d   : > { %v4965_v37 = vunpack.i.l.bf16 %v4964_v8  ;;  %v4966_v38 = vunpack.i.h.bf16 %v4964_v8 }
 0x24e   : > { %3128 = vrot.lane.b32.xlu0 %v6713_v63, %s5466_s19 }
 0x24f   : > { %v1508_v30 = vsel %vm1034_vm1, %v6726_v40, %v4965_v37  ;;  %1472 = vrot.lane.b32.xlu1 %v6724_v9, %s5465_s12  ;;  %v1264_v37 = vshrl.u32 %v6692_v6, 16 }
 0x250   : > { %v1581_v18 = vsel %vm362_vm0, %v1508_v30, %v6510_v58  ;;  %v1443_v50 = vpop.permute.xlu1 %1442  ;;  %v4974_v22 = vpop.permute.xlu0 %4973  ;;  %v1689_v58 = vor.u32 %v1687_v47, %v1686_v35  ;;  %v2352_v35 = vshrl.u32 %v2258_v21, 16 }
 0x251   : > { %v4976_v28 = vunpack.i.h.bf16 %v4974_v22  ;;  %v1681_v44 = vshrl.u32 %v1581_v18, 16  ;;  %v6765_v29 = vor.u32 %v1264_v37, %v6721_v27 }
 0x252   : > { %5013 = vrot.lane.b32.xlu0 %v6745_v2, %s5466_s19  ;;  %v2354_v37 = vrot.slane %v2352_v35, 7 }
 0x253   : > { %v3322_v30 = vsel %vm1034_vm1, %v6741_v49, %v4976_v28  ;;  %1474 = vrot.lane.b32.xlu1 %v6750_v52, %s5465_s12  ;;  %v1683_v36 = vrot.slane %v1681_v44, 7  ;;  %v1513_v44 = vsel %vm1034_vm1, %v1128_v48, %v4966_v38  ;;  %v4975_v38 = vunpack.i.l.bf16 %v4974_v22 }
 0x254   : > { %v6760_v18 = vpop.permute.xlu1 %2117  ;;  %v6762_v6 = vpop.permute.xlu0 %1301 }
 0x255   : > { %v1690_v47 = vsel %vm1620_vm3, %v1683_v36, %v1689_v58  ;;  %v1585_v58 = vsel %vm362_vm0, %v1513_v44, %v6663_v56  ;;  %v3395_v36 = vsel %vm362_vm0, %v3322_v30, %v6647_v41 }
 0x256   : > { %4747 = vmatprep.mubr.msk.bf16.mxu1 %vm2484_vm4, %v1690_v47  ;;  %1329 = vrot.lane.b32.xlu0 %v6765_v29, %s5466_s19  ;;  %v1691_v22 = vshrl.u32 %v1585_v58, 16 }
 0x257   : > { %5018 = vrot.lane.b32.xlu1 %v6668_v14, %s5466_s19 }
 0x258   : > { %v4969_v28 = vpop.permute.xlu1 %4968  ;;  %v6774_v13 = vpop.permute.xlu0 %1977 }
 0x259   : > { %v4971_v8 = vunpack.i.h.bf16 %v4969_v28  ;;  %v4970_v59 = vunpack.i.l.bf16 %v4969_v28 }
 0x25a   : > { %3272 = vrot.lane.b32.xlu0 %v6710_v55, %s5465_s12 }
 0x25b   : > { %v3317_v47 = vsel %vm1034_vm1, %v1128_v48, %v4971_v8  ;;  %v2182_v14 = vsel %vm1034_vm1, %v6726_v40, %v4970_v59  ;;  %3266 = vrot.lane.b32.xlu1 %v6524_v31, %s5465_s12  ;;  %v2357_v59 = vor.u32 %v2355_v60, %v2354_v37 }
 0x25c   : > { %v2256_v35 = vsel %vm362_vm0, %v2182_v14, %v6516_v7  ;;  %v3109_v28 = vpop.permute.xlu1 %3108  ;;  %v1298_v43 = vpop.permute.xlu0 %1297  ;;  %v3494_v7 = vshrl.u32 %v3395_v36, 16 }
 0x25d   : > { %v3324_v56 = vsel %vm1034_vm1, %v6321_v46, %v3109_v28  ;;  %v1515_v41 = vsel %vm1034_vm1, %v6336_v12, %v1298_v43  ;;  %v2349_v30 = vshrl.u32 %v2256_v35, 16  ;;  %v2187_v28 = vsel %vm1034_vm1, %v1128_v48, %v4975_v38 }
 0x25e   : > { %v3397_v44 = vsel %vm362_vm0, %v3324_v56, %v6702_v33  ;;  %v1587_v8 = vsel %vm362_vm0, %v1515_v41, %v1443_v50  ;;  %2131 = vrot.lane.b32.xlu0 %v6548_v15, %s5465_s12  ;;  %v3391_v43 = vsel %vm362_vm0, %v3317_v47, %v6680_v4  ;;  %v1693_v48 = vrot.slane %v1691_v22, 7 }
 0x25f   : > { %v3497_v14 = vshrl.u32 %v3397_v44, 16  ;;  %v1694_v21 = vshrl.u32 %v1587_v8, 16  ;;  %3270 = vrot.lane.b32.xlu1 %v6683_v0, %s5465_s12  ;;  %v3500_v35 = vshll.u32 %v3397_v44, 16  ;;  %v2351_v56 = vrot.slane %v2349_v30, 7 }
 0x260   : > { %v3105_v33 = vpop.permute.xlu0 %3104  ;;  %v1697_v40 = vshll.u32 %v1587_v8, 16  ;;  %v3496_v4 = vrot.slane %v3494_v7, 7  ;;  %v3484_v30 = vshrl.u32 %v3391_v43, 16  ;;  %v2260_v44 = vsel %vm362_vm0, %v2187_v28, %v6678_v1 }
 0x261   : > { %v3499_v50 = vrot.slane %v3497_v14, 7  ;;  %v1696_v41 = vrot.slane %v1694_v21, 7  ;;  %v3319_v15 = vsel %vm1034_vm1, %v6336_v12, %v3105_v33  ;;  %v6805_v60 = vpop.permute.xlu1 %3258  ;;  %v2358_v58 = vsel %vm1620_vm3, %v2351_v56, %v2357_v59 }
 0x262   : > { %v3393_v37 = vsel %vm362_vm0, %v3319_v15, %v6700_v51  ;;  %2135 = vrot.lane.b32.xlu0 %v6524_v31, %s5465_s12  ;;  %4706 = vmatmul.mubr.msk.bf16.gmra.mrb[40].mxu0 %vm2484_vm4, %v2358_v58  ;;  %v3486_v28 = vrot.slane %v3484_v30, 7  ;;  %v1520_v58 = vsel %vm1034_vm1, %v6321_v46, %v6762_v6  ;;  %v6874_v46 = vld [vmem:[#allocation2 + $0x1a0] sm:$0xff]  ;;  %v5316_v6 = vld [vmem:[#allocation2 + $0xc8] sm:$0xff] }
 0x263   : > { %v3502_v36 = vor.u32 %v3500_v35, %v3499_v50  ;;  %v1699_v47 = vor.u32 %v1697_v40, %v1696_v41  ;;  %v3487_v38 = vshrl.u32 %v3393_v37, 16  ;;  %3132 = vrot.lane.b32.xlu1 %v6689_v10, %s5466_s19  ;;  %v3490_v51 = vshll.u32 %v3393_v37, 16 }
 0x264   : > { %v1974_v8 = vpop.permute.xlu0 %1973  ;;  %v5022_v41 = vpack.i.bf16 %v6670_v19, %v6649_v53  ;;  %v6861_v53 = vld [vmem:[#allocation2 + $0x188] sm:$0xff]  ;;  %v1591_v19 = vsel %vm362_vm0, %v1520_v58, %v6661_v32 }
 0x265   : > { %v3489_v59 = vrot.slane %v3487_v38, 7  ;;  %v2189_v31 = vsel %vm1034_vm1, %v6336_v12, %v1974_v8  ;;  %v6819_v22 = vpop.permute.xlu1 %1454  ;;  %v1700_v40 = vsel %vm1620_vm3, %v1693_v48, %v1699_v47  ;;  %v6823_v7 = vsel %vm1620_vm3, %v3496_v4, %v3502_v36 }
 0x266   : > { %v2262_v14 = vsel %vm362_vm0, %v2189_v31, %v6760_v18  ;;  %4748 = vmatmul.mubr.msk.bf16.gmra.mrb[12].mxu1 %vm2484_vm4, %v1700_v40  ;;  %1997 = vrot.lane.b32.xlu0 %v6713_v63, %s5466_s19  ;;  %v2359_v12 = vshrl.u32 %v2260_v44, 16  ;;  %v3069_v4 = vshll.u32 %v6861_v53, 16  ;;  %v2194_v47 = vsel %vm1034_vm1, %v5316_v6, %v6774_v13 }
 0x267   : > { %v3492_v1 = vor.u32 %v3490_v51, %v3489_v59  ;;  %v2362_v21 = vshrl.u32 %v2262_v14, 16  ;;  %2141 = vrot.lane.b32.xlu1 %v6710_v55, %s5465_s12  ;;  %v2365_v33 = vshll.u32 %v2262_v14, 16  ;;  %v1704_v38 = vshrl.u32 %v1591_v19, 16 }
 0x268   : > { %v6832_v43 = vpop.permute.xlu0 %1452  ;;  %v2361_v50 = vrot.slane %v2359_v12, 7  ;;  %v3072_v30 = vshrl.u32 %v6861_v53, 16  ;;  %v3076_v44 = vshll.u32 %v6874_v46, 16  ;;  %v2266_v51 = vsel %vm362_vm0, %v2194_v47, %v6719_v42 }
 0x269   : > { %v2364_v35 = vrot.slane %v2362_v21, 7  ;;  %v6834_v56 = vpop.permute.xlu1 %3254  ;;  %v6837_v18 = vsel %vm1620_vm3, %v3486_v28, %v3492_v1  ;;  %v1706_v59 = vrot.slane %v1704_v38, 7  ;;  %v2372_v31 = vshrl.u32 %v2266_v51, 16  ;;  %v2969_v38 = vld [vmem:[#allocation2 + $0x1a8] sm:$0xff] }
 0x26a   : > { %2001 = vrot.lane.b32.xlu0 %v6689_v10, %s5466_s19  ;;  %v6900_v42 = vrot.slane %v3076_v44, 1  ;;  %v1707_v21 = vshll.u32 %v1591_v19, 16 }
 0x26b   : > { %v2367_v63 = vor.u32 %v2365_v33, %v2364_v35  ;;  %3276 = vrot.lane.b32.xlu1 %v6656_v57, %s5465_s12  ;;  %v2374_v58 = vrot.slane %v2372_v31, 7 }
 0x26c   : > { %v6843_v55 = vpop.permute.xlu0 %2127 }
 0x26d   : > { %v6847_v15 = vpop.permute.xlu1 %3260  ;;  %v2368_v37 = vsel %vm1620_vm3, %v2361_v50, %v2367_v63  ;;  %v1709_v50 = vor.u32 %v1707_v21, %v1706_v59  ;;  %v3224_v21 = vrot.slane %v2969_v38, 1 }
 0x26e   : > { %4709 = vmatprep.mubr.msk.bf16.mxu0 %vm2484_vm4, %v2368_v37  ;;  %5023 = vrot.lane.b32.xlu0 %v5022_v41, %s5466_s19  ;;  %v1134_v41 = vld [vmem:[#allocation2 + $0xd8] sm:$0xff]  ;;  %v2966_v37 = vld [vmem:[#allocation2 + $0x190] sm:$0xff] }
 0x26f   : > { %2145 = vrot.lane.b32.xlu1 %v6656_v57, %s5465_s12 }
 0x270   : > { %v6854_v10 = vpop.permute.xlu0 %1448 }
 0x271   : > { %v6859_v48 = vpop.permute.xlu1 %2129 }
 0x272   : > { %3280 = vrot.lane.b32.xlu0 %v6750_v52, %s5465_s12 }
 0x273   : > { %5028 = vrot.lane.b32.xlu1 %v6745_v2, %s5466_s19  ;;  %v6884_v2 = vrot.slane %v3069_v4, 1 }
 0x274   : > { %v6869_v57 = vpop.permute.xlu0 %2123 }
 0x275   : > { %v6872_v36 = vpop.permute.xlu1 %2125  ;;  %v3074_v1 = vor.u32 %v3072_v30, %v6884_v2 }
 0x276   : > { %2139 = vrot.lane.b32.xlu0 %v6683_v0, %s5465_s12  ;;  %v3079_v0 = vshrl.u32 %v6874_v46, 16 }
 0x277   : > { %3274 = vrot.lane.b32.xlu1 %v6642_v11, %s5465_s12 }
 0x278   : > { %v6882_v32 = vpop.permute.xlu0 %1450  ;;  %v3081_v63 = vor.u32 %v3079_v0, %v6900_v42 }
 0x279   : > { %v4979_v8 = vpop.permute.xlu1 %4978 }
 0x27a   : > { %v4980_v13 = vunpack.i.l.bf16 %v4979_v8  ;;  %2143 = vrot.lane.b32.xlu0 %v6642_v11, %s5465_s12  ;;  %v4981_v30 = vunpack.i.h.bf16 %v4979_v8  ;;  %v2375_v8 = vshll.u32 %v2266_v51, 16 }
 0x27b   : > { %3278 = vrot.lane.b32.xlu1 %v6724_v9, %s5465_s12 }
 0x27c   : > { %v1518_v40 = vsel %vm1034_vm1, %v6741_v49, %v4980_v13  ;;  %v6897_v14 = vpop.permute.xlu0 %3256  ;;  %v2377_v51 = vor.u32 %v2375_v8, %v2374_v58 }
 0x27d   : > { %v1589_v11 = vsel %vm362_vm0, %v1518_v40, %v6629_v3  ;;  %v4984_v12 = vpop.permute.xlu1 %4983  ;;  %v6910_v3 = vld [vmem:[#allocation2 + $0xf0] sm:$0xff]  ;;  %v6923_v40 = vrot.slane %v6861_v53, 1 }
 0x27e   : > { %v4986_v28 = vunpack.i.h.bf16 %v4984_v12  ;;  %v4985_v35 = vunpack.i.l.bf16 %v4984_v12  ;;  %2009 = vrot.lane.b32.xlu0 %v3074_v1, %s5466_s19  ;;  %v1701_v33 = vshrl.u32 %v1589_v11, 16 }
 0x27f   : > { %3140 = vrot.lane.b32.xlu1 %v3074_v1, %s5466_s19  ;;  %v3221_v1 = vrot.slane %v2966_v37, 1 }
 0x280   : > { %v3327_v4 = vsel %vm1034_vm1, %v1134_v41, %v4986_v28  ;;  %v2192_v19 = vsel %vm1034_vm1, %v6741_v49, %v4985_v35  ;;  %v4989_v6 = vpop.permute.xlu0 %4988  ;;  %v1703_v47 = vrot.slane %v1701_v33, 7  ;;  %v5032_v28 = vpack.i.bf16 %v6884_v2, %v6721_v27 }
 0x281   : > { %v6914_v44 = vsel %vm362_vm0, %v3327_v4, %v6834_v56  ;;  %v2264_v13 = vsel %vm362_vm0, %v2192_v19, %v6645_v16  ;;  %v4991_v0 = vunpack.i.h.bf16 %v4989_v6  ;;  %v6918_v59 = vpop.permute.xlu1 %1309  ;;  %v3223_v16 = vrot.slane %v6874_v46, 1 }
 0x282   : > { %v1710_v31 = vsel %vm1620_vm3, %v1703_v47, %v1709_v50  ;;  %3144 = vrot.lane.b32.xlu0 %v3081_v63, %s5466_s19  ;;  %v2369_v49 = vshrl.u32 %v2264_v13, 16  ;;  %v1523_v35 = vsel %vm1034_vm1, %v1134_v41, %v4981_v30  ;;  %v4990_v33 = vunpack.i.l.bf16 %v4989_v6 }
 0x283   : > { %v3332_v56 = vsel %vm1034_vm1, %v6910_v3, %v4991_v0  ;;  %4751 = vmatprep.mubr.msk.bf16.mxu1 %vm2484_vm4, %v1710_v31  ;;  %2149 = vrot.lane.b32.xlu1 %v6750_v52, %s5465_s12  ;;  %v3222_v37 = vsel %vm1363_vm2, %v6923_v40, %v3221_v1  ;;  %v3225_v27 = vsel %vm1363_vm2, %v3223_v16, %v3224_v21  ;;  %v3504_v1 = vshrl.u32 %v6914_v44, 16 }
 0x284   : > { %v3403_v11 = vsel %vm362_vm0, %v3332_v56, %v6805_v60  ;;  %v6933_v12 = vpop.permute.xlu0 %1985  ;;  %v2371_v50 = vrot.slane %v2369_v49, 7  ;;  %v1593_v58 = vsel %vm362_vm0, %v1523_v35, %v6854_v10  ;;  %v2197_v47 = vsel %vm1034_vm1, %v1134_v41, %v4990_v33 }
 0x285   : > { %v3117_v63 = vpop.permute.xlu1 %3116  ;;  %v3514_v6 = vshrl.u32 %v3403_v11, 16  ;;  %v1711_v41 = vshrl.u32 %v1593_v58, 16  ;;  %v2268_v8 = vsel %vm362_vm0, %v2197_v47, %v6869_v57 }
 0x286   : > { %v3334_v52 = vsel %vm1034_vm1, %v6411_v54, %v3117_v63  ;;  %5033 = vrot.lane.b32.xlu0 %v5032_v28, %s5466_s19  ;;  %v2378_v4 = vsel %vm1620_vm3, %v2371_v50, %v2377_v51 }
 0x287   : > { %v3405_v60 = vsel %vm362_vm0, %v3334_v52, %v6847_v15  ;;  %3284 = vrot.lane.b32.xlu1 %v3222_v37, %s5465_s12  ;;  %4710 = vmatmul.mubr.msk.bf16.gmra.mrb[44].mxu0 %vm2484_vm4, %v2378_v4  ;;  %v3516_v11 = vrot.slane %v3514_v6, 7 }
 0x288   : > { %v3517_v54 = vshrl.u32 %v3405_v60, 16  ;;  %v3113_v19 = vpop.permute.xlu0 %3112  ;;  %v3520_v13 = vshll.u32 %v3405_v60, 16  ;;  %v3506_v60 = vrot.slane %v3504_v1, 7 }
 0x289   : > { %v3329_v15 = vsel %vm1034_vm1, %v6433_v23, %v3113_v19  ;;  %v1306_v38 = vpop.permute.xlu1 %1305 }
 0x28a   : > { %v3519_v30 = vrot.slane %v3517_v54, 7  ;;  %v3401_v0 = vsel %vm362_vm0, %v3329_v15, %v6897_v14  ;;  %v1525_v31 = vsel %vm1034_vm1, %v6433_v23, %v1306_v38  ;;  %3288 = vrot.lane.b32.xlu0 %v3225_v27, %s5465_s12 }
 0x28b   : > { %v3507_v10 = vshrl.u32 %v3401_v0, 16  ;;  %v1595_v49 = vsel %vm362_vm0, %v1525_v31, %v6882_v32  ;;  %2153 = vrot.lane.b32.xlu1 %v3222_v37, %s5465_s12  ;;  %v3510_v51 = vshll.u32 %v3401_v0, 16  ;;  %v5037_v32 = vpack.i.bf16 %v6900_v42, %v6884_v2  ;;  %v5317_v42 = vld [vmem:[#allocation2 + $0xf8] sm:$0xff] }
 0x28c   : > { %v3522_v56 = vor.u32 %v3520_v13, %v3519_v30  ;;  %v1714_v21 = vshrl.u32 %v1595_v49, 16  ;;  %v1982_v14 = vpop.permute.xlu0 %1981  ;;  %v1717_v50 = vshll.u32 %v1595_v49, 16  ;;  %v1713_v2 = vrot.slane %v1711_v41, 7 }
 0x28d   : > { %v3509_v28 = vrot.slane %v3507_v10, 7  ;;  %v2199_v35 = vsel %vm1034_vm1, %v6433_v23, %v1982_v14  ;;  %v6969_v33 = vpop.permute.xlu1 %1460  ;;  %v2379_v23 = vshrl.u32 %v2268_v8, 16 }
 0x28e   : > { %v1716_v63 = vrot.slane %v1714_v21, 7  ;;  %v2270_v44 = vsel %vm362_vm0, %v2199_v35, %v6872_v36  ;;  %3136 = vrot.lane.b32.xlu0 %v6765_v29, %s5466_s19  ;;  %v6978_v57 = vsel %vm1620_vm3, %v3516_v11, %v3522_v56  ;;  %v1530_v36 = vsel %vm1034_vm1, %v5317_v42, %v6918_v59  ;;  %v7013_v11 = vld [vmem:[#allocation2 + $0x108] sm:$0xff] }
 0x28f   : > { %v3512_v52 = vor.u32 %v3510_v51, %v3509_v28  ;;  %v2382_v37 = vshrl.u32 %v2270_v44, 16  ;;  %5038 = vrot.lane.b32.xlu1 %v5037_v32, %s5466_s19  ;;  %v2385_v54 = vshll.u32 %v2270_v44, 16  ;;  %v2381_v38 = vrot.slane %v2379_v23, 7 }
 0x290   : > { %v1719_v4 = vor.u32 %v1717_v50, %v1716_v63  ;;  %v6981_v27 = vpop.permute.xlu0 %1462  ;;  %v1599_v59 = vsel %vm362_vm0, %v1530_v36, %v6819_v22 }
 0x291   : > { %v2384_v58 = vrot.slane %v2382_v37, 7  ;;  %v1457_v19 = vpop.permute.xlu1 %1456  ;;  %v6986_v6 = vsel %vm1620_vm3, %v3506_v60, %v3512_v52 }
 0x292   : > { %v1720_v47 = vsel %vm1620_vm3, %v1713_v2, %v1719_v4  ;;  %2147 = vrot.lane.b32.xlu0 %v6724_v9, %s5465_s12  ;;  %v1724_v9 = vshrl.u32 %v1599_v59, 16 }
 0x293   : > { %v2387_v15 = vor.u32 %v2385_v54, %v2384_v58  ;;  %4752 = vmatmul.mubr.msk.bf16.gmra.mrb[16].mxu1 %vm2484_vm4, %v1720_v47  ;;  %3282 = vrot.lane.b32.xlu1 %v6923_v40, %s5465_s12 }
 0x294   : > { %v3265_v30 = vpop.permute.xlu0 %3264  ;;  %v1726_v22 = vrot.slane %v1724_v9, 7 }
 0x295   : > { %v3263_v13 = vpop.permute.xlu1 %3262  ;;  %v2388_v0 = vsel %vm1620_vm3, %v2381_v38, %v2387_v15 }
 0x296   : > { %4713 = vmatprep.mubr.msk.bf16.mxu0 %vm2484_vm4, %v2388_v0  ;;  %2005 = vrot.lane.b32.xlu0 %v6765_v29, %s5466_s19  ;;  %v1727_v29 = vshll.u32 %v1599_v59, 16  ;;  %s7924_s19 = scalar_lea.hbm %s7980_s7, %s4579_s20 }
 0x297   : > { %3286 = vrot.lane.b32.xlu1 %v3223_v16, %s5465_s12 }
 0x298   : > { %v4994_v31 = vpop.permute.xlu0 %4993  ;;  %v1729_v14 = vor.u32 %v1727_v29, %v1726_v22 }
 0x299   : > { %v3269_v10 = vpop.permute.xlu1 %3268  ;;  %v4995_v49 = vunpack.i.l.bf16 %v4994_v31  ;;  %v4996_v16 = vunpack.i.h.bf16 %v4994_v31 }
 0x29a   : > { %2151 = vrot.lane.b32.xlu0 %v6923_v40, %s5465_s12  ;;  %v2204_v40 = vsel %vm1034_vm1, %v5317_v42, %v6933_v12 }
 0x29b   : > { %v1528_v41 = vsel %vm1034_vm1, %v6910_v3, %v4995_v49  ;;  %v2274_v63 = vsel %vm362_vm0, %v2204_v40, %v6859_v48 }
 0x29c   : > { %v1597_v1 = vsel %vm362_vm0, %v1528_v41, %v6832_v43  ;;  %v7009_v8 = vpop.permute.xlu0 %5003  ;;  %v1533_v43 = vsel %vm1034_vm1, %v7013_v11, %v4996_v16  ;;  %v2392_v37 = vshrl.u32 %v2274_v63, 16  ;;  %v2395_v54 = vshll.u32 %v2274_v63, 16 }
 0x29d   : > { %v7011_v56 = vpop.permute.xlu1 %2137  ;;  %v1721_v21 = vshrl.u32 %v1597_v1, 16  ;;  %v1601_v44 = vsel %vm362_vm0, %v1533_v43, %v1457_v19 }
 0x29e   : > { %v1731_v12 = vshrl.u32 %v1601_v44, 16  ;;  %v2394_v58 = vrot.slane %v2392_v37, 7 }
 0x29f   : > { %v1723_v28 = vrot.slane %v1721_v21, 7 }
 0x2a0   : > { %v1318_v51 = vpop.permute.xlu0 %1317  ;;  %v1733_v59 = vrot.slane %v1731_v12, 7 }
 0x2a1   : > { %v1459_v35 = vpop.permute.xlu1 %1458  ;;  %v1730_v32 = vsel %vm1620_vm3, %v1723_v28, %v1729_v14  ;;  %v1540_v41 = vsel %vm1034_vm1, %v6520_v25, %v1318_v51  ;;  %v5318_v14 = vld [vmem:[#allocation2 + $0x38] sm:$0xff] }
 0x2a2   : > { %4755 = vmatprep.mubr.msk.bf16.mxu1 %vm2484_vm4, %v1730_v32  ;;  %v3294_v28 = vsel %vm1034_vm1, %v5318_v14, %v6379_v61 }
 0x2a3   : > { %v3373_v37 = vsel %vm362_vm0, %v3294_v28, %v6338_v17  ;;  %v8013_v28 = vld [vmem:[#allocation23_spill] sm:$0xff] }
 0x2a4   : > { %v7023_v50 = vpop.permute.xlu0 %1993 }
 0x2a5   : > { %v7026_v52 = vpop.permute.xlu1 %2133 }
 0x2a8   : > { %v1314_v23 = vpop.permute.xlu0 %1313 }
 0x2a9   : > { %v4999_v60 = vpop.permute.xlu1 %4998  ;;  %v1535_v4 = vsel %vm1034_vm1, %v6526_v24, %v1314_v23 }
 0x2aa   : > { %v5001_v2 = vunpack.i.h.bf16 %v4999_v60  ;;  %v5000_v42 = vunpack.i.l.bf16 %v4999_v60  ;;  %v1603_v36 = vsel %vm362_vm0, %v1535_v4, %v1459_v35  ;;  %v5319_v4 = vld [vmem:[#allocation2 + $0x30] sm:$0xff] }
 0x2ab   : > { %v1734_v48 = vshrl.u32 %v1603_v36, 16  ;;  %v1737_v15 = vshll.u32 %v1603_v36, 16  ;;  %v3437_v36 = vshrl.u32 %v3373_v37, 16 }
 0x2ac   : > { %v3337_v47 = vsel %vm1034_vm1, %v7013_v11, %v5001_v2  ;;  %v2202_v19 = vsel %vm1034_vm1, %v6910_v3, %v5000_v42  ;;  %v3121_v38 = vpop.permute.xlu0 %3120 }
 0x2ad   : > { %v3407_v0 = vsel %vm362_vm0, %v3337_v47, %v3263_v13  ;;  %v2272_v9 = vsel %vm362_vm0, %v2202_v19, %v6843_v55  ;;  %v1736_v31 = vrot.slane %v1734_v48, 7  ;;  %v3125_v49 = vpop.permute.xlu1 %3124  ;;  %v3339_v22 = vsel %vm1034_vm1, %v6526_v24, %v3121_v38 }
 0x2ae   : > { %v3344_v1 = vsel %vm1034_vm1, %v6520_v25, %v3125_v49  ;;  %v3409_v3 = vsel %vm362_vm0, %v3339_v22, %v3265_v30  ;;  %v2389_v29 = vshrl.u32 %v2272_v9, 16  ;;  %v3524_v55 = vshrl.u32 %v3407_v0, 16 }
 0x2af   : > { %v1739_v21 = vor.u32 %v1737_v15, %v1736_v31  ;;  %v7046_v13 = vsel %vm362_vm0, %v3344_v1, %v3269_v10  ;;  %v3527_v16 = vshrl.u32 %v3409_v3, 16  ;;  %v2397_v24 = vor.u32 %v2395_v54, %v2394_v58  ;;  %v7067_v58 = vld [vmem:[#allocation2 + $0x120] sm:$0xff]  ;;  %v7069_v54 = vld [vmem:[#allocation2 + $0x138] sm:$0xff] }
 0x2b0   : > { %v7050_v40 = vpop.permute.xlu0 %1989  ;;  %v2391_v51 = vrot.slane %v2389_v29, 7  ;;  %v1607_v25 = vsel %vm362_vm0, %v1540_v41, %v6981_v27  ;;  %v3530_v30 = vshll.u32 %v3409_v3, 16  ;;  %v4931_v10 = vunpack.i.h.bf16 %v6357_v20 }
 0x2b1   : > { %v3529_v35 = vrot.slane %v3527_v16, 7  ;;  %v1471_v32 = vpop.permute.xlu1 %1470  ;;  %v1740_v43 = vsel %vm1620_vm3, %v1733_v59, %v1739_v21  ;;  %v3526_v61 = vrot.slane %v3524_v55, 7  ;;  %v1744_v23 = vshrl.u32 %v1607_v25, 16  ;;  %v8012_v55 = vld [vmem:[#allocation13_spill] sm:$0xff] }
 0x2b2   : > { %v2398_v63 = vsel %vm1620_vm3, %v2391_v51, %v2397_v24  ;;  %4756 = vmatmul.mubr.msk.bf16.gmra.mrb[20].mxu1 %vm2484_vm4, %v1740_v43  ;;  %v3292_v20 = vsel %vm1034_vm1, %v5319_v4, %v4931_v10  ;;  %v4946_v59 = vunpack.i.h.bf16 %v6443_v5  ;;  %v1747_v0 = vshll.u32 %v1607_v25, 16  ;;  %v8014_v51 = vld [vmem:[#allocation12_spill] sm:$0xff] }
 0x2b3   : > { %v3532_v44 = vor.u32 %v3530_v30, %v3529_v35  ;;  %4714 = vmatmul.mubr.msk.bf16.gmra.mrb[48].mxu0 %vm2484_vm4, %v2398_v63  ;;  %v1746_v48 = vrot.slane %v1744_v23, 7  ;;  %v3371_v38 = vsel %vm362_vm0, %v3292_v20, %v6323_v39  ;;  %v3439_v49 = vrot.slane %v3437_v36, 7  ;;  %v8015_v30 = vld [vmem:[#allocation14_spill] sm:$0xff]  ;;  %v8016_v23 = vld [vmem:[#allocation9_spill] sm:$0xff]  ;;  %v5321_v4 = vld [vmem:[#allocation2 + $0x48] sm:$0xff] }
 0x2b4   : > { %v7061_v27 = vpop.permute.xlu0 %1468  ;;  %v3304_v22 = vsel %vm1034_vm1, %v6540_v45, %v6474_v62  ;;  %v3434_v21 = vshrl.u32 %v3371_v38, 16  ;;  %v3302_v16 = vsel %vm1034_vm1, %v6571_v26, %v4946_v59  ;;  %v4941_v14 = vunpack.i.h.bf16 %v8012_v55  ;;  %v7115_v38 = vld [vmem:[#allocation2 + $0x168] sm:$0xff] }
 0x2b5   : > { %v5009_v12 = vpop.permute.xlu1 %5008  ;;  %v7064_v60 = vsel %vm1620_vm3, %v3526_v61, %v3532_v44  ;;  %v1749_v41 = vor.u32 %v1747_v0, %v1746_v48  ;;  %v7094_v25 = vsel %vm362_vm0, %v3304_v22, %v8014_v51  ;;  %v8017_v48 = vld [vmem:[#allocation11_spill] sm:$0xff] }
 0x2b6   : > { %v5011_v2 = vunpack.i.h.bf16 %v5009_v12  ;;  %v5010_v42 = vunpack.i.l.bf16 %v5009_v12  ;;  %v7105_v12 = vsel %vm362_vm0, %v3302_v16, %v8016_v23  ;;  %v3297_v20 = vsel %vm1034_vm1, %v5321_v4, %v4941_v14  ;;  %v8020_v4 = vld [vmem:[#allocation19_spill] sm:$0xff] }
 0x2b7   : > { %v3460_v22 = vshll.u32 %v7094_v25, 16  ;;  %v5006_v16 = vunpack.i.h.bf16 %v7009_v8 }
 0x2b8   : > { %v1538_v17 = vsel %vm1034_vm1, %v7067_v58, %v5010_v42  ;;  %v1465_v47 = vpop.permute.xlu0 %1464  ;;  %v1543_v9 = vsel %vm1034_vm1, %v7069_v54, %v5011_v2  ;;  %v3457_v2 = vshrl.u32 %v7094_v25, 16 }
 0x2b9   : > { %v1605_v19 = vsel %vm362_vm0, %v1538_v17, %v6969_v33  ;;  %v1326_v15 = vpop.permute.xlu1 %1325  ;;  %v3440_v33 = vshll.u32 %v3373_v37, 16  ;;  %v1609_v29 = vsel %vm362_vm0, %v1543_v9, %v1465_v47  ;;  %v3436_v37 = vrot.slane %v3434_v21, 7 }
 0x2ba   : > { %v1741_v31 = vshrl.u32 %v1605_v19, 16  ;;  %v1550_v39 = vsel %vm1034_vm1, %v6635_v34, %v1326_v15  ;;  %v5320_v34 = vld [vmem:[#allocation2 + $0x50] sm:$0xff]  ;;  %v1751_v43 = vshrl.u32 %v1609_v29, 16  ;;  %v3454_v9 = vshrl.u32 %v7105_v12, 16 }
 0x2bb   : > { %v3442_v45 = vor.u32 %v3440_v33, %v3439_v49  ;;  %v3299_v26 = vsel %vm1034_vm1, %v5320_v34, %v8015_v30  ;;  %v1615_v10 = vsel %vm362_vm0, %v1550_v39, %v1471_v32  ;;  %v7113_v15 = vld [vmem:[#allocation2 + $0x150] sm:$0xff]  ;;  %v7126_v33 = vrot.slane %v3457_v2, 7 }
 0x2bc   : > { %v1467_v1 = vpop.permute.xlu0 %1466  ;;  %v1743_v3 = vrot.slane %v1741_v31, 7  ;;  %v7111_v17 = vsel %vm362_vm0, %v3299_v26, %v8017_v48  ;;  %v1764_v32 = vshrl.u32 %v1615_v10, 16  ;;  %v1753_v47 = vrot.slane %v1751_v43, 7  ;;  %v8018_v31 = vld [vmem:[#allocation10_spill] sm:$0xff]  ;;  %v5322_v39 = vld [vmem:[#allocation2 + $0x110] sm:$0xff]  ;;  %v8019_v43 = vld [vmem:[#allocation24_spill] sm:$0xff] }
 0x2bd   : > { %v1322_v5 = vpop.permute.xlu1 %1321  ;;  %v7118_v0 = vsel %vm1620_vm3, %v3436_v37, %v3442_v45  ;;  %v7123_v49 = vsel %vm362_vm0, %v3297_v20, %v8018_v31  ;;  %v3447_v29 = vshrl.u32 %v7111_v17, 16  ;;  %v3537_v45 = vshrl.u32 %v7046_v13, 16 }
 0x2be   : > { %v1545_v24 = vsel %vm1034_vm1, %v8013_v28, %v1322_v5  ;;  %v1750_v62 = vsel %vm1620_vm3, %v1743_v3, %v1749_v41  ;;  %v2209_v5 = vsel %vm1034_vm1, %v5322_v39, %v7050_v40  ;;  %v1766_v55 = vrot.slane %v1764_v32, 7  ;;  %v8023_v39 = vld [vmem:[#allocation26_spill] sm:$0xff] }
 0x2bf   : > { %v1611_v35 = vsel %vm362_vm0, %v1545_v24, %v1467_v1  ;;  %4759 = vmatprep.mubr.msk.bf16.mxu1 %vm2484_vm4, %v1750_v62  ;;  %v5323_v24 = vld [vmem:[#allocation2 + $0x128] sm:$0xff]  ;;  %v2278_v34 = vsel %vm362_vm0, %v2209_v5, %v7026_v52  ;;  %v1767_v30 = vshll.u32 %v1615_v10, 16  ;;  %v3449_v23 = vrot.slane %v3447_v29, 7  ;;  %v8022_v29 = vld [vmem:[#allocation21_spill] sm:$0xff]  ;;  %v5324_v5 = vld [vmem:[#allocation2 + $0x80] sm:$0xff] }
 0x2c0   : > { %v1754_v63 = vshrl.u32 %v1611_v35, 16  ;;  %v7101_v44 = vpop.permute.xlu0 %3128  ;;  %v1757_v36 = vshll.u32 %v1611_v35, 16  ;;  %v2214_v62 = vsel %vm1034_vm1, %v5323_v24, %v7023_v50  ;;  %v3450_v50 = vshll.u32 %v7111_v17, 16 }
 0x2c1   : > { %v1473_v61 = vpop.permute.xlu1 %1472  ;;  %v4956_v20 = vunpack.i.h.bf16 %v8020_v4  ;;  %v1769_v2 = vor.u32 %v1767_v30, %v1766_v55  ;;  %v5005_v52 = vunpack.i.l.bf16 %v7009_v8  ;;  %v2282_v10 = vsel %vm362_vm0, %v2214_v62, %v7011_v56  ;;  %v8024_v56 = vld [vmem:[#allocation22_spill] sm:$0xff] }
 0x2c2   : > { %v1756_v42 = vrot.slane %v1754_v63, 7  ;;  %v2402_v48 = vshrl.u32 %v2278_v34, 16  ;;  %v3342_v32 = vsel %vm1034_vm1, %v7067_v58, %v5006_v16  ;;  %v3539_v17 = vrot.slane %v3537_v45, 7 }
 0x2c3   : > { %v3314_v8 = vsel %vm1034_vm1, %v8023_v39, %v8022_v29  ;;  %v3540_v55 = vshll.u32 %v7046_v13, 16  ;;  %v2412_v62 = vshrl.u32 %v2282_v10, 16  ;;  %v3444_v13 = vshrl.u32 %v7123_v49, 16 }
 0x2c4   : > { %v1759_v19 = vor.u32 %v1757_v36, %v1756_v42  ;;  %v5014_v59 = vpop.permute.xlu0 %5013  ;;  %v2404_v45 = vrot.slane %v2402_v48, 7 }
 0x2c5   : > { %v1475_v41 = vpop.permute.xlu1 %1474  ;;  %v5016_v1 = vunpack.i.h.bf16 %v5014_v59  ;;  %v5015_v3 = vunpack.i.l.bf16 %v5014_v59  ;;  %v3542_v30 = vor.u32 %v3540_v55, %v3539_v17 }
 0x2c6   : > { %v1760_v21 = vsel %vm1620_vm3, %v1753_v47, %v1759_v19 }
 0x2c7   : > { %v1553_v14 = vsel %vm1034_vm1, %v7115_v38, %v5016_v1  ;;  %v1548_v28 = vsel %vm1034_vm1, %v7113_v15, %v5015_v3  ;;  %4760 = vmatmul.mubr.msk.bf16.gmra.mrb[24].mxu1 %vm2484_vm4, %v1760_v21  ;;  %v8021_v1 = vld [vmem:[#allocation20_spill] sm:$0xff]  ;;  %v3309_v21 = vsel %vm1034_vm1, %v5324_v5, %v8024_v56 }
 0x2c8   : > { %v1617_v40 = vsel %vm362_vm0, %v1553_v14, %v1473_v61  ;;  %v1613_v51 = vsel %vm362_vm0, %v1548_v28, %v7061_v27  ;;  %v1330_v35 = vpop.permute.xlu0 %1329  ;;  %v4961_v3 = vunpack.i.h.bf16 %v8021_v1  ;;  %v2415_v1 = vshll.u32 %v2282_v10, 16  ;;  %v8029_v10 = vld [vmem:[#allocation15_spill] sm:$0xff] }
 0x2c9   : > { %v7146_v26 = vpop.permute.xlu1 %5018  ;;  %v1555_v63 = vsel %vm1034_vm1, %v8019_v43, %v1330_v35  ;;  %v1761_v37 = vshrl.u32 %v1613_v51, 16  ;;  %v1771_v36 = vshrl.u32 %v1617_v40, 16  ;;  %v2207_v51 = vsel %vm1034_vm1, %v7013_v11, %v5005_v52  ;;  %v8026_v52 = vld [vmem:[#allocation17_spill] sm:$0xff] }
 0x2ca   : > { %v1619_v61 = vsel %vm362_vm0, %v1555_v63, %v1475_v41  ;;  %v5020_v40 = vunpack.i.l.bf16 %v7146_v26  ;;  %v3462_v11 = vor.u32 %v3460_v22, %v7126_v33  ;;  %v3389_v48 = vsel %vm362_vm0, %v3314_v8, %v8026_v52  ;;  %v8027_v22 = vld [vmem:[#allocation25_spill] sm:$0xff] }
 0x2cb   : > { %v1774_v27 = vshrl.u32 %v1619_v61, 16  ;;  %v1763_v42 = vrot.slane %v1761_v37, 7  ;;  %v1777_v59 = vshll.u32 %v1619_v61, 16  ;;  %v1773_v24 = vrot.slane %v1771_v36, 7  ;;  %v8025_v61 = vld [vmem:[#allocation18_spill] sm:$0xff] }
 0x2cc   : > { %v7158_v47 = vpop.permute.xlu0 %3272  ;;  %v3452_v36 = vor.u32 %v3450_v50, %v3449_v23  ;;  %v3312_v33 = vsel %vm1034_vm1, %v8027_v22, %v4961_v3  ;;  %v3446_v8 = vrot.slane %v3444_v13, 7  ;;  %v8028_v3 = vld [vmem:[#allocation16_spill] sm:$0xff] }
 0x2cd   : > { %v1776_v19 = vrot.slane %v1774_v27, 7  ;;  %v3267_v31 = vpop.permute.xlu1 %3266  ;;  %v1770_v41 = vsel %vm1620_vm3, %v1763_v42, %v1769_v2  ;;  %v3385_v2 = vsel %vm362_vm0, %v3309_v21, %v8025_v61  ;;  %v2405_v27 = vshll.u32 %v2278_v34, 16 }
 0x2ce   : > { %v3411_v16 = vsel %vm362_vm0, %v3342_v32, %v3267_v31  ;;  %4763 = vmatprep.mubr.msk.bf16.mxu1 %vm2484_vm4, %v1770_v41  ;;  %v2414_v32 = vrot.slane %v2412_v62, 7  ;;  %v5325_v31 = vld [vmem:[#allocation2 + $0x78] sm:$0xff]  ;;  %v3467_v23 = vshrl.u32 %v3385_v2, 16  ;;  %v3477_v41 = vshrl.u32 %v3389_v48, 16 }
 0x2cf   : > { %v1779_v14 = vor.u32 %v1777_v59, %v1776_v19  ;;  %v3534_v28 = vshrl.u32 %v3411_v16, 16  ;;  %v2407_v17 = vor.u32 %v2405_v27, %v2404_v45  ;;  %v2212_v19 = vsel %vm1034_vm1, %v7067_v58, %v5020_v40 }
 0x2d0   : > { %v2132_v35 = vpop.permute.xlu0 %2131  ;;  %v3307_v25 = vsel %vm1034_vm1, %v5325_v31, %v4956_v20  ;;  %v2417_v58 = vor.u32 %v2415_v1, %v2414_v32  ;;  %v3456_v20 = vrot.slane %v3454_v9, 7  ;;  %v3469_v16 = vrot.slane %v3467_v23, 7 }
 0x2d1   : > { %v3536_v43 = vrot.slane %v3534_v28, 7  ;;  %v7173_v63 = vpop.permute.xlu1 %3270  ;;  %v2276_v37 = vsel %vm362_vm0, %v2207_v51, %v2132_v35  ;;  %v1780_v4 = vsel %vm1620_vm3, %v1773_v24, %v1779_v14  ;;  %v3383_v21 = vsel %vm362_vm0, %v3307_v25, %v8028_v3 }
 0x2d2   : > { %v2399_v42 = vshrl.u32 %v2276_v37, 16  ;;  %4764 = vmatmul.mubr.msk.bf16.gmra.mrb[28].mxu1 %vm2484_vm4, %v1780_v4  ;;  %v3453_v14 = vsel %vm1620_vm3, %v3446_v8, %v3452_v36  ;;  %v3387_v28 = vsel %vm362_vm0, %v3312_v33, %v8029_v10  ;;  %v3479_v24 = vrot.slane %v3477_v41, 7  ;;  %v5326_v4 = vld [vmem:[#allocation2 + $0x140] sm:$0xff] }
 0x2d3   : > { %4773 = vmatprep.mubr.msk.bf16.mxu1 %vm2484_vm4, %v7118_v0  ;;  %v7189_v49 = vsel %vm1620_vm3, %v3536_v43, %v3542_v30  ;;  %v3463_v45 = vsel %vm1620_vm3, %v3456_v20, %v3462_v11  ;;  %v3470_v40 = vshll.u32 %v3385_v2, 16  ;;  %v3464_v12 = vshrl.u32 %v3383_v21, 16 }
 0x2d4   : > { %v2401_v34 = vrot.slane %v2399_v42, 7  ;;  %v2136_v59 = vpop.permute.xlu0 %2135  ;;  %v3480_v9 = vshll.u32 %v3389_v48, 16  ;;  %v3474_v35 = vshrl.u32 %v3387_v28, 16 }
 0x2d5   : > { %v7196_v50 = vpop.permute.xlu1 %3132  ;;  %v2280_v0 = vsel %vm362_vm0, %v2212_v19, %v2136_v59  ;;  %v3472_v30 = vor.u32 %v3470_v40, %v3469_v16  ;;  %v3466_v61 = vrot.slane %v3464_v12, 7 }
 0x2d6   : > { %v2409_v29 = vshrl.u32 %v2280_v0, 16  ;;  %v2408_v39 = vsel %vm1620_vm3, %v2401_v34, %v2407_v17  ;;  %v3482_v37 = vor.u32 %v3480_v9, %v3479_v24  ;;  %v3476_v42 = vrot.slane %v3474_v35, 7  ;;  %v5327_v34 = vld [vmem:[#allocation2 + $0x158] sm:$0xff] }
 0x2d7   : > { %4717 = vmatprep.mubr.msk.bf16.mxu0 %vm2484_vm4, %v2408_v39  ;;  %v3473_v36 = vsel %vm1620_vm3, %v3466_v61, %v3472_v30  ;;  %v3349_v35 = vsel %vm1034_vm1, %v5326_v4, %v7101_v44 }
 0x2d8   : > { %v2411_v5 = vrot.slane %v2409_v29, 7  ;;  %v1998_v56 = vpop.permute.xlu0 %1997  ;;  %v3483_v48 = vsel %vm1620_vm3, %v3476_v42, %v3482_v37  ;;  %v3417_v30 = vsel %vm362_vm0, %v3349_v35, %v7158_v47 }
 0x2d9   : > { %v2142_v55 = vpop.permute.xlu1 %2141  ;;  %v2219_v13 = vsel %vm1034_vm1, %v5326_v4, %v1998_v56  ;;  %v3547_v4 = vshrl.u32 %v3417_v30, 16 }
 0x2da   : > { %4774 = vmatmul.mubr.msk.bf16.vlgmr.msra.gmra.mrb[0].mxu1 %vm2484_vm4, %v3453_v14  ;;  %v2418_v62 = vsel %vm1620_vm3, %v2411_v5, %v2417_v58  ;;  %v2286_v11 = vsel %vm362_vm0, %v2219_v13, %v2142_v55 }
 0x2db   : > { %4718 = vmatmul.mubr.msk.bf16.gmra.mrb[52].mxu0 %vm2484_vm4, %v2418_v62  ;;  %4777 = vmatprep.mubr.msk.bf16.mxu1 %vm2484_vm4, %v3463_v45  ;;  %v2422_v17 = vshrl.u32 %v2286_v11, 16  ;;  %v2425_v5 = vshll.u32 %v2286_v11, 16 }
 0x2dc   : > { %v2002_v51 = vpop.permute.xlu0 %2001 }
 0x2dd   : > { %v3277_v43 = vpop.permute.xlu1 %3276  ;;  %v2224_v19 = vsel %vm1034_vm1, %v5327_v34, %v2002_v51  ;;  %v2424_v0 = vrot.slane %v2422_v17, 7 }
 0x2df   : > { %v2427_v20 = vor.u32 %v2425_v5, %v2424_v0 }
 0x2e0   : > { %v5024_v27 = vpop.permute.xlu0 %5023 }
 0x2e1   : > { %v2146_v2 = vpop.permute.xlu1 %2145  ;;  %v7216_v52 = vpop.f32.mrb[32].mxu0  ;;  %v5025_v59 = vunpack.i.l.bf16 %v5024_v27  ;;  %v5026_v9 = vunpack.i.h.bf16 %v5024_v27 }
 0x2e2   : > { %4778 = vmatmul.mubr.msk.bf16.gmra.mrb[4].mxu1 %vm2484_vm4, %v3473_v36  ;;  %v7220_v32 = vpop.f32.mrb[33].mxu0  ;;  %v2290_v22 = vsel %vm362_vm0, %v2224_v19, %v2146_v2 }
 0x2e3   : > { %4781 = vmatprep.mubr.msk.bf16.mxu1 %vm2484_vm4, %v3483_v48  ;;  %v7224_v31 = vpop.f32.mrb[34].mxu0  ;;  %v2432_v41 = vshrl.u32 %v2290_v22, 16  ;;  %v2217_v39 = vsel %vm1034_vm1, %v7069_v54, %v5025_v59  ;;  %v2435_v28 = vshll.u32 %v2290_v22, 16  ;;  %v3550_v48 = vshll.u32 %v3417_v30, 16 }
 0x2e4   : > { %v7226_v25 = vpop.permute.xlu0 %3280  ;;  %v7229_v33 = vpop.f32.mrb[35].mxu0 }
 0x2e5   : > { %v7231_v23 = vpop.permute.xlu1 %5028  ;;  %v2434_v3 = vrot.slane %v2432_v41, 7 }
 0x2e6   : > { %v5030_v1 = vunpack.i.l.bf16 %v7231_v23 }
 0x2e8   : > { %v2140_v29 = vpop.permute.xlu0 %2139  ;;  %v2222_v16 = vsel %vm1034_vm1, %v7113_v15, %v5030_v1 }
 0x2e9   : > { %v3275_v8 = vpop.permute.xlu1 %3274  ;;  %v2284_v58 = vsel %vm362_vm0, %v2217_v39, %v2140_v29 }
 0x2ea   : > { %v2419_v56 = vshrl.u32 %v2284_v58, 16  ;;  %4782 = vmatmul.mubr.msk.bf16.gmra.mrb[8].mxu1 %vm2484_vm4, %v6837_v18  ;;  %v2437_v18 = vor.u32 %v2435_v28, %v2434_v3 }
 0x2eb   : > { %4785 = vmatprep.mubr.msk.bf16.mxu1 %vm2484_vm4, %v6823_v7  ;;  %v5021_v7 = vunpack.i.h.bf16 %v7146_v26  ;;  %v3354_v26 = vsel %vm1034_vm1, %v5327_v34, %v7196_v50 }
 0x2ec   : > { %v2421_v21 = vrot.slane %v2419_v56, 7  ;;  %v2144_v55 = vpop.permute.xlu0 %2143  ;;  %v3421_v13 = vsel %vm362_vm0, %v3354_v26, %v3277_v43  ;;  %v5031_v43 = vunpack.i.h.bf16 %v7231_v23  ;;  %v2964_v56 = vld [vmem:[#allocation2 + $0x180] sm:$0xff]  ;;  %v2967_v26 = vld [vmem:[#allocation2 + $0x198] sm:$0xff] }
 0x2ed   : > { %v3279_v14 = vpop.permute.xlu1 %3278  ;;  %v2288_v10 = vsel %vm362_vm0, %v2222_v16, %v2144_v55  ;;  %v3557_v27 = vshrl.u32 %v3421_v13, 16  ;;  %v3560_v59 = vshll.u32 %v3421_v13, 16 }
 0x2ee   : > { %v2429_v24 = vshrl.u32 %v2288_v10, 16  ;;  %v2428_v62 = vsel %vm1620_vm3, %v2421_v21, %v2427_v20 }
 0x2ef   : > { %4721 = vmatprep.mubr.msk.bf16.mxu0 %vm2484_vm4, %v2428_v62 }
 0x2f0   : > { %v2431_v45 = vrot.slane %v2429_v24, 7  ;;  %v2010_v40 = vpop.permute.xlu0 %2009 }
 0x2f1   : > { %v3141_v12 = vpop.permute.xlu1 %3140  ;;  %v2234_v28 = vsel %vm1034_vm1, %v6861_v53, %v2010_v40 }
 0x2f2   : > { %4786 = vmatmul.mubr.msk.bf16.gmra.mrb[12].mxu1 %vm2484_vm4, %v6986_v6  ;;  %v2438_v51 = vsel %vm1620_vm3, %v2431_v45, %v2437_v18  ;;  %v3347_v6 = vsel %vm1034_vm1, %v7069_v54, %v5021_v7  ;;  %v3549_v54 = vrot.slane %v3547_v4, 7 }
 0x2f3   : > { %4722 = vmatmul.mubr.msk.bf16.gmra.mrb[56].mxu0 %vm2484_vm4, %v2438_v51  ;;  %4789 = vmatprep.mubr.msk.bf16.mxu1 %vm2484_vm4, %v6978_v57  ;;  %v3415_v44 = vsel %vm362_vm0, %v3347_v6, %v7173_v63  ;;  %v3352_v57 = vsel %vm1034_vm1, %v7113_v15, %v5026_v9  ;;  %v3559_v63 = vrot.slane %v3557_v27, 7  ;;  %v3364_v15 = vsel %vm1034_vm1, %v6861_v53, %v3141_v12 }
 0x2f4   : > { %v3145_v37 = vpop.permute.xlu0 %3144  ;;  %v3419_v47 = vsel %vm362_vm0, %v3352_v57, %v3275_v8  ;;  %v3544_v50 = vshrl.u32 %v3415_v44, 16  ;;  %v3552_v0 = vor.u32 %v3550_v48, %v3549_v54  ;;  %v5328_v8 = vld [vmem:[#allocation2 + $0x170] sm:$0xff] }
 0x2f5   : > { %v7262_v61 = vpop.permute.xlu1 %2149  ;;  %v3554_v2 = vshrl.u32 %v3419_v47, 16  ;;  %v3562_v23 = vor.u32 %v3560_v59, %v3559_v63  ;;  %v3369_v20 = vsel %vm1034_vm1, %v6874_v46, %v3145_v37 }
 0x2f6   : > { %v3546_v17 = vrot.slane %v3544_v50, 7 }
 0x2f7   : > { %v3556_v22 = vrot.slane %v3554_v2, 7 }
 0x2f8   : > { %v5034_v42 = vpop.permute.xlu0 %5033  ;;  %v3553_v5 = vsel %vm1620_vm3, %v3546_v17, %v3552_v0 }
 0x2f9   : > { %v3285_v11 = vpop.permute.xlu1 %3284  ;;  %v5036_v1 = vunpack.i.h.bf16 %v5034_v42  ;;  %v3563_v21 = vsel %vm1620_vm3, %v3556_v22, %v3562_v23  ;;  %v5035_v55 = vunpack.i.l.bf16 %v5034_v42 }
 0x2fa   : > { %4790 = vmatmul.mubr.msk.bf16.gmra.mrb[16].mxu1 %vm2484_vm4, %v7064_v60  ;;  %v3429_v34 = vsel %vm362_vm0, %v3364_v15, %v3285_v11  ;;  %v3357_v60 = vsel %vm1034_vm1, %v7115_v38, %v5031_v43 }
 0x2fb   : > { %4793 = vmatprep.mubr.msk.bf16.mxu1 %vm2484_vm4, %v7189_v49  ;;  %v3423_v41 = vsel %vm362_vm0, %v3357_v60, %v3279_v14  ;;  %v3577_v49 = vshrl.u32 %v3429_v34, 16  ;;  %v3362_v46 = vsel %vm1034_vm1, %v2964_v56, %v5036_v1  ;;  %v3580_v9 = vshll.u32 %v3429_v34, 16 }
 0x2fc   : > { %v3289_v36 = vpop.permute.xlu0 %3288  ;;  %v3564_v16 = vshrl.u32 %v3423_v41, 16  ;;  %v2227_v40 = vsel %vm1034_vm1, %v7115_v38, %v5035_v55 }
 0x2fd   : > { %v2154_v19 = vpop.permute.xlu1 %2153  ;;  %v3433_v14 = vsel %vm362_vm0, %v3369_v20, %v3289_v36  ;;  %v3579_v24 = vrot.slane %v3577_v49, 7 }
 0x2fe   : > { %v3587_v51 = vshrl.u32 %v3433_v14, 16  ;;  %v3566_v37 = vrot.slane %v3564_v16, 7  ;;  %v3590_v22 = vshll.u32 %v3433_v14, 16 }
 0x2ff   : > { %v3582_v44 = vor.u32 %v3580_v9, %v3579_v24  ;;  %v7350_v9 = vld [vmem:[%s7978_s5] ss:$0 sm:$0xff] }
 0x300   : > { %v3137_v29 = vpop.permute.xlu0 %3136  ;;  %v3589_v63 = vrot.slane %v3587_v51, 7 }
 0x301   : > { %v5039_v39 = vpop.permute.xlu1 %5038  ;;  %v3359_v58 = vsel %vm1034_vm1, %v5328_v8, %v3137_v29 }
 0x302   : > { %v3425_v3 = vsel %vm362_vm0, %v3359_v58, %v7226_v25  ;;  %4794 = vmatmul.mubr.msk.bf16.gmra.mrb[20].mxu1 %vm2484_vm4, %v3553_v5  ;;  %v2298_v25 = vsel %vm362_vm0, %v2234_v28, %v2154_v19  ;;  %v5041_v18 = vunpack.i.h.bf16 %v5039_v39  ;;  %v5040_v4 = vunpack.i.l.bf16 %v5039_v39 }
 0x303   : > { %v3567_v10 = vshrl.u32 %v3425_v3, 16  ;;  %4797 = vmatprep.mubr.msk.bf16.mxu1 %vm2484_vm4, %v3563_v21  ;;  %v3570_v7 = vshll.u32 %v3425_v3, 16  ;;  %v2452_v57 = vshrl.u32 %v2298_v25, 16  ;;  %v3592_v39 = vor.u32 %v3590_v22, %v3589_v63 }
 0x304   : > { %v2148_v62 = vpop.permute.xlu0 %2147  ;;  %v3367_v54 = vsel %vm1034_vm1, %v2967_v26, %v5041_v18  ;;  %v2232_v0 = vsel %vm1034_vm1, %v2964_v56, %v5040_v4 }
 0x305   : > { %v3569_v45 = vrot.slane %v3567_v10, 7  ;;  %v3283_v12 = vpop.permute.xlu1 %3282  ;;  %v7295_v30 = vpop.f32.mrb[36].mxu0  ;;  %v2292_v47 = vsel %vm362_vm0, %v2227_v40, %v2148_v62  ;;  %v2454_v59 = vrot.slane %v2452_v57, 7 }
 0x306   : > { %v3427_v35 = vsel %vm362_vm0, %v3362_v46, %v3283_v12  ;;  %v7299_v13 = vpop.f32.mrb[37].mxu0  ;;  %v2439_v48 = vshrl.u32 %v2292_v47, 16 }
 0x307   : > { %v3572_v6 = vor.u32 %v3570_v7, %v3569_v45  ;;  %v3574_v53 = vshrl.u32 %v3427_v35, 16  ;;  %v7302_v27 = vpop.f32.mrb[38].mxu0 }
 0x308   : > { %v2006_v42 = vpop.permute.xlu0 %2005  ;;  %v7304_v11 = vpop.f32.mrb[39].mxu0 }
 0x309   : > { %v3576_v50 = vrot.slane %v3574_v53, 7  ;;  %v3287_v2 = vpop.permute.xlu1 %3286  ;;  %v2229_v43 = vsel %vm1034_vm1, %v5328_v8, %v2006_v42  ;;  %v3573_v38 = vsel %vm1620_vm3, %v3566_v37, %v3572_v6  ;;  %v2441_v8 = vrot.slane %v2439_v48, 7  ;;  %v7358_v37 = vld [vmem:[%s7979_s6] ss:$0 sm:$0xff] }
 0x30a   : > { %v3431_v15 = vsel %vm362_vm0, %v3367_v54, %v3287_v2  ;;  %v2294_v36 = vsel %vm362_vm0, %v2229_v43, %v7262_v61  ;;  %4798 = vmatmul.mubr.msk.bf16.gmra.mrb[24].mxu1 %vm2484_vm4, %v3573_v38  ;;  %v2455_v61 = vshll.u32 %v2298_v25, 16 }
 0x30b   : > { %v3584_v17 = vshrl.u32 %v3431_v15, 16  ;;  %v2442_v34 = vshrl.u32 %v2294_v36, 16  ;;  %v3583_v19 = vsel %vm1620_vm3, %v3576_v50, %v3582_v44  ;;  %v2445_v49 = vshll.u32 %v2294_v36, 16 }
 0x30c   : > { %4801 = vmatprep.mubr.msk.bf16.mxu1 %vm2484_vm4, %v3583_v19  ;;  %v2152_v60 = vpop.permute.xlu0 %2151  ;;  %v2457_v5 = vor.u32 %v2455_v61, %v2454_v59 }
 0x30d   : > { %v3586_v23 = vrot.slane %v3584_v17, 7  ;;  %v2444_v41 = vrot.slane %v2442_v34, 7  ;;  %v2296_v1 = vsel %vm362_vm0, %v2232_v0, %v2152_v60 }
 0x30e   : > { %v2449_v29 = vshrl.u32 %v2296_v1, 16 }
 0x30f   : > { %v2447_v58 = vor.u32 %v2445_v49, %v2444_v41  ;;  %v3593_v21 = vsel %vm1620_vm3, %v3586_v23, %v3592_v39 }
 0x310   : > { %v2451_v20 = vrot.slane %v2449_v29, 7 }
 0x311   : > { %v2448_v3 = vsel %vm1620_vm3, %v2441_v8, %v2447_v58 }
 0x312   : > { %4725 = vmatprep.mubr.msk.bf16.mxu0 %vm2484_vm4, %v2448_v3  ;;  %4802 = vmatmul.mubr.msk.bf16.gmra.mrb[28].mxu1 %vm2484_vm4, %v3593_v21  ;;  %v2458_v56 = vsel %vm1620_vm3, %v2451_v20, %v2457_v5 }
 0x313   : > { %4726 = vmatmul.mubr.msk.bf16.gmra.mrb[60].mxu0 %vm2484_vm4, %v2458_v56 }
 0x335   : > { %v7323_v16 = vpop.f32.mrb[40].mxu0 }
 0x336   : > { %v7325_v55 = vpop.f32.mrb[41].mxu0 }
 0x337   : > { %v7327_v14 = vpop.f32.mrb[42].mxu0 }
 0x338   : > { %v7329_v10 = vpop.f32.mrb[43].mxu0 }
 0x35a   : > { %v7331_v28 = vpop.f32.mrb[44].mxu0 }
 0x35b   : > { %v7333_v24 = vpop.f32.mrb[45].mxu0 }
 0x35c   : > { %v7335_v46 = vpop.f32.mrb[46].mxu0 }
 0x35d   : > { %v7337_v62 = vpop.f32.mrb[47].mxu0 }
 0x386   : > { %v7339_v25 = vpop.f32.mrb[48].mxu0 }
 0x387   : > { %v7341_v18 = vpop.f32.mrb[49].mxu0 }
 0x388   : > { %v7343_v45 = vpop.f32.mrb[50].mxu0 }
 0x389   : > { %v7345_v7 = vpop.f32.mrb[51].mxu0 }
 0x3ad   : > { %v4775_v12 = vpop.f32.mrb[0].mxu1 }
 0x3ae   : > { %v4805_v51 = vadd.f32 %v4775_v12, %v7216_v52  ;;  %v7353_v35 = vpop.f32.mrb[52].mxu0  ;;  %v3701_v26 = vpop.f32.mrb[1].mxu1 }
 0x3af   : > { %v4806_v6 = vadd.f32 %v3701_v26, %v7220_v32  ;;  %v7361_v53 = vpop.f32.mrb[53].mxu0  ;;  %v4776_v40 = vpop.f32.mrb[2].mxu1 }
 0x3b0   : > { %v3869_v44 = vmul.f32 %v4805_v51, %v7350_v9  ;;  %v4807_v57 = vadd.f32 %v4776_v40, %v7224_v31  ;;  %v7365_v4 = vpop.f32.mrb[54].mxu0  ;;  %v3704_v52 = vpop.f32.mrb[3].mxu1 }
 0x3b1   : > { %v3867_v47 = vmul.f32 %v4806_v6, %v7350_v9  ;;  %v4808_v42 = vadd.f32 %v3704_v52, %v7229_v33  ;;  %v7369_v50 = vpop.f32.mrb[55].mxu0 }
 0x3b2   : > { %v7372_v2 = vadd.f32 %v7358_v37, %v3869_v44  ;;  %v3870_v32 = vmul.f32 %v4807_v57, %v7350_v9 }
 0x3b3   : > { %v7376_v54 = vadd.f32 %v7358_v37, %v3867_v47  ;;  %v3868_v43 = vmul.f32 %v4808_v42, %v7350_v9 }
 0x3b4   : > { %v3940_v31 = vmin.f32 %v7372_v2, 20.0  ;;  %v7381_v38 = vadd.f32 %v7358_v37, %v3870_v32 }
 0x3b5   : > { %v3938_v63 = vmin.f32 %v7376_v54, 20.0  ;;  %v7385_v33 = vadd.f32 %v7358_v37, %v3868_v43  ;;  %v4779_v15 = vpop.f32.mrb[4].mxu1 }
 0x3b6   : > { %v3974_v36 = vmul.f32 1.442695, %v3940_v31  ;;  %v3941_v48 = vmin.f32 %v7381_v38, 20.0  ;;  %v4809_v17 = vadd.f32 %v4779_v15, %v7295_v30  ;;  %v3717_v34 = vpop.f32.mrb[5].mxu1 }
 0x3b7   : > { %v3970_v19 = vmul.f32 1.442695, %v3938_v63  ;;  %v3939_v59 = vmin.f32 %v7385_v33, 20.0  ;;  %v4810_v22 = vadd.f32 %v3717_v34, %v7299_v13  ;;  %v4780_v0 = vpop.f32.mrb[6].mxu1 }
 0x3b8   : > { %5181 = vpow2.f32 %v3974_v36  ;;  %v3976_v60 = vmul.f32 1.442695, %v3941_v48  ;;  %v3873_v23 = vmul.f32 %v4809_v17, %v7350_v9  ;;  %v4811_v41 = vadd.f32 %v4780_v0, %v7302_v27  ;;  %v3720_v49 = vpop.f32.mrb[7].mxu1 }
 0x3b9   : > { %5183 = vpow2.f32 %v3970_v19  ;;  %v3972_v1 = vmul.f32 1.442695, %v3939_v59  ;;  %v3871_v61 = vmul.f32 %v4810_v22, %v7350_v9  ;;  %v4812_v30 = vadd.f32 %v3720_v49, %v7304_v11 }
 0x3ba   : > { %5185 = vpow2.f32 %v3976_v60  ;;  %v7396_v29 = vadd.f32 %v7358_v37, %v3873_v23  ;;  %v3874_v13 = vmul.f32 %v4811_v41, %v7350_v9 }
 0x3bb   : > { %5187 = vpow2.f32 %v3972_v1  ;;  %v7400_v39 = vadd.f32 %v7358_v37, %v3871_v61  ;;  %v3872_v8 = vmul.f32 %v4812_v30, %v7350_v9 }
 0x3bc   : > { %v3944_v27 = vmin.f32 %v7396_v29, 20.0  ;;  %v7405_v58 = vadd.f32 %v7358_v37, %v3874_v13 }
 0x3bd   : > { %v3942_v5 = vmin.f32 %v7400_v39, 20.0  ;;  %v7409_v11 = vadd.f32 %v7358_v37, %v3872_v8  ;;  %v4783_v20 = vpop.f32.mrb[8].mxu1 }
 0x3be   : > { %v3982_v3 = vmul.f32 1.442695, %v3944_v27  ;;  %v3945_v21 = vmin.f32 %v7405_v58, 20.0  ;;  %v4813_v56 = vadd.f32 %v4783_v20, %v7323_v16  ;;  %v3733_v12 = vpop.f32.mrb[9].mxu1 }
 0x3bf   : > { %v3978_v51 = vmul.f32 1.442695, %v3942_v5  ;;  %v3943_v26 = vmin.f32 %v7409_v11, 20.0  ;;  %v4814_v6 = vadd.f32 %v3733_v12, %v7325_v55  ;;  %v4784_v40 = vpop.f32.mrb[10].mxu1 }
 0x3c0   : > { %5189 = vpow2.f32 %v3982_v3  ;;  %v3984_v44 = vmul.f32 1.442695, %v3945_v21  ;;  %v3877_v57 = vmul.f32 %v4813_v56, %v7350_v9  ;;  %v4815_v52 = vadd.f32 %v4784_v40, %v7327_v14  ;;  %v3736_v47 = vpop.f32.mrb[11].mxu1 }
 0x3c1   : > { %5191 = vpow2.f32 %v3978_v51  ;;  %v3980_v42 = vmul.f32 1.442695, %v3943_v26  ;;  %v3875_v32 = vmul.f32 %v4814_v6, %v7350_v9  ;;  %v4816_v16 = vadd.f32 %v3736_v47, %v7329_v10 }
 0x3c2   : > { %v5182_v43 = vpop.eup %5181  ;;  %5193 = vpow2.f32 %v3984_v44  ;;  %v7420_v31 = vadd.f32 %v7358_v37, %v3877_v57  ;;  %v3878_v55 = vmul.f32 %v4815_v52, %v7350_v9 }
 0x3c3   : > { %v5184_v63 = vpop.eup %5183  ;;  %v4036_v15 = vadd.f32 2.0, %v5182_v43  ;;  %5195 = vpow2.f32 %v3980_v42  ;;  %v7424_v36 = vadd.f32 %v7358_v37, %v3875_v32  ;;  %v3876_v14 = vmul.f32 %v4816_v16, %v7350_v9 }
 0x3c4   : > { %v5186_v48 = vpop.eup %5185  ;;  %v4034_v17 = vadd.f32 2.0, %v5184_v63  ;;  %v3948_v34 = vmin.f32 %v7420_v31, 20.0  ;;  %v7429_v10 = vadd.f32 %v7358_v37, %v3878_v55 }
 0x3c5   : > { %v5188_v19 = vpop.eup %5187  ;;  %v4068_v59 = vmul.f32 %v5182_v43, %v4036_v15  ;;  %v4037_v22 = vadd.f32 2.0, %v5186_v48  ;;  %v3946_v0 = vmin.f32 %v7424_v36, 20.0  ;;  %v7433_v60 = vadd.f32 %v7358_v37, %v3876_v14  ;;  %v4787_v23 = vpop.f32.mrb[12].mxu1 }
 0x3c6   : > { %v4066_v41 = vmul.f32 %v5184_v63, %v4034_v17  ;;  %v4035_v49 = vadd.f32 2.0, %v5188_v19  ;;  %v3990_v1 = vmul.f32 1.442695, %v3948_v34  ;;  %v3949_v61 = vmin.f32 %v7429_v10, 20.0  ;;  %v7436_v30 = vpop.f32.mrb[56].mxu0  ;;  %v3749_v13 = vpop.f32.mrb[13].mxu1 }
 0x3c7   : > { %8030 = vst [vmem:[#allocation13_spill] sm:$0xff] %v7436_v30  ;;  %v7438_v8 = vadd.f32 2.0, %v4068_v59  ;;  %v7441_v27 = vmul.f32 %v4068_v59, %v7372_v2  ;;  %v4069_v5 = vmul.f32 %v5186_v48, %v4037_v22  ;;  %v7443_v20 = vpop.f32.mrb[57].mxu0  ;;  %v4788_v3 = vpop.f32.mrb[14].mxu1  ;;  %v3986_v12 = vmul.f32 1.442695, %v3946_v0 }
 0x3c8   : > { %8031 = vst [vmem:[#allocation23_spill] sm:$0xff] %v7443_v20  ;;  %v7445_v21 = vadd.f32 2.0, %v4066_v41  ;;  %v4067_v56 = vmul.f32 %v5188_v19, %v4035_v49  ;;  %5197 = vpow2.f32 %v3990_v1  ;;  %v7447_v51 = vpop.f32.mrb[58].mxu0  ;;  %v3752_v26 = vpop.f32.mrb[15].mxu1  ;;  %v7451_v6 = vmul.f32 %v4066_v41, %v7376_v54 }
 0x3c9   : > { %8032 = vst [vmem:[#allocation12_spill] sm:$0xff] %v7447_v51  ;;  %5199 = vrcp.f32 %v7438_v8  ;;  %v7453_v40 = vadd.f32 2.0, %v4069_v5  ;;  %v7456_v2 = vmul.f32 %v4069_v5, %v7381_v38  ;;  %v7458_v44 = vpop.f32.mrb[59].mxu0  ;;  %v3992_v47 = vmul.f32 1.442695, %v3949_v61 }
 0x3ca   : > { %8033 = vst [vmem:[#allocation14_spill] sm:$0xff] %v7458_v44  ;;  %v5190_v57 = vpop.eup %5189  ;;  %5201 = vrcp.f32 %v7445_v21  ;;  %v7461_v52 = vadd.f32 2.0, %v4067_v56  ;;  %v3947_v42 = vmin.f32 %v7433_v60, 20.0  ;;  %v4817_v16 = vadd.f32 %v4787_v23, %v7331_v28 }
 0x3cb   : > { %v5192_v32 = vpop.eup %5191  ;;  %5203 = vrcp.f32 %v7453_v40  ;;  %v4040_v54 = vadd.f32 2.0, %v5190_v57  ;;  %v4818_v43 = vadd.f32 %v3749_v13, %v7333_v24  ;;  %v4819_v15 = vadd.f32 %v4788_v3, %v7335_v46 }
 0x3cc   : > { %v5194_v38 = vpop.eup %5193  ;;  %5205 = vrcp.f32 %v7461_v52  ;;  %v4038_v55 = vadd.f32 2.0, %v5192_v32  ;;  %v3988_v63 = vmul.f32 1.442695, %v3947_v42  ;;  %v3881_v34 = vmul.f32 %v4817_v16, %v7350_v9 }
 0x3cd   : > { %v5196_v14 = vpop.eup %5195  ;;  %v4072_v48 = vmul.f32 %v5190_v57, %v4040_v54  ;;  %v4041_v17 = vadd.f32 2.0, %v5194_v38  ;;  %5207 = vpow2.f32 %v3986_v12  ;;  %v7470_v19 = vpop.f32.mrb[16].mxu1  ;;  %v3879_v28 = vmul.f32 %v4818_v43, %v7350_v9 }
 0x3ce   : > { %v4070_v59 = vmul.f32 %v5192_v32, %v4038_v55  ;;  %v4039_v22 = vadd.f32 2.0, %v5196_v14  ;;  %5209 = vpow2.f32 %v3992_v47  ;;  %v7473_v24 = vpop.f32.mrb[17].mxu1  ;;  %v7476_v0 = vmul.f32 %v4067_v56, %v7385_v33 }
 0x3cf   : > { %v7478_v23 = vadd.f32 2.0, %v4072_v48  ;;  %v4073_v46 = vmul.f32 %v5194_v38, %v4041_v17  ;;  %5211 = vpow2.f32 %v3988_v63  ;;  %v7480_v41 = vpop.f32.mrb[18].mxu1  ;;  %v7483_v49 = vmul.f32 %v4072_v48, %v7396_v29 }
 0x3d0   : > { %v7485_v1 = vadd.f32 2.0, %v4070_v59  ;;  %v4071_v61 = vmul.f32 %v5196_v14, %v4039_v22  ;;  %v7488_v13 = vadd.f32 %v7358_v37, %v3881_v34  ;;  %v7490_v5 = vpop.f32.mrb[19].mxu1  ;;  %v7494_v33 = vmul.f32 %v4070_v59, %v7400_v39 }
 0x3d1   : > { %5213 = vrcp.f32 %v7478_v23  ;;  %v7496_v3 = vadd.f32 2.0, %v4073_v46  ;;  %v7499_v56 = vadd.f32 %v7358_v37, %v3879_v28  ;;  %v7503_v12 = vmul.f32 %v4073_v46, %v7405_v58 }
 0x3d2   : > { %v5198_v29 = vpop.eup %5197  ;;  %5215 = vrcp.f32 %v7485_v1  ;;  %v7505_v57 = vadd.f32 2.0, %v4071_v61  ;;  %v3952_v47 = vmin.f32 %v7488_v13, 20.0  ;;  %v3882_v54 = vmul.f32 %v4819_v15, %v7350_v9 }
 0x3d3   : > { %v5200_v42 = vpop.eup %5199  ;;  %5217 = vrcp.f32 %v7496_v3  ;;  %v4044_v39 = vadd.f32 2.0, %v5198_v29  ;;  %v3950_v32 = vmin.f32 %v7499_v56, 20.0  ;;  %v4820_v58 = vadd.f32 %v3752_v26, %v7337_v62 }
 0x3d4   : > { %v5202_v16 = vpop.eup %5201  ;;  %v4164_v43 = vmul.f32 %v5200_v42, %v7438_v8  ;;  %5219 = vrcp.f32 %v7505_v57  ;;  %v3998_v38 = vmul.f32 1.442695, %v3952_v47  ;;  %v7516_v14 = vmul.f32 %v4071_v61, %v7409_v11 }
 0x3d5   : > { %v5204_v55 = vpop.eup %5203  ;;  %v4162_v63 = vmul.f32 %v5202_v16, %v7445_v21  ;;  %v4076_v48 = vmul.f32 %v5198_v29, %v4044_v39  ;;  %v3994_v17 = vmul.f32 1.442695, %v3950_v32  ;;  %v7518_v34 = vpop.f32.mrb[20].mxu1  ;;  %v7522_v8 = vadd.f32 %v7358_v37, %v3882_v54 }
 0x3d6   : > { %v5206_v59 = vpop.eup %5205  ;;  %v4196_v15 = vsub.f32 2.0, %v4164_v43  ;;  %v4165_v22 = vmul.f32 %v5204_v55, %v7453_v40  ;;  %5221 = vpow2.f32 %v3998_v38  ;;  %v7524_v28 = vpop.f32.mrb[21].mxu1  ;;  %v7530_v46 = vmul.f32 %v4820_v58, %v7350_v9 }
 0x3d7   : > { %v5208_v62 = vpop.eup %5207  ;;  %v4194_v26 = vsub.f32 2.0, %v4162_v63  ;;  %v4163_v21 = vmul.f32 %v5206_v59, %v7461_v52  ;;  %v7527_v11 = vadd.f32 2.0, %v4076_v48  ;;  %v7532_v61 = vpop.f32.mrb[22].mxu1  ;;  %5223 = vpow2.f32 %v3994_v17 }
 0x3d8   : > { %v5210_v29 = vpop.eup %5209  ;;  %v4228_v47 = vmul.f32 %v5200_v42, %v4196_v15  ;;  %v4197_v40 = vsub.f32 2.0, %v4165_v22  ;;  %v4042_v39 = vadd.f32 2.0, %v5208_v62  ;;  %v7534_v32 = vpop.f32.mrb[23].mxu1  ;;  %v7539_v44 = vmul.f32 %v4076_v48, %v7420_v31  ;;  %v5330_v48 = vld [vmem:[%s5620_s15] sm:$0xff] }
 0x3d9   : > { %v5212_v54 = vpop.eup %5211  ;;  %v4226_v43 = vmul.f32 %v5202_v16, %v4194_v26  ;;  %v4195_v38 = vsub.f32 2.0, %v4163_v21  ;;  %5225 = vrcp.f32 %v7527_v11  ;;  %v4045_v52 = vadd.f32 2.0, %v5210_v29  ;;  %v5329_v26 = vld [vmem:[%s5620_s15 + $0x10] sm:$0xff] }
 0x3da   : > { %v4292_v63 = vmul.f32 %v7441_v27, %v4228_v47  ;;  %v4229_v58 = vmul.f32 %v5204_v55, %v4197_v40  ;;  %v4074_v42 = vmul.f32 %v5208_v62, %v4042_v39  ;;  %v4043_v20 = vadd.f32 2.0, %v5212_v54 }
 0x3db   : > { %v5214_v15 = vpop.eup %5213  ;;  %v4290_v17 = vmul.f32 %v7451_v6, %v4226_v43  ;;  %v4227_v22 = vmul.f32 %v5206_v59, %v4195_v38  ;;  %v4077_v51 = vmul.f32 %v5210_v29, %v4045_v52  ;;  %v3953_v29 = vmin.f32 %v7522_v8, 20.0  ;;  %v5332_v43 = vld [vmem:[%s5620_s15 + $0x8] sm:$0xff] }
 0x3dc   : > { %v5216_v16 = vpop.eup %5215  ;;  %v4324_v21 = vadd.f32 %v5329_v26, %v4292_v63  ;;  %v4293_v30 = vmul.f32 %v7456_v2, %v4229_v58  ;;  %v4168_v27 = vmul.f32 %v5214_v15, %v7478_v23  ;;  %v7545_v55 = vadd.f32 2.0, %v4074_v42  ;;  %v5331_v2 = vld [vmem:[%s5620_s15 + $0x18] sm:$0xff] }
 0x3dd   : > { %v5218_v31 = vpop.eup %5217  ;;  %v4322_v62 = vadd.f32 %v5330_v48, %v4290_v17  ;;  %v4291_v6 = vmul.f32 %v7476_v0, %v4227_v22  ;;  %v4166_v59 = vmul.f32 %v5216_v16, %v7485_v1  ;;  %v7551_v47 = vpop.f32.mrb[24].mxu1  ;;  %v7568_v58 = vadd.f32 2.0, %v4077_v51 }
 0x3de   : > { %v5220_v40 = vpop.eup %5219  ;;  %4356 = vst.msk [vmem:[%s7555_s9 + $0x10] sm:$0xff] %vm362_vm0, %v4324_v21  ;;  %v4325_v23 = vadd.f32 %v5331_v2, %v4293_v30  ;;  %v4200_v39 = vsub.f32 2.0, %v4168_v27  ;;  %v4169_v0 = vmul.f32 %v5218_v31, %v7496_v3  ;;  %5227 = vrcp.f32 %v7545_v55  ;;  %v7562_v1 = vpop.f32.mrb[25].mxu1 }
 0x3df   : > { %4354 = vst.msk [vmem:[%s7555_s9] sm:$0xff] %vm362_vm0, %v4322_v62  ;;  %v4323_v38 = vadd.f32 %v5332_v43, %v4291_v6  ;;  %v4198_v52 = vsub.f32 2.0, %v4166_v59  ;;  %v4167_v63 = vmul.f32 %v5220_v40, %v7505_v57  ;;  %v7570_v17 = vpop.f32.mrb[26].mxu1  ;;  %v7575_v26 = vmul.f32 %v4074_v42, %v7424_v36 }
 0x3e0   : > { %v5222_v30 = vpop.eup %5221  ;;  %4357 = vst.msk [vmem:[%s7555_s9 + $0x18] sm:$0xff] %vm362_vm0, %v4325_v23  ;;  %v4232_v3 = vmul.f32 %v5214_v15, %v4200_v39  ;;  %v4201_v22 = vsub.f32 2.0, %v4169_v0  ;;  %v4075_v21 = vmul.f32 %v5212_v54, %v4043_v20  ;;  %v7577_v27 = vpop.f32.mrb[27].mxu1  ;;  %5229 = vrcp.f32 %v7568_v58  ;;  %v5333_v39 = vld [vmem:[%s5620_s15 + $0x30] sm:$0xff] }
 0x3e1   : > { %4355 = vst.msk [vmem:[%s7555_s9 + $0x8] sm:$0xff] %vm362_vm0, %v4323_v38  ;;  %v4230_v48 = vmul.f32 %v5216_v16, %v4198_v52  ;;  %v4199_v57 = vsub.f32 2.0, %v4167_v63  ;;  %v4048_v62 = vadd.f32 2.0, %v5222_v30  ;;  %v5224_v6 = vpop.eup %5223  ;;  %v7584_v2 = vmul.f32 %v4077_v51, %v7429_v10  ;;  %v5334_v10 = vld [vmem:[%s5620_s15 + $0x20] sm:$0xff] }
 0x3e2   : > { %v4296_v59 = vmul.f32 %v7483_v49, %v4232_v3  ;;  %v4233_v15 = vmul.f32 %v5218_v31, %v4201_v22  ;;  %v7586_v36 = vadd.f32 2.0, %v4075_v21  ;;  %v4046_v23 = vadd.f32 2.0, %v5224_v6 }
 0x3e3   : > { %v5226_v20 = vpop.eup %5225  ;;  %v4294_v54 = vmul.f32 %v7494_v33, %v4230_v48  ;;  %v4231_v42 = vmul.f32 %v5220_v40, %v4199_v57  ;;  %v4080_v16 = vmul.f32 %v5222_v30, %v4048_v62  ;;  %v7596_v33 = vmul.f32 %v4075_v21, %v7433_v60  ;;  %v5336_v60 = vld [vmem:[%s5620_s15 + $0x28] sm:$0xff] }
 0x3e4   : > { %v4328_v0 = vadd.f32 %v5333_v39, %v4296_v59  ;;  %v4297_v43 = vmul.f32 %v7503_v12, %v4233_v15  ;;  %v4172_v49 = vmul.f32 %v5226_v20, %v7527_v11  ;;  %5231 = vrcp.f32 %v7586_v36  ;;  %v5335_v12 = vld [vmem:[%s5620_s15 + $0x38] sm:$0xff] }
 0x3e5   : > { %v4326_v51 = vadd.f32 %v5334_v10, %v4294_v54  ;;  %v4295_v31 = vmul.f32 %v7516_v14, %v4231_v42  ;;  %v7598_v40 = vadd.f32 2.0, %v4080_v16  ;;  %v7600_v38 = vpop.f32.mrb[28].mxu1  ;;  %v7605_v63 = vmul.f32 %v5224_v6, %v4046_v23 }
 0x3e6   : > { %4360 = vst.msk [vmem:[%s7555_s9 + $0x30] sm:$0xff] %vm362_vm0, %v4328_v0  ;;  %v4329_v11 = vadd.f32 %v5335_v12, %v4297_v43  ;;  %v4204_v52 = vsub.f32 2.0, %v4172_v49  ;;  %v4000_v30 = vmul.f32 1.442695, %v3953_v29  ;;  %v7607_v3 = vpop.f32.mrb[60].mxu0  ;;  %v7609_v22 = vpop.f32.mrb[29].mxu1  ;;  %v7617_v21 = vadd.f32 %v7358_v37, %v7530_v46 }
 0x3e7   : > { %4358 = vst.msk [vmem:[%s7555_s9 + $0x20] sm:$0xff] %vm362_vm0, %v4326_v51  ;;  %v4327_v14 = vadd.f32 %v5336_v60, %v4295_v31  ;;  %5233 = vrcp.f32 %v7598_v40  ;;  %v4821_v48 = vadd.f32 %v7470_v19, %v7339_v25  ;;  %v7621_v57 = vpop.f32.mrb[61].mxu0  ;;  %v7623_v29 = vpop.f32.mrb[30].mxu1  ;;  %v7628_v59 = vmul.f32 %v4080_v16, %v7488_v13 }
 0x3e8   : > { %v5228_v62 = vpop.eup %5227  ;;  %4361 = vst.msk [vmem:[%s7555_s9 + $0x38] sm:$0xff] %vm362_vm0, %v4329_v11  ;;  %v4236_v6 = vmul.f32 %v5226_v20, %v4204_v52  ;;  %v7631_v15 = vadd.f32 2.0, %v7605_v63  ;;  %5235 = vpow2.f32 %v4000_v30  ;;  %v7633_v46 = vpop.f32.mrb[62].mxu0  ;;  %v3951_v19 = vmin.f32 %v7617_v21, 20.0 }
 0x3e9   : > { %v7635_v54 = vpop.f32.mrb[31].mxu1  ;;  %4359 = vst.msk [vmem:[%s7555_s9 + $0x28] sm:$0xff] %vm362_vm0, %v4327_v14  ;;  %v4170_v25 = vmul.f32 %v5228_v62, %v7545_v55  ;;  %v3885_v20 = vmul.f32 %v4821_v48, %v7350_v9  ;;  %v4822_v13 = vadd.f32 %v7473_v24, %v7341_v18  ;;  %v7644_v42 = vpop.f32.mrb[63].mxu0  ;;  %v4823_v23 = vadd.f32 %v7480_v41, %v7343_v45  ;;  %v5337_v24 = vld [vmem:[%s5620_s15 + $0x50] sm:$0xff] }
 0x3ea   : > { %v4300_v16 = vmul.f32 %v7539_v44, %v4236_v6  ;;  %5237 = vrcp.f32 %v7631_v15  ;;  %v4824_v39 = vadd.f32 %v7490_v5, %v7345_v7  ;;  %v5230_v55 = vpop.eup %5229  ;;  %v3996_v43 = vmul.f32 1.442695, %v3951_v19 }
 0x3eb   : > { %v4202_v0 = vsub.f32 2.0, %v4170_v25  ;;  %v7653_v49 = vadd.f32 %v7358_v37, %v3885_v20  ;;  %v3883_v18 = vmul.f32 %v4822_v13, %v7350_v9  ;;  %v4173_v44 = vmul.f32 %v5230_v55, %v7568_v58  ;;  %v5338_v13 = vld [vmem:[%s5620_s15 + $0x40] sm:$0xff] }
 0x3ec   : > { %v4332_v10 = vadd.f32 %v5337_v24, %v4300_v16  ;;  %v3886_v51 = vmul.f32 %v4823_v23, %v7350_v9  ;;  %v3884_v45 = vmul.f32 %v4824_v39, %v7350_v9  ;;  %5239 = vpow2.f32 %v3996_v43 }
 0x3ed   : > { %v4234_v41 = vmul.f32 %v5228_v62, %v4202_v0  ;;  %v3956_v7 = vmin.f32 %v7653_v49, 20.0  ;;  %v7662_v5 = vadd.f32 %v7358_v37, %v3883_v18  ;;  %v4205_v12 = vsub.f32 2.0, %v4173_v44 }
 0x3ee   : > { %v5232_v31 = vpop.eup %5231  ;;  %4364 = vst.msk [vmem:[%s7555_s9 + $0x50] sm:$0xff] %vm362_vm0, %v4332_v10  ;;  %v7667_v11 = vadd.f32 %v7358_v37, %v3886_v51  ;;  %v7670_v58 = vadd.f32 %v7358_v37, %v3884_v45  ;;  %v4825_v52 = vadd.f32 %v7518_v34, %v7353_v35  ;;  %v5339_v10 = vld [vmem:[%s5620_s15 + $0x58] sm:$0xff] }
 0x3ef   : > { %v4298_v30 = vmul.f32 %v7575_v26, %v4234_v41  ;;  %v4171_v60 = vmul.f32 %v5232_v31, %v7586_v36  ;;  %v4006_v14 = vmul.f32 1.442695, %v3956_v7  ;;  %v3954_v48 = vmin.f32 %v7662_v5, 20.0 }
 0x3f0   : > { %v4237_v62 = vmul.f32 %v5230_v55, %v4205_v12  ;;  %v3957_v6 = vmin.f32 %v7667_v11, 20.0  ;;  %v3955_v25 = vmin.f32 %v7670_v58, 20.0  ;;  %v3889_v19 = vmul.f32 %v4825_v52, %v7350_v9 }
 0x3f1   : > { %v5234_v20 = vpop.eup %5233  ;;  %v4330_v16 = vadd.f32 %v5338_v13, %v4298_v30  ;;  %v4203_v35 = vsub.f32 2.0, %v4171_v60  ;;  %5241 = vpow2.f32 %v4006_v14  ;;  %v4002_v34 = vmul.f32 1.442695, %v3954_v48 }
 0x3f2   : > { %v5236_v26 = vpop.eup %5235  ;;  %v4301_v36 = vmul.f32 %v7584_v2, %v4237_v62  ;;  %v4176_v23 = vmul.f32 %v5234_v20, %v7598_v40  ;;  %v4008_v39 = vmul.f32 1.442695, %v3957_v6  ;;  %v4004_v55 = vmul.f32 1.442695, %v3955_v25 }
 0x3f3   : > { %4362 = vst.msk [vmem:[%s7555_s9 + $0x40] sm:$0xff] %vm362_vm0, %v4330_v16  ;;  %v4235_v0 = vmul.f32 %v5232_v31, %v4203_v35  ;;  %v4049_v43 = vadd.f32 2.0, %v5236_v26  ;;  %5243 = vpow2.f32 %v4002_v34  ;;  %v7686_v18 = vadd.f32 %v7358_v37, %v3889_v19  ;;  %v8034_v34 = vld [vmem:[#allocation13_spill] sm:$0xff] }
 0x3f4   : > { %v5238_v24 = vpop.eup %5237  ;;  %v4333_v44 = vadd.f32 %v5339_v10, %v4301_v36  ;;  %v4208_v51 = vsub.f32 2.0, %v4176_v23  ;;  %5245 = vpow2.f32 %v4008_v39  ;;  %v4826_v2 = vadd.f32 %v7524_v28, %v7361_v53  ;;  %v5340_v28 = vld [vmem:[%s5620_s15 + $0x48] sm:$0xff]  ;;  %v5342_v39 = vld [vmem:[%s5620_s15 + $0x60] sm:$0xff] }
 0x3f5   : > { %v4299_v40 = vmul.f32 %v7596_v33, %v4235_v0  ;;  %v4174_v45 = vmul.f32 %v5238_v24, %v7631_v15  ;;  %v7693_v41 = vmul.f32 %v5236_v26, %v4049_v43  ;;  %5247 = vpow2.f32 %v4004_v55 }
 0x3f6   : > { %4365 = vst.msk [vmem:[%s7555_s9 + $0x58] sm:$0xff] %vm362_vm0, %v4333_v44  ;;  %v4240_v7 = vmul.f32 %v5234_v20, %v4208_v51  ;;  %v3960_v31 = vmin.f32 %v7686_v18, 20.0  ;;  %v3887_v12 = vmul.f32 %v4826_v2, %v7350_v9  ;;  %v4827_v52 = vadd.f32 %v7532_v61, %v7365_v4  ;;  %v5240_v53 = vpop.eup %5239  ;;  %v8035_v51 = vld [vmem:[#allocation23_spill] sm:$0xff] }
 0x3f7   : > { %v4331_v33 = vadd.f32 %v5340_v28, %v4299_v40  ;;  %v4206_v30 = vsub.f32 2.0, %v4174_v45  ;;  %v4270_v15 = vmul.f32 %v7605_v63, %v7499_v56  ;;  %v4113_v60 = vadd.f32 2.0, %v7693_v41  ;;  %v5341_v56 = vld [vmem:[%s5620_s15 + $0x70] sm:$0xff] }
 0x3f8   : > { %v4304_v14 = vmul.f32 %v7628_v59, %v4240_v7  ;;  %v4047_v48 = vadd.f32 2.0, %v5240_v53  ;;  %v4014_v62 = vmul.f32 1.442695, %v3960_v31  ;;  %v7707_v6 = vadd.f32 %v7358_v37, %v3887_v12 }
 0x3f9   : > { %4363 = vst.msk [vmem:[%s7555_s9 + $0x48] sm:$0xff] %vm362_vm0, %v4331_v33  ;;  %v4238_v4 = vmul.f32 %v5238_v24, %v4206_v30  ;;  %5249 = vrcp.f32 %v4113_v60  ;;  %v3890_v61 = vmul.f32 %v4827_v52, %v7350_v9  ;;  %v4828_v25 = vadd.f32 %v7534_v32, %v7369_v50 }
 0x3fa   : > { %v4336_v63 = vadd.f32 %v5341_v56, %v4304_v14  ;;  %v4079_v19 = vmul.f32 %v5240_v53, %v4047_v48  ;;  %5251 = vpow2.f32 %v4014_v62  ;;  %v3958_v59 = vmin.f32 %v7707_v6, 20.0 }
 0x3fb   : > { %v5242_v20 = vpop.eup %5241  ;;  %v4302_v13 = vmul.f32 %v4270_v15, %v4238_v4  ;;  %v7717_v16 = vadd.f32 %v7358_v37, %v3890_v61  ;;  %v3888_v35 = vmul.f32 %v4828_v25, %v7350_v9  ;;  %v4829_v26 = vadd.f32 %v7551_v47, %v8034_v34  ;;  %v8037_v34 = vld [vmem:[#allocation14_spill] sm:$0xff] }
 0x3fc   : > { %4368 = vst.msk [vmem:[%s7555_s9 + $0x70] sm:$0xff] %vm362_vm0, %v4336_v63  ;;  %v4111_v50 = vadd.f32 2.0, %v4079_v19  ;;  %v4052_v32 = vadd.f32 2.0, %v5242_v20  ;;  %v4010_v36 = vmul.f32 1.442695, %v3958_v59  ;;  %v4830_v2 = vadd.f32 %v7562_v1, %v8035_v51 }
 0x3fd   : > { %v5244_v23 = vpop.eup %5243  ;;  %v4334_v55 = vadd.f32 %v5342_v39, %v4302_v13  ;;  %v3961_v0 = vmin.f32 %v7717_v16, 20.0  ;;  %v7727_v43 = vadd.f32 %v7358_v37, %v3888_v35  ;;  %v3893_v24 = vmul.f32 %v4829_v26, %v7350_v9 }
 0x3fe   : > { %v5246_v10 = vpop.eup %5245  ;;  %5253 = vrcp.f32 %v4111_v50  ;;  %v4084_v44 = vmul.f32 %v5242_v20, %v4052_v32  ;;  %v4050_v47 = vadd.f32 2.0, %v5244_v23  ;;  %v4273_v48 = vmul.f32 %v7693_v41, %v7522_v8  ;;  %v8036_v8 = vld [vmem:[#allocation12_spill] sm:$0xff] }
 0x3ff   : > { %v5248_v40 = vpop.eup %5247  ;;  %4366 = vst.msk [vmem:[%s7555_s9 + $0x60] sm:$0xff] %vm362_vm0, %v4334_v55  ;;  %v4053_v45 = vadd.f32 2.0, %v5246_v10  ;;  %5255 = vpow2.f32 %v4010_v36  ;;  %v4016_v7 = vmul.f32 1.442695, %v3961_v0  ;;  %v3959_v31 = vmin.f32 %v7727_v43, 20.0 }
 0x400   : > { %v4116_v12 = vadd.f32 2.0, %v4084_v44  ;;  %v4082_v52 = vmul.f32 %v5244_v23, %v4050_v47  ;;  %v4051_v53 = vadd.f32 2.0, %v5248_v40  ;;  %v7736_v30 = vadd.f32 %v7358_v37, %v3893_v24 }
 0x401   : > { %v4085_v28 = vmul.f32 %v5246_v10, %v4053_v45  ;;  %5257 = vpow2.f32 %v4016_v7  ;;  %v4012_v33 = vmul.f32 1.442695, %v3959_v31  ;;  %v4271_v56 = vmul.f32 %v4079_v19, %v7617_v21 }
 0x402   : > { %5259 = vrcp.f32 %v4116_v12  ;;  %v7738_v15 = vadd.f32 2.0, %v4082_v52  ;;  %v4083_v1 = vmul.f32 %v5248_v40, %v4051_v53  ;;  %v3964_v4 = vmin.f32 %v7736_v30, 20.0 }
 0x403   : > { %v5250_v14 = vpop.eup %5249  ;;  %v4117_v62 = vadd.f32 2.0, %v4085_v28  ;;  %5261 = vpow2.f32 %v4012_v33  ;;  %v3891_v13 = vmul.f32 %v4830_v2, %v7350_v9  ;;  %v4831_v41 = vadd.f32 %v7570_v17, %v8036_v8 }
 0x404   : > { %v5252_v61 = vpop.eup %5251  ;;  %v4177_v25 = vmul.f32 %v5250_v14, %v4113_v60  ;;  %5263 = vrcp.f32 %v7738_v15  ;;  %v7745_v63 = vadd.f32 2.0, %v4083_v1  ;;  %v4022_v20 = vmul.f32 1.442695, %v3964_v4 }
 0x405   : > { %5265 = vrcp.f32 %v4117_v62  ;;  %v4056_v59 = vadd.f32 2.0, %v5252_v61  ;;  %v4832_v60 = vadd.f32 %v7577_v27, %v8037_v34  ;;  %v7756_v21 = vadd.f32 %v7358_v37, %v3891_v13 }
 0x406   : > { %v4209_v35 = vsub.f32 2.0, %v4177_v25  ;;  %5267 = vrcp.f32 %v7745_v63  ;;  %v7760_v19 = vadd.f32 %v7600_v38, %v7607_v3  ;;  %v3894_v23 = vmul.f32 %v4831_v41, %v7350_v9  ;;  %v5344_v41 = vld [vmem:[%s5620_s15 + $0x68] sm:$0xff] }
 0x407   : > { %v7753_v26 = vmul.f32 %v5252_v61, %v4056_v59  ;;  %5269 = vpow2.f32 %v4022_v20  ;;  %v3892_v39 = vmul.f32 %v4832_v60, %v7350_v9  ;;  %v7766_v17 = vadd.f32 %v7609_v22, %v7621_v57 }
 0x408   : > { %v5254_v32 = vpop.eup %5253  ;;  %v4241_v36 = vmul.f32 %v5250_v14, %v4209_v35  ;;  %v4276_v0 = vmul.f32 %v4084_v44, %v7653_v49  ;;  %v3962_v38 = vmin.f32 %v7756_v21, 20.0  ;;  %v4274_v10 = vmul.f32 %v4082_v52, %v7662_v5  ;;  %v5343_v44 = vld [vmem:[%s5620_s15 + $0x78] sm:$0xff] }
 0x409   : > { %v5256_v27 = vpop.eup %5255  ;;  %v4175_v55 = vmul.f32 %v5254_v32, %v4111_v50  ;;  %v7770_v24 = vadd.f32 2.0, %v7753_v26  ;;  %v7775_v51 = vadd.f32 %v7358_v37, %v3894_v23  ;;  %v7779_v49 = vadd.f32 %v7358_v37, %v3892_v39 }
 0x40a   : > { %v4305_v3 = vmul.f32 %v4273_v48, %v4241_v36  ;;  %v4054_v47 = vadd.f32 2.0, %v5256_v27  ;;  %v4018_v57 = vmul.f32 1.442695, %v3962_v38  ;;  %v4277_v33 = vmul.f32 %v4085_v28, %v7667_v11 }
 0x40b   : > { %v5258_v2 = vpop.eup %5257  ;;  %v4207_v22 = vsub.f32 2.0, %v4175_v55  ;;  %5271 = vrcp.f32 %v7770_v24  ;;  %v3965_v5 = vmin.f32 %v7775_v51, 20.0  ;;  %v4275_v48 = vmul.f32 %v4083_v1, %v7670_v58 }
 0x40c   : > { %v5260_v50 = vpop.eup %5259  ;;  %v4337_v40 = vadd.f32 %v5343_v44, %v4305_v3  ;;  %v7782_v45 = vmul.f32 %v5256_v27, %v4054_v47  ;;  %v4057_v7 = vadd.f32 2.0, %v5258_v2  ;;  %5273 = vpow2.f32 %v4018_v57 }
 0x40d   : > { %v5262_v31 = vpop.eup %5261  ;;  %v4239_v52 = vmul.f32 %v5254_v32, %v4207_v22  ;;  %v4180_v53 = vmul.f32 %v5260_v50, %v4116_v12  ;;  %v4024_v35 = vmul.f32 1.442695, %v3965_v5  ;;  %v3963_v58 = vmin.f32 %v7779_v49, 20.0 }
 0x40e   : > { %v5264_v14 = vpop.eup %5263  ;;  %4369 = vst.msk [vmem:[%s7555_s9 + $0x78] sm:$0xff] %vm362_vm0, %v4337_v40  ;;  %v7790_v4 = vadd.f32 2.0, %v7782_v45  ;;  %v7792_v61 = vmul.f32 %v5258_v2, %v4057_v7  ;;  %v4055_v25 = vadd.f32 2.0, %v5262_v31  ;;  %v5345_v2 = vld [vmem:[%s5620_s15 + $0x90] sm:$0xff] }
 0x40f   : > { %v5266_v59 = vpop.eup %5265  ;;  %v4303_v20 = vmul.f32 %v4271_v56, %v4239_v52  ;;  %v4212_v13 = vsub.f32 2.0, %v4180_v53  ;;  %v4178_v12 = vmul.f32 %v5264_v14, %v7738_v15 }
 0x410   : > { %v5268_v11 = vpop.eup %5267  ;;  %v4181_v28 = vmul.f32 %v5266_v59, %v4117_v62  ;;  %5275 = vrcp.f32 %v7790_v4  ;;  %v7797_v8 = vadd.f32 2.0, %v7792_v61  ;;  %v7803_v36 = vmul.f32 %v5262_v31, %v4055_v25 }
 0x411   : > { %v5270_v1 = vpop.eup %5269  ;;  %v4335_v34 = vadd.f32 %v5344_v41, %v4303_v20  ;;  %v4244_v60 = vmul.f32 %v5260_v50, %v4212_v13  ;;  %v4210_v32 = vsub.f32 2.0, %v4178_v12  ;;  %v4179_v56 = vmul.f32 %v5268_v11, %v7745_v63 }
 0x412   : > { %v4213_v15 = vsub.f32 2.0, %v4181_v28  ;;  %5277 = vrcp.f32 %v7797_v8  ;;  %v4060_v62 = vadd.f32 2.0, %v5270_v1  ;;  %v7808_v38 = vadd.f32 2.0, %v7803_v36 }
 0x413   : > { %4367 = vst.msk [vmem:[%s7555_s9 + $0x68] sm:$0xff] %vm362_vm0, %v4335_v34  ;;  %v4308_v23 = vmul.f32 %v4276_v0, %v4244_v60  ;;  %v4242_v39 = vmul.f32 %v5264_v14, %v4210_v32  ;;  %v4211_v27 = vsub.f32 2.0, %v4179_v56  ;;  %5279 = vpow2.f32 %v4024_v35  ;;  %v5348_v14 = vld [vmem:[%s5620_s15 + $0x88] sm:$0xff]  ;;  %v5351_v56 = vld [vmem:[%s5620_s15 + $0xb0] sm:$0xff] }
 0x414   : > { %v4245_v55 = vmul.f32 %v5266_v59, %v4213_v15  ;;  %v7810_v3 = vmul.f32 %v5270_v1, %v4060_v62  ;;  %v3897_v63 = vmul.f32 %v7760_v19, %v7350_v9  ;;  %v4020_v50 = vmul.f32 1.442695, %v3963_v58  ;;  %v5346_v19 = vld [vmem:[%s5620_s15 + $0x80] sm:$0xff] }
 0x415   : > { %v5272_v47 = vpop.eup %5271  ;;  %v4340_v22 = vadd.f32 %v5345_v2, %v4308_v23  ;;  %v4306_v57 = vmul.f32 %v4274_v10, %v4242_v39  ;;  %v4243_v0 = vmul.f32 %v5268_v11, %v4211_v27  ;;  %5281 = vrcp.f32 %v7808_v38  ;;  %v5347_v10 = vld [vmem:[%s5620_s15 + $0x98] sm:$0xff] }
 0x416   : > { %v4309_v44 = vmul.f32 %v4277_v33, %v4245_v55  ;;  %v4184_v40 = vmul.f32 %v5272_v47, %v7770_v24  ;;  %v7818_v7 = vadd.f32 2.0, %v7810_v3  ;;  %v5274_v5 = vpop.eup %5273  ;;  %5283 = vpow2.f32 %v4020_v50 }
 0x417   : > { %4372 = vst.msk [vmem:[%s7555_s9 + $0x90] sm:$0xff] %vm362_vm0, %v4340_v22  ;;  %v4338_v31 = vadd.f32 %v5346_v19, %v4306_v57  ;;  %v4307_v52 = vmul.f32 %v4275_v48, %v4243_v0  ;;  %v4058_v24 = vadd.f32 2.0, %v5274_v5  ;;  %v7829_v59 = vadd.f32 %v7358_v37, %v3897_v63 }
 0x418   : > { %v4341_v53 = vadd.f32 %v5347_v10, %v4309_v44  ;;  %v4216_v33 = vsub.f32 2.0, %v4184_v40  ;;  %5285 = vrcp.f32 %v7818_v7  ;;  %v3895_v20 = vmul.f32 %v7766_v17, %v7350_v9 }
 0x419   : > { %4370 = vst.msk [vmem:[%s7555_s9 + $0x80] sm:$0xff] %vm362_vm0, %v4338_v31  ;;  %v4339_v25 = vadd.f32 %v5348_v14, %v4307_v52  ;;  %v4835_v48 = vadd.f32 %v7623_v29, %v7633_v46  ;;  %v4280_v35 = vmul.f32 %v7753_v26, %v7686_v18  ;;  %v7839_v11 = vmul.f32 %v5274_v5, %v4058_v24  ;;  %v5349_v29 = vld [vmem:[%s7979_s6] ss:$0 sm:$0xff] }
 0x41a   : > { %v5276_v13 = vpop.eup %5275  ;;  %4373 = vst.msk [vmem:[%s7555_s9 + $0x98] sm:$0xff] %vm362_vm0, %v4341_v53  ;;  %v4248_v12 = vmul.f32 %v5272_v47, %v4216_v33  ;;  %v4836_v28 = vadd.f32 %v7635_v54, %v7644_v42  ;;  %v3968_v9 = vmin.f32 %v7829_v59, 20.0  ;;  %v7850_v46 = vadd.f32 %v5349_v29, %v3895_v20  ;;  %v5350_v18 = vld [vmem:[%s7978_s5] ss:$0 sm:$0xff]  ;;  %v5353_v33 = vld [vmem:[%s5620_s15 + $0xb8] sm:$0xff] }
 0x41b   : > { %4371 = vst.msk [vmem:[%s7555_s9 + $0x88] sm:$0xff] %vm362_vm0, %v4339_v25  ;;  %v4182_v37 = vmul.f32 %v5276_v13, %v7790_v4  ;;  %v3898_v26 = vmul.f32 %v5350_v18, %v4835_v48  ;;  %v4278_v42 = vmul.f32 %v7782_v45, %v7707_v6  ;;  %v4122_v4 = vadd.f32 2.0, %v7839_v11 }
 0x41c   : > { %v5278_v17 = vpop.eup %5277  ;;  %v4312_v54 = vmul.f32 %v4280_v35, %v4248_v12  ;;  %v3896_v58 = vmul.f32 %v5350_v18, %v4836_v28  ;;  %v4030_v60 = vmul.f32 1.442695, %v3968_v9  ;;  %v3966_v32 = vmin.f32 %v7850_v46, 20.0  ;;  %v5354_v35 = vld [vmem:[%s5620_s15 + $0xa8] sm:$0xff] }
 0x41d   : > { %v5280_v1 = vpop.eup %5279  ;;  %v4214_v41 = vsub.f32 2.0, %v4182_v37  ;;  %v4185_v34 = vmul.f32 %v5278_v17, %v7797_v8  ;;  %5287 = vrcp.f32 %v4122_v4  ;;  %v7861_v23 = vadd.f32 %v5349_v29, %v3898_v26  ;;  %v5355_v26 = vld [vmem:[%s5620_s15 + $0xd0] sm:$0xff] }
 0x41e   : > { %v4344_v15 = vadd.f32 %v5351_v56, %v4312_v54  ;;  %v4061_v62 = vadd.f32 2.0, %v5280_v1  ;;  %5289 = vpow2.f32 %v4030_v60  ;;  %v4026_v6 = vmul.f32 1.442695, %v3966_v32 }
 0x41f   : > { %v4246_v39 = vmul.f32 %v5276_v13, %v4214_v41  ;;  %v4217_v27 = vsub.f32 2.0, %v4185_v34  ;;  %v5282_v45 = vpop.eup %5281  ;;  %v4281_v8 = vmul.f32 %v7792_v61, %v7717_v16  ;;  %v3969_v63 = vmin.f32 %v7861_v23, 20.0  ;;  %v5352_v16 = vld [vmem:[%s5620_s15 + $0xa0] sm:$0xff] }
 0x420   : > { %4376 = vst.msk [vmem:[%s7555_s9 + $0xb0] sm:$0xff] %vm362_vm0, %v4344_v15  ;;  %v7867_v55 = vmul.f32 %v5280_v1, %v4061_v62  ;;  %v7870_v47 = vadd.f32 %v5349_v29, %v3896_v58  ;;  %v5284_v2 = vpop.eup %5283  ;;  %v4183_v0 = vmul.f32 %v5282_v45, %v7808_v38  ;;  %5291 = vpow2.f32 %v4026_v6  ;;  %v5356_v62 = vld [vmem:[%s5620_s15 + $0xc0] sm:$0xff] }
 0x421   : > { %v4310_v22 = vmul.f32 %v4278_v42, %v4246_v39  ;;  %v4249_v57 = vmul.f32 %v5278_v17, %v4217_v27  ;;  %v4059_v40 = vadd.f32 2.0, %v5284_v2  ;;  %v4032_v5 = vmul.f32 1.442695, %v3969_v63 }
 0x422   : > { %v5286_v50 = vpop.eup %5285  ;;  %v4125_v44 = vadd.f32 2.0, %v7867_v55  ;;  %v4215_v31 = vsub.f32 2.0, %v4183_v0  ;;  %v4279_v10 = vmul.f32 %v7803_v36, %v7727_v43  ;;  %v3967_v38 = vmin.f32 %v7870_v47, 20.0 }
 0x423   : > { %v4342_v61 = vadd.f32 %v5352_v16, %v4310_v22  ;;  %v4313_v19 = vmul.f32 %v4281_v8, %v4249_v57  ;;  %v4188_v52 = vmul.f32 %v5286_v50, %v7818_v7  ;;  %v4091_v53 = vmul.f32 %v5284_v2, %v4059_v40 }
 0x424   : > { %5293 = vrcp.f32 %v4125_v44  ;;  %v4247_v14 = vmul.f32 %v5282_v45, %v4215_v31  ;;  %v4028_v48 = vmul.f32 1.442695, %v3967_v38  ;;  %v4284_v36 = vmul.f32 %v7810_v3, %v7736_v30 }
 0x425   : > { %4374 = vst.msk [vmem:[%s7555_s9 + $0xa0] sm:$0xff] %vm362_vm0, %v4342_v61  ;;  %v4345_v24 = vadd.f32 %v5353_v33, %v4313_v19  ;;  %v4220_v25 = vsub.f32 2.0, %v4188_v52  ;;  %5295 = vpow2.f32 %v4032_v5  ;;  %v4123_v20 = vadd.f32 2.0, %v4091_v53 }
 0x426   : > { %v4311_v7 = vmul.f32 %v4279_v10, %v4247_v14  ;;  %v4282_v3 = vmul.f32 %v7839_v11, %v7756_v21  ;;  %v4285_v11 = vmul.f32 %v7867_v55, %v7775_v51  ;;  %v4283_v16 = vmul.f32 %v4091_v53, %v7779_v49  ;;  %v5358_v51 = vld [vmem:[%s5620_s15 + $0xc8] sm:$0xff] }
 0x427   : > { %4377 = vst.msk [vmem:[%s7555_s9 + $0xb8] sm:$0xff] %vm362_vm0, %v4345_v24  ;;  %v4252_v43 = vmul.f32 %v5286_v50, %v4220_v25  ;;  %v5288_v13 = vpop.eup %5287  ;;  %5297 = vrcp.f32 %v4123_v20 }
 0x428   : > { %v5290_v12 = vpop.eup %5289  ;;  %v4343_v28 = vadd.f32 %v5354_v35, %v4311_v7  ;;  %v4186_v9 = vmul.f32 %v5288_v13, %v4122_v4  ;;  %5299 = vpow2.f32 %v4028_v48 }
 0x429   : > { %v4316_v37 = vmul.f32 %v4284_v36, %v4252_v43  ;;  %v4064_v29 = vadd.f32 2.0, %v5290_v12  ;;  %v5359_v43 = vld [vmem:[%s5620_s15 + $0xf0] sm:$0xff] }
 0x42a   : > { %v5292_v18 = vpop.eup %5291  ;;  %4375 = vst.msk [vmem:[%s7555_s9 + $0xa8] sm:$0xff] %vm362_vm0, %v4343_v28  ;;  %v4218_v54 = vsub.f32 2.0, %v4186_v9 }
 0x42b   : > { %v4348_v17 = vadd.f32 %v5355_v26, %v4316_v37  ;;  %v4096_v42 = vmul.f32 %v5290_v12, %v4064_v29  ;;  %v4062_v58 = vadd.f32 2.0, %v5292_v18  ;;  %v5361_v26 = vld [vmem:[%s5620_s15 + $0xf8] sm:$0xff] }
 0x42c   : > { %v4250_v30 = vmul.f32 %v5288_v13, %v4218_v54 }
 0x42d   : > { %4380 = vst.msk [vmem:[%s7555_s9 + $0xd0] sm:$0xff] %vm362_vm0, %v4348_v17  ;;  %v4128_v4 = vadd.f32 2.0, %v4096_v42  ;;  %v4094_v41 = vmul.f32 %v5292_v18, %v4062_v58  ;;  %v4288_v49 = vmul.f32 %v4096_v42, %v7829_v59  ;;  %v5360_v59 = vld [vmem:[%s5620_s15 + $0xe0] sm:$0xff] }
 0x42e   : > { %v5294_v1 = vpop.eup %5293  ;;  %v4314_v60 = vmul.f32 %v4282_v3, %v4250_v30 }
 0x42f   : > { %v5296_v34 = vpop.eup %5295  ;;  %v4189_v32 = vmul.f32 %v5294_v1, %v4125_v44  ;;  %5301 = vrcp.f32 %v4128_v4  ;;  %v4126_v56 = vadd.f32 2.0, %v4094_v41  ;;  %v5357_v44 = vld [vmem:[%s5620_s15 + $0xd8] sm:$0xff]  ;;  %v4286_v48 = vmul.f32 %v4094_v41, %v7850_v46 }
 0x430   : > { %v4065_v15 = vadd.f32 2.0, %v5296_v34  ;;  %v4346_v39 = vadd.f32 %v5356_v62, %v4314_v60 }
 0x431   : > { %v4221_v27 = vsub.f32 2.0, %v4189_v32  ;;  %v5298_v6 = vpop.eup %5297  ;;  %5303 = vrcp.f32 %v4126_v56 }
 0x432   : > { %v4097_v45 = vmul.f32 %v5296_v34, %v4065_v15  ;;  %v5300_v8 = vpop.eup %5299  ;;  %4378 = vst.msk [vmem:[%s7555_s9 + $0xc0] sm:$0xff] %vm362_vm0, %v4346_v39  ;;  %v4187_v63 = vmul.f32 %v5298_v6, %v4123_v20 }
 0x433   : > { %v4253_v21 = vmul.f32 %v5294_v1, %v4221_v27  ;;  %v4063_v22 = vadd.f32 2.0, %v5300_v8 }
 0x434   : > { %v4129_v2 = vadd.f32 2.0, %v4097_v45  ;;  %v4219_v0 = vsub.f32 2.0, %v4187_v63  ;;  %v4289_v9 = vmul.f32 %v4097_v45, %v7861_v23  ;;  %v5362_v23 = vld [vmem:[%s5620_s15 + $0xe8] sm:$0xff] }
 0x435   : > { %v4317_v57 = vmul.f32 %v4285_v11, %v4253_v21  ;;  %v4095_v50 = vmul.f32 %v5300_v8, %v4063_v22 }
 0x436   : > { %5305 = vrcp.f32 %v4129_v2  ;;  %v4251_v5 = vmul.f32 %v5298_v6, %v4219_v0 }
 0x437   : > { %v4349_v40 = vadd.f32 %v5357_v44, %v4317_v57  ;;  %v4127_v61 = vadd.f32 2.0, %v4095_v50  ;;  %v4287_v42 = vmul.f32 %v4095_v50, %v7870_v47 }
 0x438   : > { %v4315_v19 = vmul.f32 %v4283_v16, %v4251_v5 }
 0x439   : > { %4381 = vst.msk [vmem:[%s7555_s9 + $0xd8] sm:$0xff] %vm362_vm0, %v4349_v40  ;;  %v5302_v31 = vpop.eup %5301  ;;  %5307 = vrcp.f32 %v4127_v61 }
 0x43a   : > { %v4347_v55 = vadd.f32 %v5358_v51, %v4315_v19  ;;  %v4192_v52 = vmul.f32 %v5302_v31, %v4128_v4 }
 0x43b   : > { %v5304_v10 = vpop.eup %5303 }
 0x43c   : > { %4379 = vst.msk [vmem:[%s7555_s9 + $0xc8] sm:$0xff] %vm362_vm0, %v4347_v55  ;;  %v4224_v38 = vsub.f32 2.0, %v4192_v52  ;;  %v4190_v33 = vmul.f32 %v5304_v10, %v4126_v56 }
 0x43e   : > { %v4256_v24 = vmul.f32 %v5302_v31, %v4224_v38  ;;  %v4222_v53 = vsub.f32 2.0, %v4190_v33 }
 0x440   : > { %v5306_v14 = vpop.eup %5305  ;;  %v4320_v25 = vmul.f32 %v4288_v49, %v4256_v24  ;;  %v4254_v20 = vmul.f32 %v5304_v10, %v4222_v53 }
 0x441   : > { %v4193_v7 = vmul.f32 %v5306_v14, %v4129_v2 }
 0x442   : > { %v4352_v36 = vadd.f32 %v5359_v43, %v4320_v25  ;;  %v4318_v13 = vmul.f32 %v4286_v48, %v4254_v20 }
 0x443   : > { %v4225_v12 = vsub.f32 2.0, %v4193_v7  ;;  %v5308_v35 = vpop.eup %5307 }
 0x444   : > { %4384 = vst.msk [vmem:[%s7555_s9 + $0xf0] sm:$0xff] %vm362_vm0, %v4352_v36  ;;  %v4350_v28 = vadd.f32 %v5360_v59, %v4318_v13  ;;  %v4191_v29 = vmul.f32 %v5308_v35, %v4127_v61 }
 0x445   : > { %v4257_v37 = vmul.f32 %v5306_v14, %v4225_v12 }
 0x446   : > { %4382 = vst.msk [vmem:[%s7555_s9 + $0xe0] sm:$0xff] %vm362_vm0, %v4350_v28  ;;  %v4223_v18 = vsub.f32 2.0, %v4191_v29 }
 0x447   : > { %v4321_v46 = vmul.f32 %v4289_v9, %v4257_v37 }
 0x448   : > { %v4255_v54 = vmul.f32 %v5308_v35, %v4223_v18 }
 0x449   : > { %v4353_v17 = vadd.f32 %v5361_v26, %v4321_v46 }
 0x44a   : > { %v4319_v58 = vmul.f32 %v4287_v42, %v4255_v54 }
 0x44b   : > { %4385 = vst.msk [vmem:[%s7555_s9 + $0xf8] sm:$0xff] %vm362_vm0, %v4353_v17 }
 0x44c   : > { %v4351_v30 = vadd.f32 %v5362_v23, %v4319_v58 }
 0x44e   : > { %4383 = vst.msk [vmem:[%s7555_s9 + $0xe8] sm:$0xff] %vm362_vm0, %v4351_v30 }
 0x44f   : > { %5406 = shalt.err (!%p5403_p2)
}
 0x450   : > { %s5407_s15 = scalar_lea.hbm %s7924_s19, 4096  ;;  %s5411_s18 = scalar_lea.hbm %s7980_s7, 8192 }
 0x451   : > { %p5408_p4 = scmp.ne.s32.totalorder %s7924_s19, %s5407_s15  ;;  %p5412_p9 = scmp.lt.u32.totalorder %s7924_s19, %s7980_s7 }
 0x452   : > { %p5413_p1 = scmp.lt.u32.totalorder %s5411_s18, %s5407_s15  ;;  %p5415_p6 = scmp.lt.u32.totalorder %s5407_s15, %s7924_s19 }
 0x453   : > { %p5409_p5 = pnand %p5408_p4, %p8038_p11 }
 0x454   : > { %p5414_p3 = por %p5413_p1, %p5412_p9 }
 0x455   : > { %p5410_p7 = pneg %p5409_p5 }
 0x456   : > { %p5416_p12 = por %p5415_p6, %p5414_p3 }
 0x458   : > { %p5417_p13 = pnand %p5416_p12, %p5410_p7 }
 0x45a   : > { %5420 = shalt.err (!%p5417_p13)
}
 0x45b   : > { %s5468_s12 = smov 128   ;;  %s5469_s28 = smov 8  }
 0x45c   : > { %4871 = dma.vmem_to_hbm [thread:$0]  (%p8038_p11), %s7926_s22, 4096, %s7924_s19, %s4387_s29, %s5468_s12, %s5468_s12, %s5469_s28  }
 0x45d PF: > { %s4415_s21 = sand.u32 1, %s5447_s24   ;;  %p8039_p8 = scmp.ne.s32.totalorder %s7992_s14, 0 }
 0x45e   : > { %p8040_p10 = scmp.ge.s32.totalorder %s5459_s27, 2  ;;  %s4416_s17 = scalar_lea.sflag [#allocation5], %s4415_s21 }
 0x460   : > { %p4878_p0 = pnand %p8040_p10, %p8039_p8 }
 0x462   : > { %5442 = dma.done.wait (!%p4878_p0), %s4416_s17, 4096  }
 0x463   : > { %5444 = vsyncadd (!%p4878_p0), %s4416_s17, 4294963200  ;;  %p20_p2 = scmp.ge.s32.totalorder %s5535_s30, 4   ;;  %s8041_s24 = smov %s5451_s25 }
 0x464   : > { %s8042_s25 = smov %s5455_s26  ;;  %s8043_s26 = smov %s5547_s10 }
 0x465   : > { %s8044_s27 = smov %s5535_s30  ;;  %22 = sbr.rel (!%p20_p2) target bundleno = 5 (0x5), region = 98 }
 0x46c   :  { %4421 = vsyncpa [#allocation4], 1 }
 0x46d   :  { %4423 = vsyncpa [#allocation4 + $0x1], 1 }
 0x46e   :  { %4424 = vsyncpa [#allocation5], 1 }
 0x46f   :  { %4426 = vsyncpa [#allocation5 + $0x1], 1 }

</bundles_post_ra>
